<compile_context>
chip_gen: v7x
topology: tpu7x:2x2x1
jax: 0.10.0
libtpu: 0.0.40
codegen_flags: <defaults>
</compile_context>

<pallas_src>
import functools

import jax
import jax.numpy as jnp
from jax.experimental import pallas as pl
from jax.experimental.pallas import tpu as pltpu


def _round_up(x, m):
    return ((x + m - 1) // m) * m


def _pad_or_crop(x, axis, lo, hi, ring=0):
    """torch.nn.functional.pad semantics for one axis (negative = crop) + optional zero ring."""
    if lo < 0:
        x = jax.lax.slice_in_dim(x, -lo, x.shape[axis], axis=axis)
        lo = 0
    if hi < 0:
        x = jax.lax.slice_in_dim(x, 0, x.shape[axis] + hi, axis=axis)
        hi = 0
    lo += ring
    hi += ring
    if lo or hi:
        pads = [(0, 0)] * x.ndim
        pads[axis] = (lo, hi)
        x = jnp.pad(x, pads)
    return x


def _mosaic_params(working_set_bytes):
    # Size the scoped VMEM limit from the actual double-buffered working set, but never
    # above v7x's 64 MiB physical VMEM.
    vmem = int(min(max(2 * int(working_set_bytes) + (8 << 20), 32 << 20), 64 << 20))
    return pltpu.CompilerParams(dimension_semantics=("parallel",),
                                vmem_limit_bytes=vmem)


# --------------------------------------------------------------------------------------
# Kernel 1: ConvTranspose3d(k=4, s=2) -- all 8 parity classes in ONE MXU matmul/sample.
# --------------------------------------------------------------------------------------
def _tconv_kernel(x_ref, w_ref, b_ref, o_ref, col_ref, *, lp_pad, shifts, cip):
    # x_ref  : (1, cip, lbuf1)   zero-ring-padded, channel/flat-padded input volume
    # w_ref  : (8*co, 8*cip)     packed (parity, tap) weight matrix
    # b_ref  : (8*co, 1)         tconv bias, tiled per parity (f32)
    # o_ref  : (1, 8*co, lp_pad) per-parity output slabs (lane-dense)
    # col_ref: (8*cip, lp_pad)   im2col scratch (shared by all 8 parity classes)
    for t, s in enumerate(shifts):
        col_ref[t * cip:(t + 1) * cip, :] = x_ref[0, :, s:s + lp_pad]
    acc = jnp.dot(w_ref[...], col_ref[...], preferred_element_type=jnp.float32)
    o_ref[0] = (acc + b_ref[...]).astype(o_ref.dtype)


# --------------------------------------------------------------------------------------
# Kernel 2: fused (x2 + x1_up) -> Conv3d -> InstanceNorm -> LeakyReLU -> Conv3d ->
#           InstanceNorm -> LeakyReLU.  Each conv = im2col (27*Cop rows) + ONE matmul.
# --------------------------------------------------------------------------------------
def _add_doubleconv_kernel(z1_ref, z2_ref, w1_ref, w2_ref, m_ref, o_ref,
                           zs_ref, ys_ref, col_ref, *,
                           lp_pad, off, shifts, cop, inv_count, eps, slope):
    # zs_ref/ys_ref: (cop, lbuf2) with lbuf2 == off + lp_pad + off (symmetric halos)
    halo = jnp.zeros((cop, off), zs_ref.dtype)
    zs_ref[:, :off] = halo
    zs_ref[:, off + lp_pad: off + lp_pad + off] = halo
    ys_ref[:, :off] = halo
    ys_ref[:, off + lp_pad: off + lp_pad + off] = halo

    # fused skip-connection add (lane-aligned, lane-dense interior write)
    zs_ref[:, off:off + lp_pad] = (z1_ref[0, :, off:off + lp_pad]
                                   + z2_ref[0, :, off:off + lp_pad])
    mask = m_ref[...]                                   # (1, lp_pad) valid-voxel mask

    def conv_in_lrelu(src_ref, w_ref):
        # im2col: 27 shifted (cop, lp_pad) slabs stacked along the contraction dim.
        # TODO(synk): group the 3 kw taps per (kd,kh) via pltpu.roll to cut unaligned
        #             source-slice copies 27 -> 9.
        for t, s in enumerate(shifts):
            col_ref[t * cop:(t + 1) * cop, :] = src_ref[:, off + s: off + s + lp_pad]
        acc = jnp.dot(w_ref[...], col_ref[...], preferred_element_type=jnp.float32)
        # InstanceNorm3d (affine=False, biased var) over the valid interior voxels only.
        masked = acc * mask
        mean = jnp.sum(masked, axis=1, keepdims=True) * inv_count
        cent = (acc - mean) * mask
        var = jnp.sum(cent * cent, axis=1, keepdims=True) * inv_count
        y = (acc - mean) * jax.lax.rsqrt(var + eps)
        y = jnp.where(y >= 0.0, y, slope * y)           # LeakyReLU(0.01)
        return y * mask                                 # pad ring / lane tail stay zero

    y1 = conv_in_lrelu(zs_ref, w1_ref)
    ys_ref[:, off:off + lp_pad] = y1.astype(ys_ref.dtype)
    o_ref[0] = conv_in_lrelu(ys_ref, w2_ref).astype(o_ref.dtype)


# --------------------------------------------------------------------------------------
# Wrapper
# --------------------------------------------------------------------------------------
def up_forward_pallas(x1, x2, params, compute_dtype=jnp.float32):
    tw, tb = params["up_w"], params["up_b"]     # (Ci, Co, 4,4,4), (Co,)
    cw1 = params["c1_w"]                        # (Co, Co, 3,3,3)
    cw2 = params["c2_w"]
    # NOTE: c1_b / c2_b are mathematically cancelled by the affine-free InstanceNorm3d
    # that immediately follows each conv -> not passed to the kernel.

    cdt = compute_dtype
    esz = jnp.dtype(cdt).itemsize

    x1 = x1.astype(jnp.float32)
    x2 = x2.astype(jnp.float32)
    nb, ci, di, hi, wi = x1.shape
    co = tw.shape[1]
    cip = _round_up(ci, 8)
    cop = _round_up(co, 8)

    # ---------------- stage 1: ConvTranspose3d(k=4, s=2) as 8 parity classes ------------
    dp, hp, wp = di + 2, hi + 2, wi + 2          # zero ring of 1 around x1
    lp1 = dp * hp * wp
    lp1_pad = _round_up(lp1, 128)
    sd1, sh1 = hp * wp, wp
    smax1 = sd1 + sh1 + 1
    lbuf1 = _round_up(lp1_pad + smax1, 128)

    x1p = jnp.pad(x1, ((0, 0), (0, 0), (1, 1), (1, 1), (1, 1))).reshape(nb, ci, lp1)
    x1buf = jnp.pad(x1p, ((0, 0), (0, cip - ci), (0, lbuf1 - lp1))).astype(cdt)

    # packed weights: row = parity*co + f ; col = tap*cip + c ; tap index = (a*2+b)*2+c_
    parity_rows = []
    for pd_ in range(2):
        for ph_ in range(2):
            for pw_ in range(2):
                taps = []
                for a in range(2):
                    for b in range(2):
                        for c_ in range(2):
                            blk = tw[:, :, pd_ + 2 * a, ph_ + 2 * b, pw_ + 2 * c_].T  # (co, ci)
                            taps.append(jnp.pad(blk, ((0, 0), (0, cip - ci))))
                parity_rows.append(jnp.concatenate(taps, axis=1))
    w_up = jnp.concatenate(parity_rows, axis=0).astype(cdt)          # (8*co, 8*cip)
    b_up = jnp.tile(tb.astype(jnp.float32), 8).reshape(8 * co, 1)

    shifts1 = tuple((1 - a) * sd1 + (1 - b) * sh1 + (1 - c_)
                    for a in range(2) for b in range(2) for c_ in range(2))

    k1_vmem = (2 * (cip * lbuf1 + 8 * co * 8 * cip + 8 * co * lp1_pad) * esz
               + 8 * cip * lp1_pad * esz + 8 * co * 4)

    up_par = pl.pallas_call(
        functools.partial(_tconv_kernel, lp_pad=lp1_pad, shifts=shifts1, cip=cip),
        out_shape=jax.ShapeDtypeStruct((nb, 8 * co, lp1_pad), cdt),
        grid=(nb,),
        in_specs=[
            pl.BlockSpec((1, cip, lbuf1), lambda i: (i, 0, 0)),
            pl.BlockSpec((8 * co, 8 * cip), lambda i: (0, 0)),
            pl.BlockSpec((8 * co, 1), lambda i: (0, 0)),
        ],
        out_specs=pl.BlockSpec((1, 8 * co, lp1_pad), lambda i: (i, 0, 0)),
        scratch_shapes=[pltpu.VMEM((8 * cip, lp1_pad), cdt)],
        compiler_params=_mosaic_params(k1_vmem),
    )(x1buf, w_up, b_up)

    # parity interleave back to (co, 2D+2, 2H+2, 2W+2) -- layout plumbing only.
    d1, h1, w1 = di + 1, hi + 1, wi + 1
    u = up_par[:, :, :lp1].reshape(nb, 2, 2, 2, co, dp, hp, wp)[:, :, :, :, :, :d1, :h1, :w1]
    u = jnp.transpose(u, (0, 4, 5, 1, 6, 2, 7, 3))
    x1_up = u.reshape(nb, co, 2 * d1, 2 * h1, 2 * w1).astype(jnp.float32)

    # F.pad alignment (faithful to the module's axis order), fused with the +1 zero ring.
    dd = x2.shape[2] - x1_up.shape[2]
    dh = x2.shape[3] - x1_up.shape[3]
    dw = x2.shape[4] - x1_up.shape[4]
    x1a = _pad_or_crop(x1_up, 4, dd // 2, dd - dd // 2, ring=1)   # F.pad 1st pair -> last axis
    x1a = _pad_or_crop(x1a, 3, dh // 2, dh - dh // 2, ring=1)
    x1a = _pad_or_crop(x1a, 2, dw // 2, dw - dw // 2, ring=1)

    d2, h2, w2 = x2.shape[2], x2.shape[3], x2.shape[4]
    dp2, hp2, wp2 = d2 + 2, h2 + 2, w2 + 2
    assert x1a.shape == (nb, co, dp2, hp2, wp2), x1a.shape

    # ---------------- stage 2: fused add + DoubleConv ----------------
    lp2 = dp2 * hp2 * wp2
    lp2_pad = _round_up(lp2, 128)
    sd2, sh2 = hp2 * wp2, wp2
    smax2 = sd2 + sh2 + 1
    off2 = _round_up(smax2, 128)
    lbuf2 = off2 + lp2_pad + off2            # symmetric halos; kernel relies on this

    def to_buf(t):
        flat = t.reshape(nb, co, lp2)
        return jnp.pad(flat, ((0, 0), (0, cop - co),
                              (off2, lbuf2 - off2 - lp2))).astype(cdt)

    z1buf = to_buf(x1a)
    z2buf = to_buf(jnp.pad(x2, ((0, 0), (0, 0), (1, 1), (1, 1), (1, 1))))

    def pack_conv(w):                        # (co, co, 3,3,3) -> (cop, 27*cop)
        wr = jnp.transpose(w.reshape(co, co, 27), (0, 2, 1))          # (o, t, i)
        wr = jnp.pad(wr, ((0, cop - co), (0, 0), (0, cop - co)))
        return wr.reshape(cop, 27 * cop).astype(cdt)

    w1p = pack_conv(cw1)
    w2p = pack_conv(cw2)

    shifts2 = tuple((kd - 1) * sd2 + (kh - 1) * sh2 + (kw - 1)
                    for kd in range(3) for kh in range(3) for kw in range(3))

    vd = (jnp.arange(dp2) >= 1) & (jnp.arange(dp2) <= d2)
    vh = (jnp.arange(hp2) >= 1) & (jnp.arange(hp2) <= h2)
    vw = (jnp.arange(wp2) >= 1) & (jnp.arange(wp2) <= w2)
    mask = (vd[:, None, None] & vh[None, :, None] & vw[None, None, :])
    mask = mask.astype(jnp.float32).reshape(1, lp2)
    mask = jnp.pad(mask, ((0, 0), (0, lp2_pad - lp2)))

    k2_vmem = (2 * (2 * cop * lbuf2 + 2 * cop * 27 * cop) * esz
               + 2 * cop * lp2_pad * 4
               + (2 * cop * lbuf2 + 27 * cop * lp2_pad) * esz + lp2_pad * 4)

    out_flat = pl.pallas_call(
        functools.partial(_add_doubleconv_kernel, lp_pad=lp2_pad, off=off2,
                          shifts=shifts2, cop=cop,
                          inv_count=1.0 / float(d2 * h2 * w2), eps=1e-5, slope=0.01),
        out_shape=jax.ShapeDtypeStruct((nb, cop, lp2_pad), jnp.float32),
        grid=(nb,),
        in_specs=[
            pl.BlockSpec((1, cop, lbuf2), lambda i: (i, 0, 0)),
            pl.BlockSpec((1, cop, lbuf2), lambda i: (i, 0, 0)),
            pl.BlockSpec((cop, 27 * cop), lambda i: (0, 0)),
            pl.BlockSpec((cop, 27 * cop), lambda i: (0, 0)),
            pl.BlockSpec((1, lp2_pad), lambda i: (0, 0)),
        ],
        out_specs=pl.BlockSpec((1, cop, lp2_pad), lambda i: (i, 0, 0)),
        scratch_shapes=[pltpu.VMEM((cop, lbuf2), cdt),
                        pltpu.VMEM((cop, lbuf2), cdt),
                        pltpu.VMEM((27 * cop, lp2_pad), cdt)],
        compiler_params=_mosaic_params(k2_vmem),
    )(z1buf, z2buf, w1p, w2p, mask)

    out = out_flat[:, :co, :lp2].reshape(nb, co, dp2, hp2, wp2)
    return out[:, :, 1:-1, 1:-1, 1:-1]


# --------------------------------------------------------------------------------------
# Pure-JAX reference mirroring the PyTorch semantics.
# --------------------------------------------------------------------------------------
def _up_ref(x1, x2, params):
    tw, tb = params["up_w"], params["up_b"]
    cw1, cb1 = params["c1_w"], params["c1_b"]
    cw2, cb2 = params["c2_w"], params["c2_b"]
    x1 = x1.astype(jnp.float32)
    x2 = x2.astype(jnp.float32)
    n, ci, d, h, w = x1.shape
    co = tw.shape[1]
    do, ho, wo = 2 * d + 2, 2 * h + 2, 2 * w + 2

    up = jnp.zeros((n, co, do, ho, wo), jnp.float32)
    for kd in range(4):
        for kh in range(4):
            for kw in range(4):
                contrib = jnp.einsum("ncdhw,cf->nfdhw", x1, tw[:, :, kd, kh, kw],
                                     precision=jax.lax.Precision.HIGHEST)
                up = up.at[:, :, kd:kd + 2 * d:2,
                           kh:kh + 2 * h:2, kw:kw + 2 * w:2].add(contrib)
    up = up + tb[None, :, None, None, None]

    dd = x2.shape[2] - do
    dh = x2.shape[3] - ho
    dw = x2.shape[4] - wo
    up = _pad_or_crop(up, 4, dd // 2, dd - dd // 2)
    up = _pad_or_crop(up, 3, dh // 2, dh - dh // 2)
    up = _pad_or_crop(up, 2, dw // 2, dw - dw // 2)
    z = x2 + up

    def block(x, wc, bc):
        y = jax.lax.conv_general_dilated(
            x, wc, (1, 1, 1), [(1, 1)] * 3,
            dimension_numbers=("NCDHW", "OIDHW", "NCDHW"),
            precision=jax.lax.Precision.HIGHEST) + bc[None, :, None, None, None]
        m = jnp.mean(y, axis=(2, 3, 4), keepdims=True)
        v = jnp.mean((y - m) ** 2, axis=(2, 3, 4), keepdims=True)
        y = (y - m) * jax.lax.rsqrt(v + 1e-5)
        return jnp.where(y >= 0, y, 0.01 * y)

    return block(block(z, cw1, cb1), cw2, cb2)


if __name__ == "__main__":
    key = jax.random.PRNGKey(0)
    ks = jax.random.split(key, 8)

    n, in_ch, out_ch = 2, 8, 4
    d, h, w = 4, 4, 4          # x1 (low-resolution feature map)
    d2, h2, w2 = 8, 8, 8       # x2 (skip connection)

    x1 = jax.random.normal(ks[0], (n, in_ch, d, h, w), jnp.float32)
    x2 = jax.random.normal(ks[1], (n, out_ch, d2, h2, w2), jnp.float32)
    params = {
        "up_w": 0.1 * jax.random.normal(ks[2], (in_ch, out_ch, 4, 4, 4), jnp.float32),
        "up_b": 0.1 * jax.random.normal(ks[3], (out_ch,), jnp.float32),
        "c1_w": 0.1 * jax.random.normal(ks[4], (out_ch, out_ch, 3, 3, 3), jnp.float32),
        "c1_b": 0.1 * jax.random.normal(ks[5], (out_ch,), jnp.float32),
        "c2_w": 0.1 * jax.random.normal(ks[6], (out_ch, out_ch, 3, 3, 3), jnp.float32),
        "c2_b": 0.1 * jax.random.normal(ks[7], (out_ch,), jnp.float32),
    }

    out = jax.block_until_ready(jax.jit(up_forward_pallas)(x1, x2, params))
    ref = jax.block_until_ready(_up_ref(x1, x2, params))

    assert out.shape == (n, out_ch, d2, h2, w2), out.shape
    max_err = float(jnp.max(jnp.abs(out - ref)))
    assert jnp.allclose(out, ref, atol=2e-2, rtol=2e-2), max_err

    print("KERNEL_OK")
</pallas_src>

<mosaic_0001>
module attributes {stable_mosaic.version = 11 : i64} {
  func.func @_tconv_kernel(%arg0: i32, %arg1: memref<1x8x384xf32, #tpu.memory_space<vmem>>, %arg2: memref<32x64xf32, #tpu.memory_space<vmem>>, %arg3: memref<32x1xf32, #tpu.memory_space<vmem>>, %arg4: memref<1x32x256xf32, #tpu.memory_space<vmem>>, %arg5: memref<64x256xf32, #tpu.memory_space<vmem>>) attributes {dimension_semantics = [#tpu.dimension_semantics<parallel>], iteration_bounds = array<i64: 2>, scalar_prefetch = 0 : i64, scratch_operands = 1 : i64, tpu.core_type = #tpu.core_type<tc>, window_params = [{transform_indices = @transform_0, window_bounds = array<i64: 1, 8, 384>}, {pipeline_mode = #tpu.pipeline_mode<synchronous>, transform_indices = @transform_1, window_bounds = array<i64: 32, 64>}, {pipeline_mode = #tpu.pipeline_mode<synchronous>, transform_indices = @transform_2, window_bounds = array<i64: 32, 1>}, {transform_indices = @transform_3, window_bounds = array<i64: 1, 32, 256>}]} {
    %c0 = arith.constant 0 : index
    %c0_0 = arith.constant 0 : index
    %c43 = arith.constant 43 : index
    %0 = vector.load %arg1[%c0, %c0_0, %c43] : memref<1x8x384xf32, #tpu.memory_space<vmem>>, vector<1x8x256xf32>
    %1 = vector.shape_cast %0 : vector<1x8x256xf32> to vector<8x256xf32>
    %c0_1 = arith.constant 0 : index
    %c0_2 = arith.constant 0 : index
    %2 = vector.load %arg5[%c0_1, %c0_2] : memref<64x256xf32, #tpu.memory_space<vmem>>, vector<8x256xf32>
    tpu.vector_store %arg5[%c0_1, %c0_2], %1 {strides = array<i32>} : memref<64x256xf32, #tpu.memory_space<vmem>>, vector<8x256xf32>,
    %c0_3 = arith.constant 0 : index
    %c0_4 = arith.constant 0 : index
    %c42 = arith.constant 42 : index
    %3 = vector.load %arg1[%c0_3, %c0_4, %c42] : memref<1x8x384xf32, #tpu.memory_space<vmem>>, vector<1x8x256xf32>
    %4 = vector.shape_cast %3 : vector<1x8x256xf32> to vector<8x256xf32>
    %c8 = arith.constant 8 : index
    %c0_5 = arith.constant 0 : index
    %5 = vector.load %arg5[%c8, %c0_5] : memref<64x256xf32, #tpu.memory_space<vmem>>, vector<8x256xf32>
    tpu.vector_store %arg5[%c8, %c0_5], %4 {strides = array<i32>} : memref<64x256xf32, #tpu.memory_space<vmem>>, vector<8x256xf32>,
    %c0_6 = arith.constant 0 : index
    %c0_7 = arith.constant 0 : index
    %c37 = arith.constant 37 : index
    %6 = vector.load %arg1[%c0_6, %c0_7, %c37] : memref<1x8x384xf32, #tpu.memory_space<vmem>>, vector<1x8x256xf32>
    %7 = vector.shape_cast %6 : vector<1x8x256xf32> to vector<8x256xf32>
    %c16 = arith.constant 16 : index
    %c0_8 = arith.constant 0 : index
    %8 = vector.load %arg5[%c16, %c0_8] : memref<64x256xf32, #tpu.memory_space<vmem>>, vector<8x256xf32>
    tpu.vector_store %arg5[%c16, %c0_8], %7 {strides = array<i32>} : memref<64x256xf32, #tpu.memory_space<vmem>>, vector<8x256xf32>,
    %c0_9 = arith.constant 0 : index
    %c0_10 = arith.constant 0 : index
    %c36 = arith.constant 36 : index
    %9 = vector.load %arg1[%c0_9, %c0_10, %c36] : memref<1x8x384xf32, #tpu.memory_space<vmem>>, vector<1x8x256xf32>
    %10 = vector.shape_cast %9 : vector<1x8x256xf32> to vector<8x256xf32>
    %c24 = arith.constant 24 : index
    %c0_11 = arith.constant 0 : index
    %11 = vector.load %arg5[%c24, %c0_11] : memref<64x256xf32, #tpu.memory_space<vmem>>, vector<8x256xf32>
    tpu.vector_store %arg5[%c24, %c0_11], %10 {strides = array<i32>} : memref<64x256xf32, #tpu.memory_space<vmem>>, vector<8x256xf32>,
    %c0_12 = arith.constant 0 : index
    %c0_13 = arith.constant 0 : index
    %c7 = arith.constant 7 : index
    %12 = vector.load %arg1[%c0_12, %c0_13, %c7] : memref<1x8x384xf32, #tpu.memory_space<vmem>>, vector<1x8x256xf32>
    %13 = vector.shape_cast %12 : vector<1x8x256xf32> to vector<8x256xf32>
    %c32 = arith.constant 32 : index
    %c0_14 = arith.constant 0 : index
    %14 = vector.load %arg5[%c32, %c0_14] : memref<64x256xf32, #tpu.memory_space<vmem>>, vector<8x256xf32>
    tpu.vector_store %arg5[%c32, %c0_14], %13 {strides = array<i32>} : memref<64x256xf32, #tpu.memory_space<vmem>>, vector<8x256xf32>,
    %c0_15 = arith.constant 0 : index
    %c0_16 = arith.constant 0 : index
    %c6 = arith.constant 6 : index
    %15 = vector.load %arg1[%c0_15, %c0_16, %c6] : memref<1x8x384xf32, #tpu.memory_space<vmem>>, vector<1x8x256xf32>
    %16 = vector.shape_cast %15 : vector<1x8x256xf32> to vector<8x256xf32>
    %c40 = arith.constant 40 : index
    %c0_17 = arith.constant 0 : index
    %17 = vector.load %arg5[%c40, %c0_17] : memref<64x256xf32, #tpu.memory_space<vmem>>, vector<8x256xf32>
    tpu.vector_store %arg5[%c40, %c0_17], %16 {strides = array<i32>} : memref<64x256xf32, #tpu.memory_space<vmem>>, vector<8x256xf32>,
    %c0_18 = arith.constant 0 : index
    %c0_19 = arith.constant 0 : index
    %c1 = arith.constant 1 : index
    %18 = vector.load %arg1[%c0_18, %c0_19, %c1] : memref<1x8x384xf32, #tpu.memory_space<vmem>>, vector<1x8x256xf32>
    %19 = vector.shape_cast %18 : vector<1x8x256xf32> to vector<8x256xf32>
    %c48 = arith.constant 48 : index
    %c0_20 = arith.constant 0 : index
    %20 = vector.load %arg5[%c48, %c0_20] : memref<64x256xf32, #tpu.memory_space<vmem>>, vector<8x256xf32>
    tpu.vector_store %arg5[%c48, %c0_20], %19 {strides = array<i32>} : memref<64x256xf32, #tpu.memory_space<vmem>>, vector<8x256xf32>,
    %c0_21 = arith.constant 0 : index
    %c0_22 = arith.constant 0 : index
    %c0_23 = arith.constant 0 : index
    %21 = vector.load %arg1[%c0_21, %c0_22, %c0_23] : memref<1x8x384xf32, #tpu.memory_space<vmem>>, vector<1x8x256xf32>
    %22 = vector.shape_cast %21 : vector<1x8x256xf32> to vector<8x256xf32>
    %c56 = arith.constant 56 : index
    %c0_24 = arith.constant 0 : index
    %23 = vector.load %arg5[%c56, %c0_24] : memref<64x256xf32, #tpu.memory_space<vmem>>, vector<8x256xf32>
    tpu.vector_store %arg5[%c56, %c0_24], %22 {strides = array<i32>} : memref<64x256xf32, #tpu.memory_space<vmem>>, vector<8x256xf32>,
    %c0_25 = arith.constant 0 : index
    %c0_26 = arith.constant 0 : index
    %24 = vector.load %arg2[%c0_25, %c0_26] : memref<32x64xf32, #tpu.memory_space<vmem>>, vector<32x64xf32>
    %c0_27 = arith.constant 0 : index
    %c0_28 = arith.constant 0 : index
    %25 = vector.load %arg5[%c0_27, %c0_28] : memref<64x256xf32, #tpu.memory_space<vmem>>, vector<64x256xf32>
    %cst = arith.constant dense<0.000000e+00> : vector<32x256xf32>
    %26 = tpu.matmul %24, %25, %cst {dimension_numbers = #tpu.dot_dimension_numbers<[1], [0], [0], [1], [0, 0, 1, 1], [], []>} : vector<32x64xf32>, vector<64x256xf32>, vector<32x256xf32> -> vector<32x256xf32>
    %c0_29 = arith.constant 0 : index
    %c0_30 = arith.constant 0 : index
    %27 = vector.load %arg3[%c0_29, %c0_30] : memref<32x1xf32, #tpu.memory_space<vmem>>, vector<32x1xf32>
    %28 = vector.broadcast %27 : vector<32x1xf32> to vector<32x256xf32>
    %29 = arith.addf %26, %28 : vector<32x256xf32>
    %c0_31 = arith.constant 0 : index
    %c0_32 = arith.constant 0 : index
    %c0_33 = arith.constant 0 : index
    %30 = vector.load %arg4[%c0_31, %c0_32, %c0_33] : memref<1x32x256xf32, #tpu.memory_space<vmem>>, vector<1x32x256xf32>
    %31 = vector.shape_cast %30 : vector<1x32x256xf32> to vector<32x256xf32>
    %32 = vector.shape_cast %29 : vector<32x256xf32> to vector<1x32x256xf32>
    tpu.vector_store %arg4[%c0_31, %c0_32, %c0_33], %32 {strides = array<i32>} : memref<1x32x256xf32, #tpu.memory_space<vmem>>, vector<1x32x256xf32>,
    return
  }
  func.func @transform_0(%arg0: i32) -> (i32, i32, i32) {
    %c0_i32 = arith.constant 0 : i32
    %c0_i32_0 = arith.constant 0 : i32
    %c0_i32_1 = arith.constant 0 : i32
    return %arg0, %c0_i32, %c0_i32_0 : i32, i32, i32
  }
  func.func @transform_1(%arg0: i32) -> (i32, i32) {
    %c0_i32 = arith.constant 0 : i32
    %c0_i32_0 = arith.constant 0 : i32
    %c0_i32_1 = arith.constant 0 : i32
    return %c0_i32, %c0_i32_0 : i32, i32
  }
  func.func @transform_2(%arg0: i32) -> (i32, i32) {
    %c0_i32 = arith.constant 0 : i32
    %c0_i32_0 = arith.constant 0 : i32
    %c0_i32_1 = arith.constant 0 : i32
    return %c0_i32, %c0_i32_0 : i32, i32
  }
  func.func @transform_3(%arg0: i32) -> (i32, i32, i32) {
    %c0_i32 = arith.constant 0 : i32
    %c0_i32_0 = arith.constant 0 : i32
    %c0_i32_1 = arith.constant 0 : i32
    return %arg0, %c0_i32, %c0_i32_0 : i32, i32, i32
  }
}

module attributes {stable_mosaic.version = 11 : i64} {
  func.func @_add_doubleconv_kernel(%arg0: i32, %arg1: memref<1x8x1280xf32, #tpu.memory_space<vmem>>, %arg2: memref<1x8x1280xf32, #tpu.memory_space<vmem>>, %arg3: memref<8x216xf32, #tpu.memory_space<vmem>>, %arg4: memref<8x216xf32, #tpu.memory_space<vmem>>, %arg5: memref<1x1024xf32, #tpu.memory_space<vmem>>, %arg6: memref<1x8x1024xf32, #tpu.memory_space<vmem>>, %arg7: memref<8x1280xf32, #tpu.memory_space<vmem>>, %arg8: memref<8x1280xf32, #tpu.memory_space<vmem>>, %arg9: memref<216x1024xf32, #tpu.memory_space<vmem>>) attributes {dimension_semantics = [#tpu.dimension_semantics<parallel>], iteration_bounds = array<i64: 2>, scalar_prefetch = 0 : i64, scratch_operands = 3 : i64, tpu.core_type = #tpu.core_type<tc>, window_params = [{transform_indices = @transform_0, window_bounds = array<i64: 1, 8, 1280>}, {transform_indices = @transform_1, window_bounds = array<i64: 1, 8, 1280>}, {pipeline_mode = #tpu.pipeline_mode<synchronous>, transform_indices = @transform_2, window_bounds = array<i64: 8, 216>}, {pipeline_mode = #tpu.pipeline_mode<synchronous>, transform_indices = @transform_3, window_bounds = array<i64: 8, 216>}, {pipeline_mode = #tpu.pipeline_mode<synchronous>, transform_indices = @transform_4, window_bounds = array<i64: 1, 1024>}, {transform_indices = @transform_5, window_bounds = array<i64: 1, 8, 1024>}]} {
    %cst = arith.constant 0.000000e+00 : f32
    %0 = vector.broadcast %cst : f32 to vector<8x128xf32>
    %c0 = arith.constant 0 : index
    %c0_0 = arith.constant 0 : index
    %1 = vector.load %arg7[%c0, %c0_0] : memref<8x1280xf32, #tpu.memory_space<vmem>>, vector<8x128xf32>
    tpu.vector_store %arg7[%c0, %c0_0], %0 {strides = array<i32>} : memref<8x1280xf32, #tpu.memory_space<vmem>>, vector<8x128xf32>,
    %c0_1 = arith.constant 0 : index
    %c1152 = arith.constant 1152 : index
    %2 = vector.load %arg7[%c0_1, %c1152] : memref<8x1280xf32, #tpu.memory_space<vmem>>, vector<8x128xf32>
    tpu.vector_store %arg7[%c0_1, %c1152], %0 {strides = array<i32>} : memref<8x1280xf32, #tpu.memory_space<vmem>>, vector<8x128xf32>,
    %c0_2 = arith.constant 0 : index
    %c0_3 = arith.constant 0 : index
    %3 = vector.load %arg8[%c0_2, %c0_3] : memref<8x1280xf32, #tpu.memory_space<vmem>>, vector<8x128xf32>
    tpu.vector_store %arg8[%c0_2, %c0_3], %0 {strides = array<i32>} : memref<8x1280xf32, #tpu.memory_space<vmem>>, vector<8x128xf32>,
    %c0_4 = arith.constant 0 : index
    %c1152_5 = arith.constant 1152 : index
    %4 = vector.load %arg8[%c0_4, %c1152_5] : memref<8x1280xf32, #tpu.memory_space<vmem>>, vector<8x128xf32>
    tpu.vector_store %arg8[%c0_4, %c1152_5], %0 {strides = array<i32>} : memref<8x1280xf32, #tpu.memory_space<vmem>>, vector<8x128xf32>,
    %c0_6 = arith.constant 0 : index
    %c0_7 = arith.constant 0 : index
    %c128 = arith.constant 128 : index
    %5 = vector.load %arg1[%c0_6, %c0_7, %c128] : memref<1x8x1280xf32, #tpu.memory_space<vmem>>, vector<1x8x1024xf32>
    %6 = vector.shape_cast %5 : vector<1x8x1024xf32> to vector<8x1024xf32>
    %c0_8 = arith.constant 0 : index
    %c0_9 = arith.constant 0 : index
    %c128_10 = arith.constant 128 : index
    %7 = vector.load %arg2[%c0_8, %c0_9, %c128_10] : memref<1x8x1280xf32, #tpu.memory_space<vmem>>, vector<1x8x1024xf32>
    %8 = vector.shape_cast %7 : vector<1x8x1024xf32> to vector<8x1024xf32>
    %9 = arith.addf %6, %8 : vector<8x1024xf32>
    %c0_11 = arith.constant 0 : index
    %c128_12 = arith.constant 128 : index
    %10 = vector.load %arg7[%c0_11, %c128_12] : memref<8x1280xf32, #tpu.memory_space<vmem>>, vector<8x1024xf32>
    tpu.vector_store %arg7[%c0_11, %c128_12], %9 {strides = array<i32>} : memref<8x1280xf32, #tpu.memory_space<vmem>>, vector<8x1024xf32>,
    %c0_13 = arith.constant 0 : index
    %c0_14 = arith.constant 0 : index
    %11 = vector.load %arg5[%c0_13, %c0_14] : memref<1x1024xf32, #tpu.memory_space<vmem>>, vector<1x1024xf32>
    %c0_15 = arith.constant 0 : index
    %c17 = arith.constant 17 : index
    %12 = vector.load %arg7[%c0_15, %c17] : memref<8x1280xf32, #tpu.memory_space<vmem>>, vector<8x1024xf32>
    %c0_16 = arith.constant 0 : index
    %c0_17 = arith.constant 0 : index
    %13 = vector.load %arg9[%c0_16, %c0_17] : memref<216x1024xf32, #tpu.memory_space<vmem>>, vector<8x1024xf32>
    tpu.vector_store %arg9[%c0_16, %c0_17], %12 {strides = array<i32>} : memref<216x1024xf32, #tpu.memory_space<vmem>>, vector<8x1024xf32>,
    %c0_18 = arith.constant 0 : index
    %c18 = arith.constant 18 : index
    %14 = vector.load %arg7[%c0_18, %c18] : memref<8x1280xf32, #tpu.memory_space<vmem>>, vector<8x1024xf32>
    %c8 = arith.constant 8 : index
    %c0_19 = arith.constant 0 : index
    %15 = vector.load %arg9[%c8, %c0_19] : memref<216x1024xf32, #tpu.memory_space<vmem>>, vector<8x1024xf32>
    tpu.vector_store %arg9[%c8, %c0_19], %14 {strides = array<i32>} : memref<216x1024xf32, #tpu.memory_space<vmem>>, vector<8x1024xf32>,
    %c0_20 = arith.constant 0 : index
    %c19 = arith.constant 19 : index
    %16 = vector.load %arg7[%c0_20, %c19] : memref<8x1280xf32, #tpu.memory_space<vmem>>, vector<8x1024xf32>
    %c16 = arith.constant 16 : index
    %c0_21 = arith.constant 0 : index
    %17 = vector.load %arg9[%c16, %c0_21] : memref<216x1024xf32, #tpu.memory_space<vmem>>, vector<8x1024xf32>
    tpu.vector_store %arg9[%c16, %c0_21], %16 {strides = array<i32>} : memref<216x1024xf32, #tpu.memory_space<vmem>>, vector<8x1024xf32>,
    %c0_22 = arith.constant 0 : index
    %c27 = arith.constant 27 : index
    %18 = vector.load %arg7[%c0_22, %c27] : memref<8x1280xf32, #tpu.memory_space<vmem>>, vector<8x1024xf32>
    %c24 = arith.constant 24 : index
    %c0_23 = arith.constant 0 : index
    %19 = vector.load %arg9[%c24, %c0_23] : memref<216x1024xf32, #tpu.memory_space<vmem>>, vector<8x1024xf32>
    tpu.vector_store %arg9[%c24, %c0_23], %18 {strides = array<i32>} : memref<216x1024xf32, #tpu.memory_space<vmem>>, vector<8x1024xf32>,
    %c0_24 = arith.constant 0 : index
    %c28 = arith.constant 28 : index
    %20 = vector.load %arg7[%c0_24, %c28] : memref<8x1280xf32, #tpu.memory_space<vmem>>, vector<8x1024xf32>
    %c32 = arith.constant 32 : index
    %c0_25 = arith.constant 0 : index
    %21 = vector.load %arg9[%c32, %c0_25] : memref<216x1024xf32, #tpu.memory_space<vmem>>, vector<8x1024xf32>
    tpu.vector_store %arg9[%c32, %c0_25], %20 {strides = array<i32>} : memref<216x1024xf32, #tpu.memory_space<vmem>>, vector<8x1024xf32>,
    %c0_26 = arith.constant 0 : index
    %c29 = arith.constant 29 : index
    %22 = vector.load %arg7[%c0_26, %c29] : memref<8x1280xf32, #tpu.memory_space<vmem>>, vector<8x1024xf32>
    %c40 = arith.constant 40 : index
    %c0_27 = arith.constant 0 : index
    %23 = vector.load %arg9[%c40, %c0_27] : memref<216x1024xf32, #tpu.memory_space<vmem>>, vector<8x1024xf32>
    tpu.vector_store %arg9[%c40, %c0_27], %22 {strides = array<i32>} : memref<216x1024xf32, #tpu.memory_space<vmem>>, vector<8x1024xf32>,
    %c0_28 = arith.constant 0 : index
    %c37 = arith.constant 37 : index
    %24 = vector.load %arg7[%c0_28, %c37] : memref<8x1280xf32, #tpu.memory_space<vmem>>, vector<8x1024xf32>
    %c48 = arith.constant 48 : index
    %c0_29 = arith.constant 0 : index
    %25 = vector.load %arg9[%c48, %c0_29] : memref<216x1024xf32, #tpu.memory_space<vmem>>, vector<8x1024xf32>
    tpu.vector_store %arg9[%c48, %c0_29], %24 {strides = array<i32>} : memref<216x1024xf32, #tpu.memory_space<vmem>>, vector<8x1024xf32>,
    %c0_30 = arith.constant 0 : index
    %c38 = arith.constant 38 : index
    %26 = vector.load %arg7[%c0_30, %c38] : memref<8x1280xf32, #tpu.memory_space<vmem>>, vector<8x1024xf32>
    %c56 = arith.constant 56 : index
    %c0_31 = arith.constant 0 : index
    %27 = vector.load %arg9[%c56, %c0_31] : memref<216x1024xf32, #tpu.memory_space<vmem>>, vector<8x1024xf32>
    tpu.vector_store %arg9[%c56, %c0_31], %26 {strides = array<i32>} : memref<216x1024xf32, #tpu.memory_space<vmem>>, vector<8x1024xf32>,
    %c0_32 = arith.constant 0 : index
    %c39 = arith.constant 39 : index
    %28 = vector.load %arg7[%c0_32, %c39] : memref<8x1280xf32, #tpu.memory_space<vmem>>, vector<8x1024xf32>
    %c64 = arith.constant 64 : index
    %c0_33 = arith.constant 0 : index
    %29 = vector.load %arg9[%c64, %c0_33] : memref<216x1024xf32, #tpu.memory_space<vmem>>, vector<8x1024xf32>
    tpu.vector_store %arg9[%c64, %c0_33], %28 {strides = array<i32>} : memref<216x1024xf32, #tpu.memory_space<vmem>>, vector<8x1024xf32>,
    %c0_34 = arith.constant 0 : index
    %c117 = arith.constant 117 : index
    %30 = vector.load %arg7[%c0_34, %c117] : memref<8x1280xf32, #tpu.memory_space<vmem>>, vector<8x1024xf32>
    %c72 = arith.constant 72 : index
    %c0_35 = arith.constant 0 : index
    %31 = vector.load %arg9[%c72, %c0_35] : memref<216x1024xf32, #tpu.memory_space<vmem>>, vector<8x1024xf32>
    tpu.vector_store %arg9[%c72, %c0_35], %30 {strides = array<i32>} : memref<216x1024xf32, #tpu.memory_space<vmem>>, vector<8x1024xf32>,
    %c0_36 = arith.constant 0 : index
    %c118 = arith.constant 118 : index
    %32 = vector.load %arg7[%c0_36, %c118] : memref<8x1280xf32, #tpu.memory_space<vmem>>, vector<8x1024xf32>
    %c80 = arith.constant 80 : index
    %c0_37 = arith.constant 0 : index
    %33 = vector.load %arg9[%c80, %c0_37] : memref<216x1024xf32, #tpu.memory_space<vmem>>, vector<8x1024xf32>
    tpu.vector_store %arg9[%c80, %c0_37], %32 {strides = array<i32>} : memref<216x1024xf32, #tpu.memory_space<vmem>>, vector<8x1024xf32>,
    %c0_38 = arith.constant 0 : index
    %c119 = arith.constant 119 : index
    %34 = vector.load %arg7[%c0_38, %c119] : memref<8x1280xf32, #tpu.memory_space<vmem>>, vector<8x1024xf32>
    %c88 = arith.constant 88 : index
    %c0_39 = arith.constant 0 : index
    %35 = vector.load %arg9[%c88, %c0_39] : memref<216x1024xf32, #tpu.memory_space<vmem>>, vector<8x1024xf32>
    tpu.vector_store %arg9[%c88, %c0_39], %34 {strides = array<i32>} : memref<216x1024xf32, #tpu.memory_space<vmem>>, vector<8x1024xf32>,
    %c0_40 = arith.constant 0 : index
    %c127 = arith.constant 127 : index
    %36 = vector.load %arg7[%c0_40, %c127] : memref<8x1280xf32, #tpu.memory_space<vmem>>, vector<8x1024xf32>
    %c96 = arith.constant 96 : index
    %c0_41 = arith.constant 0 : index
    %37 = vector.load %arg9[%c96, %c0_41] : memref<216x1024xf32, #tpu.memory_space<vmem>>, vector<8x1024xf32>
    tpu.vector_store %arg9[%c96, %c0_41], %36 {strides = array<i32>} : memref<216x1024xf32, #tpu.memory_space<vmem>>, vector<8x1024xf32>,
    %c0_42 = arith.constant 0 : index
    %c128_43 = arith.constant 128 : index
    %38 = vector.load %arg7[%c0_42, %c128_43] : memref<8x1280xf32, #tpu.memory_space<vmem>>, vector<8x1024xf32>
    %c104 = arith.constant 104 : index
    %c0_44 = arith.constant 0 : index
    %39 = vector.load %arg9[%c104, %c0_44] : memref<216x1024xf32, #tpu.memory_space<vmem>>, vector<8x1024xf32>
    tpu.vector_store %arg9[%c104, %c0_44], %38 {strides = array<i32>} : memref<216x1024xf32, #tpu.memory_space<vmem>>, vector<8x1024xf32>,
    %c0_45 = arith.constant 0 : index
    %c129 = arith.constant 129 : index
    %40 = vector.load %arg7[%c0_45, %c129] : memref<8x1280xf32, #tpu.memory_space<vmem>>, vector<8x1024xf32>
    %c112 = arith.constant 112 : index
    %c0_46 = arith.constant 0 : index
    %41 = vector.load %arg9[%c112, %c0_46] : memref<216x1024xf32, #tpu.memory_space<vmem>>, vector<8x1024xf32>
    tpu.vector_store %arg9[%c112, %c0_46], %40 {strides = array<i32>} : memref<216x1024xf32, #tpu.memory_space<vmem>>, vector<8x1024xf32>,
    %c0_47 = arith.constant 0 : index
    %c137 = arith.constant 137 : index
    %42 = vector.load %arg7[%c0_47, %c137] : memref<8x1280xf32, #tpu.memory_space<vmem>>, vector<8x1024xf32>
    %c120 = arith.constant 120 : index
    %c0_48 = arith.constant 0 : index
    %43 = vector.load %arg9[%c120, %c0_48] : memref<216x1024xf32, #tpu.memory_space<vmem>>, vector<8x1024xf32>
    tpu.vector_store %arg9[%c120, %c0_48], %42 {strides = array<i32>} : memref<216x1024xf32, #tpu.memory_space<vmem>>, vector<8x1024xf32>,
    %c0_49 = arith.constant 0 : index
    %c138 = arith.constant 138 : index
    %44 = vector.load %arg7[%c0_49, %c138] : memref<8x1280xf32, #tpu.memory_space<vmem>>, vector<8x1024xf32>
    %c128_50 = arith.constant 128 : index
    %c0_51 = arith.constant 0 : index
    %45 = vector.load %arg9[%c128_50, %c0_51] : memref<216x1024xf32, #tpu.memory_space<vmem>>, vector<8x1024xf32>
    tpu.vector_store %arg9[%c128_50, %c0_51], %44 {strides = array<i32>} : memref<216x1024xf32, #tpu.memory_space<vmem>>, vector<8x1024xf32>,
    %c0_52 = arith.constant 0 : index
    %c139 = arith.constant 139 : index
    %46 = vector.load %arg7[%c0_52, %c139] : memref<8x1280xf32, #tpu.memory_space<vmem>>, vector<8x1024xf32>
    %c136 = arith.constant 136 : index
    %c0_53 = arith.constant 0 : index
    %47 = vector.load %arg9[%c136, %c0_53] : memref<216x1024xf32, #tpu.memory_space<vmem>>, vector<8x1024xf32>
    tpu.vector_store %arg9[%c136, %c0_53], %46 {strides = array<i32>} : memref<216x1024xf32, #tpu.memory_space<vmem>>, vector<8x1024xf32>,
    %c0_54 = arith.constant 0 : index
    %c217 = arith.constant 217 : index
    %48 = vector.load %arg7[%c0_54, %c217] : memref<8x1280xf32, #tpu.memory_space<vmem>>, vector<8x1024xf32>
    %c144 = arith.constant 144 : index
    %c0_55 = arith.constant 0 : index
    %49 = vector.load %arg9[%c144, %c0_55] : memref<216x1024xf32, #tpu.memory_space<vmem>>, vector<8x1024xf32>
    tpu.vector_store %arg9[%c144, %c0_55], %48 {strides = array<i32>} : memref<216x1024xf32, #tpu.memory_space<vmem>>, vector<8x1024xf32>,
    %c0_56 = arith.constant 0 : index
    %c218 = arith.constant 218 : index
    %50 = vector.load %arg7[%c0_56, %c218] : memref<8x1280xf32, #tpu.memory_space<vmem>>, vector<8x1024xf32>
    %c152 = arith.constant 152 : index
    %c0_57 = arith.constant 0 : index
    %51 = vector.load %arg9[%c152, %c0_57] : memref<216x1024xf32, #tpu.memory_space<vmem>>, vector<8x1024xf32>
    tpu.vector_store %arg9[%c152, %c0_57], %50 {strides = array<i32>} : memref<216x1024xf32, #tpu.memory_space<vmem>>, vector<8x1024xf32>,
    %c0_58 = arith.constant 0 : index
    %c219 = arith.constant 219 : index
    %52 = vector.load %arg7[%c0_58, %c219] : memref<8x1280xf32, #tpu.memory_space<vmem>>, vector<8x1024xf32>
    %c160 = arith.constant 160 : index
    %c0_59 = arith.constant 0 : index
    %53 = vector.load %arg9[%c160, %c0_59] : memref<216x1024xf32, #tpu.memory_space<vmem>>, vector<8x1024xf32>
    tpu.vector_store %arg9[%c160, %c0_59], %52 {strides = array<i32>} : memref<216x1024xf32, #tpu.memory_space<vmem>>, vector<8x1024xf32>,
    %c0_60 = arith.constant 0 : index
    %c227 = arith.constant 227 : index
    %54 = vector.load %arg7[%c0_60, %c227] : memref<8x1280xf32, #tpu.memory_space<vmem>>, vector<8x1024xf32>
    %c168 = arith.constant 168 : index
    %c0_61 = arith.constant 0 : index
    %55 = vector.load %arg9[%c168, %c0_61] : memref<216x1024xf32, #tpu.memory_space<vmem>>, vector<8x1024xf32>
    tpu.vector_store %arg9[%c168, %c0_61], %54 {strides = array<i32>} : memref<216x1024xf32, #tpu.memory_space<vmem>>, vector<8x1024xf32>,
    %c0_62 = arith.constant 0 : index
    %c228 = arith.constant 228 : index
    %56 = vector.load %arg7[%c0_62, %c228] : memref<8x1280xf32, #tpu.memory_space<vmem>>, vector<8x1024xf32>
    %c176 = arith.constant 176 : index
    %c0_63 = arith.constant 0 : index
    %57 = vector.load %arg9[%c176, %c0_63] : memref<216x1024xf32, #tpu.memory_space<vmem>>, vector<8x1024xf32>
    tpu.vector_store %arg9[%c176, %c0_63], %56 {strides = array<i32>} : memref<216x1024xf32, #tpu.memory_space<vmem>>, vector<8x1024xf32>,
    %c0_64 = arith.constant 0 : index
    %c229 = arith.constant 229 : index
    %58 = vector.load %arg7[%c0_64, %c229] : memref<8x1280xf32, #tpu.memory_space<vmem>>, vector<8x1024xf32>
    %c184 = arith.constant 184 : index
    %c0_65 = arith.constant 0 : index
    %59 = vector.load %arg9[%c184, %c0_65] : memref<216x1024xf32, #tpu.memory_space<vmem>>, vector<8x1024xf32>
    tpu.vector_store %arg9[%c184, %c0_65], %58 {strides = array<i32>} : memref<216x1024xf32, #tpu.memory_space<vmem>>, vector<8x1024xf32>,
    %c0_66 = arith.constant 0 : index
    %c237 = arith.constant 237 : index
    %60 = vector.load %arg7[%c0_66, %c237] : memref<8x1280xf32, #tpu.memory_space<vmem>>, vector<8x1024xf32>
    %c192 = arith.constant 192 : index
    %c0_67 = arith.constant 0 : index
    %61 = vector.load %arg9[%c192, %c0_67] : memref<216x1024xf32, #tpu.memory_space<vmem>>, vector<8x1024xf32>
    tpu.vector_store %arg9[%c192, %c0_67], %60 {strides = array<i32>} : memref<216x1024xf32, #tpu.memory_space<vmem>>, vector<8x1024xf32>,
    %c0_68 = arith.constant 0 : index
    %c238 = arith.constant 238 : index
    %62 = vector.load %arg7[%c0_68, %c238] : memref<8x1280xf32, #tpu.memory_space<vmem>>, vector<8x1024xf32>
    %c200 = arith.constant 200 : index
    %c0_69 = arith.constant 0 : index
    %63 = vector.load %arg9[%c200, %c0_69] : memref<216x1024xf32, #tpu.memory_space<vmem>>, vector<8x1024xf32>
    tpu.vector_store %arg9[%c200, %c0_69], %62 {strides = array<i32>} : memref<216x1024xf32, #tpu.memory_space<vmem>>, vector<8x1024xf32>,
    %c0_70 = arith.constant 0 : index
    %c239 = arith.constant 239 : index
    %64 = vector.load %arg7[%c0_70, %c239] : memref<8x1280xf32, #tpu.memory_space<vmem>>, vector<8x1024xf32>
    %c208 = arith.constant 208 : index
    %c0_71 = arith.constant 0 : index
    %65 = vector.load %arg9[%c208, %c0_71] : memref<216x1024xf32, #tpu.memory_space<vmem>>, vector<8x1024xf32>
    tpu.vector_store %arg9[%c208, %c0_71], %64 {strides = array<i32>} : memref<216x1024xf32, #tpu.memory_space<vmem>>, vector<8x1024xf32>,
    %c0_72 = arith.constant 0 : index
    %c0_73 = arith.constant 0 : index
    %66 = vector.load %arg3[%c0_72, %c0_73] : memref<8x216xf32, #tpu.memory_space<vmem>>, vector<8x216xf32>
    %c0_74 = arith.constant 0 : index
    %c0_75 = arith.constant 0 : index
    %67 = vector.load %arg9[%c0_74, %c0_75] : memref<216x1024xf32, #tpu.memory_space<vmem>>, vector<216x1024xf32>
    %cst_76 = arith.constant dense<0.000000e+00> : vector<8x1024xf32>
    %68 = tpu.matmul %66, %67, %cst_76 {dimension_numbers = #tpu.dot_dimension_numbers<[1], [0], [0], [1], [0, 0, 1, 1], [], []>} : vector<8x216xf32>, vector<216x1024xf32>, vector<8x1024xf32> -> vector<8x1024xf32>
    %69 = vector.broadcast %11 : vector<1x1024xf32> to vector<8x1024xf32>
    %70 = arith.mulf %68, %69 : vector<8x1024xf32>
    %cst_77 = arith.constant dense<0.000000e+00> : vector<8xf32>
    %71 = vector.multi_reduction <add>, %70, %cst_77 [1] : vector<8x1024xf32> to vector<8xf32>
    %72 = vector.shape_cast %71 : vector<8xf32> to vector<8x1xf32>
    %cst_78 = arith.constant 0.001953125 : f32
    %73 = vector.broadcast %cst_78 : f32 to vector<8x1xf32>
    %74 = arith.mulf %72, %73 : vector<8x1xf32>
    %75 = vector.broadcast %74 : vector<8x1xf32> to vector<8x1024xf32>
    %76 = arith.subf %68, %75 : vector<8x1024xf32>
    %77 = vector.broadcast %11 : vector<1x1024xf32> to vector<8x1024xf32>
    %78 = arith.mulf %76, %77 : vector<8x1024xf32>
    %79 = arith.mulf %78, %78 : vector<8x1024xf32>
    %cst_79 = arith.constant dense<0.000000e+00> : vector<8xf32>
    %80 = vector.multi_reduction <add>, %79, %cst_79 [1] : vector<8x1024xf32> to vector<8xf32>
    %81 = vector.shape_cast %80 : vector<8xf32> to vector<8x1xf32>
    %cst_80 = arith.constant 0.001953125 : f32
    %82 = vector.broadcast %cst_80 : f32 to vector<8x1xf32>
    %83 = arith.mulf %81, %82 : vector<8x1xf32>
    %84 = vector.broadcast %74 : vector<8x1xf32> to vector<8x1024xf32>
    %85 = arith.subf %68, %84 : vector<8x1024xf32>
    %cst_81 = arith.constant 9.99999974E-6 : f32
    %86 = vector.broadcast %cst_81 : f32 to vector<8x1xf32>
    %87 = arith.addf %83, %86 : vector<8x1xf32>
    %88 = math.rsqrt %87 : vector<8x1xf32>
    %89 = vector.broadcast %88 : vector<8x1xf32> to vector<8x1024xf32>
    %90 = arith.mulf %85, %89 : vector<8x1024xf32>
    %cst_82 = arith.constant 0.000000e+00 : f32
    %91 = vector.broadcast %cst_82 : f32 to vector<8x1024xf32>
    %92 = arith.cmpf oge, %90, %91 : vector<8x1024xf32>
    %cst_83 = arith.constant 0.00999999977 : f32
    %93 = vector.broadcast %cst_83 : f32 to vector<8x1024xf32>
    %94 = arith.mulf %93, %90 : vector<8x1024xf32>
    %95 = arith.select %92, %90, %94 : vector<8x1024xi1>, vector<8x1024xf32>
    %96 = vector.broadcast %11 : vector<1x1024xf32> to vector<8x1024xf32>
    %97 = arith.mulf %95, %96 : vector<8x1024xf32>
    %c0_84 = arith.constant 0 : index
    %c128_85 = arith.constant 128 : index
    %98 = vector.load %arg8[%c0_84, %c128_85] : memref<8x1280xf32, #tpu.memory_space<vmem>>, vector<8x1024xf32>
    tpu.vector_store %arg8[%c0_84, %c128_85], %97 {strides = array<i32>} : memref<8x1280xf32, #tpu.memory_space<vmem>>, vector<8x1024xf32>,
    %c0_86 = arith.constant 0 : index
    %c17_87 = arith.constant 17 : index
    %99 = vector.load %arg8[%c0_86, %c17_87] : memref<8x1280xf32, #tpu.memory_space<vmem>>, vector<8x1024xf32>
    %c0_88 = arith.constant 0 : index
    %c0_89 = arith.constant 0 : index
    %100 = vector.load %arg9[%c0_88, %c0_89] : memref<216x1024xf32, #tpu.memory_space<vmem>>, vector<8x1024xf32>
    tpu.vector_store %arg9[%c0_88, %c0_89], %99 {strides = array<i32>} : memref<216x1024xf32, #tpu.memory_space<vmem>>, vector<8x1024xf32>,
    %c0_90 = arith.constant 0 : index
    %c18_91 = arith.constant 18 : index
    %101 = vector.load %arg8[%c0_90, %c18_91] : memref<8x1280xf32, #tpu.memory_space<vmem>>, vector<8x1024xf32>
    %c8_92 = arith.constant 8 : index
    %c0_93 = arith.constant 0 : index
    %102 = vector.load %arg9[%c8_92, %c0_93] : memref<216x1024xf32, #tpu.memory_space<vmem>>, vector<8x1024xf32>
    tpu.vector_store %arg9[%c8_92, %c0_93], %101 {strides = array<i32>} : memref<216x1024xf32, #tpu.memory_space<vmem>>, vector<8x1024xf32>,
    %c0_94 = arith.constant 0 : index
    %c19_95 = arith.constant 19 : index
    %103 = vector.load %arg8[%c0_94, %c19_95] : memref<8x1280xf32, #tpu.memory_space<vmem>>, vector<8x1024xf32>
    %c16_96 = arith.constant 16 : index
    %c0_97 = arith.constant 0 : index
    %104 = vector.load %arg9[%c16_96, %c0_97] : memref<216x1024xf32, #tpu.memory_space<vmem>>, vector<8x1024xf32>
    tpu.vector_store %arg9[%c16_96, %c0_97], %103 {strides = array<i32>} : memref<216x1024xf32, #tpu.memory_space<vmem>>, vector<8x1024xf32>,
    %c0_98 = arith.constant 0 : index
    %c27_99 = arith.constant 27 : index
    %105 = vector.load %arg8[%c0_98, %c27_99] : memref<8x1280xf32, #tpu.memory_space<vmem>>, vector<8x1024xf32>
    %c24_100 = arith.constant 24 : index
    %c0_101 = arith.constant 0 : index
    %106 = vector.load %arg9[%c24_100, %c0_101] : memref<216x1024xf32, #tpu.memory_space<vmem>>, vector<8x1024xf32>
    tpu.vector_store %arg9[%c24_100, %c0_101], %105 {strides = array<i32>} : memref<216x1024xf32, #tpu.memory_space<vmem>>, vector<8x1024xf32>,
    %c0_102 = arith.constant 0 : index
    %c28_103 = arith.constant 28 : index
    %107 = vector.load %arg8[%c0_102, %c28_103] : memref<8x1280xf32, #tpu.memory_space<vmem>>, vector<8x1024xf32>
    %c32_104 = arith.constant 32 : index
    %c0_105 = arith.constant 0 : index
    %108 = vector.load %arg9[%c32_104, %c0_105] : memref<216x1024xf32, #tpu.memory_space<vmem>>, vector<8x1024xf32>
    tpu.vector_store %arg9[%c32_104, %c0_105], %107 {strides = array<i32>} : memref<216x1024xf32, #tpu.memory_space<vmem>>, vector<8x1024xf32>,
    %c0_106 = arith.constant 0 : index
    %c29_107 = arith.constant 29 : index
    %109 = vector.load %arg8[%c0_106, %c29_107] : memref<8x1280xf32, #tpu.memory_space<vmem>>, vector<8x1024xf32>
    %c40_108 = arith.constant 40 : index
    %c0_109 = arith.constant 0 : index
    %110 = vector.load %arg9[%c40_108, %c0_109] : memref<216x1024xf32, #tpu.memory_space<vmem>>, vector<8x1024xf32>
    tpu.vector_store %arg9[%c40_108, %c0_109], %109 {strides = array<i32>} : memref<216x1024xf32, #tpu.memory_space<vmem>>, vector<8x1024xf32>,
    %c0_110 = arith.constant 0 : index
    %c37_111 = arith.constant 37 : index
    %111 = vector.load %arg8[%c0_110, %c37_111] : memref<8x1280xf32, #tpu.memory_space<vmem>>, vector<8x1024xf32>
    %c48_112 = arith.constant 48 : index
    %c0_113 = arith.constant 0 : index
    %112 = vector.load %arg9[%c48_112, %c0_113] : memref<216x1024xf32, #tpu.memory_space<vmem>>, vector<8x1024xf32>
    tpu.vector_store %arg9[%c48_112, %c0_113], %111 {strides = array<i32>} : memref<216x1024xf32, #tpu.memory_space<vmem>>, vector<8x1024xf32>,
    %c0_114 = arith.constant 0 : index
    %c38_115 = arith.constant 38 : index
    %113 = vector.load %arg8[%c0_114, %c38_115] : memref<8x1280xf32, #tpu.memory_space<vmem>>, vector<8x1024xf32>
    %c56_116 = arith.constant 56 : index
    %c0_117 = arith.constant 0 : index
    %114 = vector.load %arg9[%c56_116, %c0_117] : memref<216x1024xf32, #tpu.memory_space<vmem>>, vector<8x1024xf32>
    tpu.vector_store %arg9[%c56_116, %c0_117], %113 {strides = array<i32>} : memref<216x1024xf32, #tpu.memory_space<vmem>>, vector<8x1024xf32>,
    %c0_118 = arith.constant 0 : index
    %c39_119 = arith.constant 39 : index
    %115 = vector.load %arg8[%c0_118, %c39_119] : memref<8x1280xf32, #tpu.memory_space<vmem>>, vector<8x1024xf32>
    %c64_120 = arith.constant 64 : index
    %c0_121 = arith.constant 0 : index
    %116 = vector.load %arg9[%c64_120, %c0_121] : memref<216x1024xf32, #tpu.memory_space<vmem>>, vector<8x1024xf32>
    tpu.vector_store %arg9[%c64_120, %c0_121], %115 {strides = array<i32>} : memref<216x1024xf32, #tpu.memory_space<vmem>>, vector<8x1024xf32>,
    %c0_122 = arith.constant 0 : index
    %c117_123 = arith.constant 117 : index
    %117 = vector.load %arg8[%c0_122, %c117_123] : memref<8x1280xf32, #tpu.memory_space<vmem>>, vector<8x1024xf32>
    %c72_124 = arith.constant 72 : index
    %c0_125 = arith.constant 0 : index
    %118 = vector.load %arg9[%c72_124, %c0_125] : memref<216x1024xf32, #tpu.memory_space<vmem>>, vector<8x1024xf32>
    tpu.vector_store %arg9[%c72_124, %c0_125], %117 {strides = array<i32>} : memref<216x1024xf32, #tpu.memory_space<vmem>>, vector<8x1024xf32>,
    %c0_126 = arith.constant 0 : index
    %c118_127 = arith.constant 118 : index
    %119 = vector.load %arg8[%c0_126, %c118_127] : memref<8x1280xf32, #tpu.memory_space<vmem>>, vector<8x1024xf32>
    %c80_128 = arith.constant 80 : index
    %c0_129 = arith.constant 0 : index
    %120 = vector.load %arg9[%c80_128, %c0_129] : memref<216x1024xf32, #tpu.memory_space<vmem>>, vector<8x1024xf32>
    tpu.vector_store %arg9[%c80_128, %c0_129], %119 {strides = array<i32>} : memref<216x1024xf32, #tpu.memory_space<vmem>>, vector<8x1024xf32>,
    %c0_130 = arith.constant 0 : index
    %c119_131 = arith.constant 119 : index
    %121 = vector.load %arg8[%c0_130, %c119_131] : memref<8x1280xf32, #tpu.memory_space<vmem>>, vector<8x1024xf32>
    %c88_132 = arith.constant 88 : index
    %c0_133 = arith.constant 0 : index
    %122 = vector.load %arg9[%c88_132, %c0_133] : memref<216x1024xf32, #tpu.memory_space<vmem>>, vector<8x1024xf32>
    tpu.vector_store %arg9[%c88_132, %c0_133], %121 {strides = array<i32>} : memref<216x1024xf32, #tpu.memory_space<vmem>>, vector<8x1024xf32>,
    %c0_134 = arith.constant 0 : index
    %c127_135 = arith.constant 127 : index
    %123 = vector.load %arg8[%c0_134, %c127_135] : memref<8x1280xf32, #tpu.memory_space<vmem>>, vector<8x1024xf32>
    %c96_136 = arith.constant 96 : index
    %c0_137 = arith.constant 0 : index
    %124 = vector.load %arg9[%c96_136, %c0_137] : memref<216x1024xf32, #tpu.memory_space<vmem>>, vector<8x1024xf32>
    tpu.vector_store %arg9[%c96_136, %c0_137], %123 {strides = array<i32>} : memref<216x1024xf32, #tpu.memory_space<vmem>>, vector<8x1024xf32>,
    %c0_138 = arith.constant 0 : index
    %c128_139 = arith.constant 128 : index
    %125 = vector.load %arg8[%c0_138, %c128_139] : memref<8x1280xf32, #tpu.memory_space<vmem>>, vector<8x1024xf32>
    %c104_140 = arith.constant 104 : index
    %c0_141 = arith.constant 0 : index
    %126 = vector.load %arg9[%c104_140, %c0_141] : memref<216x1024xf32, #tpu.memory_space<vmem>>, vector<8x1024xf32>
    tpu.vector_store %arg9[%c104_140, %c0_141], %125 {strides = array<i32>} : memref<216x1024xf32, #tpu.memory_space<vmem>>, vector<8x1024xf32>,
    %c0_142 = arith.constant 0 : index
    %c129_143 = arith.constant 129 : index
    %127 = vector.load %arg8[%c0_142, %c129_143] : memref<8x1280xf32, #tpu.memory_space<vmem>>, vector<8x1024xf32>
    %c112_144 = arith.constant 112 : index
    %c0_145 = arith.constant 0 : index
    %128 = vector.load %arg9[%c112_144, %c0_145] : memref<216x1024xf32, #tpu.memory_space<vmem>>, vector<8x1024xf32>
    tpu.vector_store %arg9[%c112_144, %c0_145], %127 {strides = array<i32>} : memref<216x1024xf32, #tpu.memory_space<vmem>>, vector<8x1024xf32>,
    %c0_146 = arith.constant 0 : index
    %c137_147 = arith.constant 137 : index
    %129 = vector.load %arg8[%c0_146, %c137_147] : memref<8x1280xf32, #tpu.memory_space<vmem>>, vector<8x1024xf32>
    %c120_148 = arith.constant 120 : index
    %c0_149 = arith.constant 0 : index
    %130 = vector.load %arg9[%c120_148, %c0_149] : memref<216x1024xf32, #tpu.memory_space<vmem>>, vector<8x1024xf32>
    tpu.vector_store %arg9[%c120_148, %c0_149], %129 {strides = array<i32>} : memref<216x1024xf32, #tpu.memory_space<vmem>>, vector<8x1024xf32>,
    %c0_150 = arith.constant 0 : index
    %c138_151 = arith.constant 138 : index
    %131 = vector.load %arg8[%c0_150, %c138_151] : memref<8x1280xf32, #tpu.memory_space<vmem>>, vector<8x1024xf32>
    %c128_152 = arith.constant 128 : index
    %c0_153 = arith.constant 0 : index
    %132 = vector.load %arg9[%c128_152, %c0_153] : memref<216x1024xf32, #tpu.memory_space<vmem>>, vector<8x1024xf32>
    tpu.vector_store %arg9[%c128_152, %c0_153], %131 {strides = array<i32>} : memref<216x1024xf32, #tpu.memory_space<vmem>>, vector<8x1024xf32>,
    %c0_154 = arith.constant 0 : index
    %c139_155 = arith.constant 139 : index
    %133 = vector.load %arg8[%c0_154, %c139_155] : memref<8x1280xf32, #tpu.memory_space<vmem>>, vector<8x1024xf32>
    %c136_156 = arith.constant 136 : index
    %c0_157 = arith.constant 0 : index
    %134 = vector.load %arg9[%c136_156, %c0_157] : memref<216x1024xf32, #tpu.memory_space<vmem>>, vector<8x1024xf32>
    tpu.vector_store %arg9[%c136_156, %c0_157], %133 {strides = array<i32>} : memref<216x1024xf32, #tpu.memory_space<vmem>>, vector<8x1024xf32>,
    %c0_158 = arith.constant 0 : index
    %c217_159 = arith.constant 217 : index
    %135 = vector.load %arg8[%c0_158, %c217_159] : memref<8x1280xf32, #tpu.memory_space<vmem>>, vector<8x1024xf32>
    %c144_160 = arith.constant 144 : index
    %c0_161 = arith.constant 0 : index
    %136 = vector.load %arg9[%c144_160, %c0_161] : memref<216x1024xf32, #tpu.memory_space<vmem>>, vector<8x1024xf32>
    tpu.vector_store %arg9[%c144_160, %c0_161], %135 {strides = array<i32>} : memref<216x1024xf32, #tpu.memory_space<vmem>>, vector<8x1024xf32>,
    %c0_162 = arith.constant 0 : index
    %c218_163 = arith.constant 218 : index
    %137 = vector.load %arg8[%c0_162, %c218_163] : memref<8x1280xf32, #tpu.memory_space<vmem>>, vector<8x1024xf32>
    %c152_164 = arith.constant 152 : index
    %c0_165 = arith.constant 0 : index
    %138 = vector.load %arg9[%c152_164, %c0_165] : memref<216x1024xf32, #tpu.memory_space<vmem>>, vector<8x1024xf32>
    tpu.vector_store %arg9[%c152_164, %c0_165], %137 {strides = array<i32>} : memref<216x1024xf32, #tpu.memory_space<vmem>>, vector<8x1024xf32>,
    %c0_166 = arith.constant 0 : index
    %c219_167 = arith.constant 219 : index
    %139 = vector.load %arg8[%c0_166, %c219_167] : memref<8x1280xf32, #tpu.memory_space<vmem>>, vector<8x1024xf32>
    %c160_168 = arith.constant 160 : index
    %c0_169 = arith.constant 0 : index
    %140 = vector.load %arg9[%c160_168, %c0_169] : memref<216x1024xf32, #tpu.memory_space<vmem>>, vector<8x1024xf32>
    tpu.vector_store %arg9[%c160_168, %c0_169], %139 {strides = array<i32>} : memref<216x1024xf32, #tpu.memory_space<vmem>>, vector<8x1024xf32>,
    %c0_170 = arith.constant 0 : index
    %c227_171 = arith.constant 227 : index
    %141 = vector.load %arg8[%c0_170, %c227_171] : memref<8x1280xf32, #tpu.memory_space<vmem>>, vector<8x1024xf32>
    %c168_172 = arith.constant 168 : index
    %c0_173 = arith.constant 0 : index
    %142 = vector.load %arg9[%c168_172, %c0_173] : memref<216x1024xf32, #tpu.memory_space<vmem>>, vector<8x1024xf32>
    tpu.vector_store %arg9[%c168_172, %c0_173], %141 {strides = array<i32>} : memref<216x1024xf32, #tpu.memory_space<vmem>>, vector<8x1024xf32>,
    %c0_174 = arith.constant 0 : index
    %c228_175 = arith.constant 228 : index
    %143 = vector.load %arg8[%c0_174, %c228_175] : memref<8x1280xf32, #tpu.memory_space<vmem>>, vector<8x1024xf32>
    %c176_176 = arith.constant 176 : index
    %c0_177 = arith.constant 0 : index
    %144 = vector.load %arg9[%c176_176, %c0_177] : memref<216x1024xf32, #tpu.memory_space<vmem>>, vector<8x1024xf32>
    tpu.vector_store %arg9[%c176_176, %c0_177], %143 {strides = array<i32>} : memref<216x1024xf32, #tpu.memory_space<vmem>>, vector<8x1024xf32>,
    %c0_178 = arith.constant 0 : index
    %c229_179 = arith.constant 229 : index
    %145 = vector.load %arg8[%c0_178, %c229_179] : memref<8x1280xf32, #tpu.memory_space<vmem>>, vector<8x1024xf32>
    %c184_180 = arith.constant 184 : index
    %c0_181 = arith.constant 0 : index
    %146 = vector.load %arg9[%c184_180, %c0_181] : memref<216x1024xf32, #tpu.memory_space<vmem>>, vector<8x1024xf32>
    tpu.vector_store %arg9[%c184_180, %c0_181], %145 {strides = array<i32>} : memref<216x1024xf32, #tpu.memory_space<vmem>>, vector<8x1024xf32>,
    %c0_182 = arith.constant 0 : index
    %c237_183 = arith.constant 237 : index
    %147 = vector.load %arg8[%c0_182, %c237_183] : memref<8x1280xf32, #tpu.memory_space<vmem>>, vector<8x1024xf32>
    %c192_184 = arith.constant 192 : index
    %c0_185 = arith.constant 0 : index
    %148 = vector.load %arg9[%c192_184, %c0_185] : memref<216x1024xf32, #tpu.memory_space<vmem>>, vector<8x1024xf32>
    tpu.vector_store %arg9[%c192_184, %c0_185], %147 {strides = array<i32>} : memref<216x1024xf32, #tpu.memory_space<vmem>>, vector<8x1024xf32>,
    %c0_186 = arith.constant 0 : index
    %c238_187 = arith.constant 238 : index
    %149 = vector.load %arg8[%c0_186, %c238_187] : memref<8x1280xf32, #tpu.memory_space<vmem>>, vector<8x1024xf32>
    %c200_188 = arith.constant 200 : index
    %c0_189 = arith.constant 0 : index
    %150 = vector.load %arg9[%c200_188, %c0_189] : memref<216x1024xf32, #tpu.memory_space<vmem>>, vector<8x1024xf32>
    tpu.vector_store %arg9[%c200_188, %c0_189], %149 {strides = array<i32>} : memref<216x1024xf32, #tpu.memory_space<vmem>>, vector<8x1024xf32>,
    %c0_190 = arith.constant 0 : index
    %c239_191 = arith.constant 239 : index
    %151 = vector.load %arg8[%c0_190, %c239_191] : memref<8x1280xf32, #tpu.memory_space<vmem>>, vector<8x1024xf32>
    %c208_192 = arith.constant 208 : index
    %c0_193 = arith.constant 0 : index
    %152 = vector.load %arg9[%c208_192, %c0_193] : memref<216x1024xf32, #tpu.memory_space<vmem>>, vector<8x1024xf32>
    tpu.vector_store %arg9[%c208_192, %c0_193], %151 {strides = array<i32>} : memref<216x1024xf32, #tpu.memory_space<vmem>>, vector<8x1024xf32>,
    %c0_194 = arith.constant 0 : index
    %c0_195 = arith.constant 0 : index
    %153 = vector.load %arg4[%c0_194, %c0_195] : memref<8x216xf32, #tpu.memory_space<vmem>>, vector<8x216xf32>
    %c0_196 = arith.constant 0 : index
    %c0_197 = arith.constant 0 : index
    %154 = vector.load %arg9[%c0_196, %c0_197] : memref<216x1024xf32, #tpu.memory_space<vmem>>, vector<216x1024xf32>
    %cst_198 = arith.constant dense<0.000000e+00> : vector<8x1024xf32>
    %155 = tpu.matmul %153, %154, %cst_198 {dimension_numbers = #tpu.dot_dimension_numbers<[1], [0], [0], [1], [0, 0, 1, 1], [], []>} : vector<8x216xf32>, vector<216x1024xf32>, vector<8x1024xf32> -> vector<8x1024xf32>
    %156 = vector.broadcast %11 : vector<1x1024xf32> to vector<8x1024xf32>
    %157 = arith.mulf %155, %156 : vector<8x1024xf32>
    %cst_199 = arith.constant dense<0.000000e+00> : vector<8xf32>
    %158 = vector.multi_reduction <add>, %157, %cst_199 [1] : vector<8x1024xf32> to vector<8xf32>
    %159 = vector.shape_cast %158 : vector<8xf32> to vector<8x1xf32>
    %cst_200 = arith.constant 0.001953125 : f32
    %160 = vector.broadcast %cst_200 : f32 to vector<8x1xf32>
    %161 = arith.mulf %159, %160 : vector<8x1xf32>
    %162 = vector.broadcast %161 : vector<8x1xf32> to vector<8x1024xf32>
    %163 = arith.subf %155, %162 : vector<8x1024xf32>
    %164 = vector.broadcast %11 : vector<1x1024xf32> to vector<8x1024xf32>
    %165 = arith.mulf %163, %164 : vector<8x1024xf32>
    %166 = arith.mulf %165, %165 : vector<8x1024xf32>
    %cst_201 = arith.constant dense<0.000000e+00> : vector<8xf32>
    %167 = vector.multi_reduction <add>, %166, %cst_201 [1] : vector<8x1024xf32> to vector<8xf32>
    %168 = vector.shape_cast %167 : vector<8xf32> to vector<8x1xf32>
    %cst_202 = arith.constant 0.001953125 : f32
    %169 = vector.broadcast %cst_202 : f32 to vector<8x1xf32>
    %170 = arith.mulf %168, %169 : vector<8x1xf32>
    %171 = vector.broadcast %161 : vector<8x1xf32> to vector<8x1024xf32>
    %172 = arith.subf %155, %171 : vector<8x1024xf32>
    %cst_203 = arith.constant 9.99999974E-6 : f32
    %173 = vector.broadcast %cst_203 : f32 to vector<8x1xf32>
    %174 = arith.addf %170, %173 : vector<8x1xf32>
    %175 = math.rsqrt %174 : vector<8x1xf32>
    %176 = vector.broadcast %175 : vector<8x1xf32> to vector<8x1024xf32>
    %177 = arith.mulf %172, %176 : vector<8x1024xf32>
    %cst_204 = arith.constant 0.000000e+00 : f32
    %178 = vector.broadcast %cst_204 : f32 to vector<8x1024xf32>
    %179 = arith.cmpf oge, %177, %178 : vector<8x1024xf32>
    %cst_205 = arith.constant 0.00999999977 : f32
    %180 = vector.broadcast %cst_205 : f32 to vector<8x1024xf32>
    %181 = arith.mulf %180, %177 : vector<8x1024xf32>
    %182 = arith.select %179, %177, %181 : vector<8x1024xi1>, vector<8x1024xf32>
    %183 = vector.broadcast %11 : vector<1x1024xf32> to vector<8x1024xf32>
    %184 = arith.mulf %182, %183 : vector<8x1024xf32>
    %c0_206 = arith.constant 0 : index
    %c0_207 = arith.constant 0 : index
    %c0_208 = arith.constant 0 : index
    %185 = vector.load %arg6[%c0_206, %c0_207, %c0_208] : memref<1x8x1024xf32, #tpu.memory_space<vmem>>, vector<1x8x1024xf32>
    %186 = vector.shape_cast %185 : vector<1x8x1024xf32> to vector<8x1024xf32>
    %187 = vector.shape_cast %184 : vector<8x1024xf32> to vector<1x8x1024xf32>
    tpu.vector_store %arg6[%c0_206, %c0_207, %c0_208], %187 {strides = array<i32>} : memref<1x8x1024xf32, #tpu.memory_space<vmem>>, vector<1x8x1024xf32>,
    return
  }
  func.func @transform_0(%arg0: i32) -> (i32, i32, i32) {
    %c0_i32 = arith.constant 0 : i32
    %c0_i32_0 = arith.constant 0 : i32
    %c0_i32_1 = arith.constant 0 : i32
    return %arg0, %c0_i32, %c0_i32_0 : i32, i32, i32
  }
  func.func @transform_1(%arg0: i32) -> (i32, i32, i32) {
    %c0_i32 = arith.constant 0 : i32
    %c0_i32_0 = arith.constant 0 : i32
    %c0_i32_1 = arith.constant 0 : i32
    return %arg0, %c0_i32, %c0_i32_0 : i32, i32, i32
  }
  func.func @transform_2(%arg0: i32) -> (i32, i32) {
    %c0_i32 = arith.constant 0 : i32
    %c0_i32_0 = arith.constant 0 : i32
    %c0_i32_1 = arith.constant 0 : i32
    return %c0_i32, %c0_i32_0 : i32, i32
  }
  func.func @transform_3(%arg0: i32) -> (i32, i32) {
    %c0_i32 = arith.constant 0 : i32
    %c0_i32_0 = arith.constant 0 : i32
    %c0_i32_1 = arith.constant 0 : i32
    return %c0_i32, %c0_i32_0 : i32, i32
  }
  func.func @transform_4(%arg0: i32) -> (i32, i32) {
    %c0_i32 = arith.constant 0 : i32
    %c0_i32_0 = arith.constant 0 : i32
    %c0_i32_1 = arith.constant 0 : i32
    return %c0_i32, %c0_i32_0 : i32, i32
  }
  func.func @transform_5(%arg0: i32) -> (i32, i32, i32) {
    %c0_i32 = arith.constant 0 : i32
    %c0_i32_0 = arith.constant 0 : i32
    %c0_i32_1 = arith.constant 0 : i32
    return %arg0, %c0_i32, %c0_i32_0 : i32, i32, i32
  }
}

</mosaic_0001>

<bundles_post_ra>
// kernel: tile.8
= control target key start
LH: loop header
LB: loop body
LE: loop exit
PB: predicated region body
PF: predicated region fallthrough
CT: control target
= control target key end

     0   :  { %s22_s0 = inlined_call_operand.vmem [shape: f32[4], index: 0, kind: input, shape index: {}]   ;;  %s23_s1 = inlined_call_operand.vmem [shape: f32[8,4], index: 1, kind: output, shape index: {}]  }
   0x1   :  { %v4_v0 = vld [vmem:[%s22_s0] ss:$0 sm:$0xff] }
   0x2   :  { %5 = vst [vmem:[%s23_s1] sm:$0xff] %v4_v0 }

// kernel: tile.0
= control target key start
LH: loop header
LB: loop body
LE: loop exit
PB: predicated region body
PF: predicated region fallthrough
CT: control target
= control target key end

     0   :  { %vm3_vm0 = vcmask 7168   ;;  %s30_s8 = smov 125   ;;  %s31_s11 = smov 126   ;;  %s57_s0 = inlined_call_operand.vmem [shape: f32[8,4], index: 0, kind: input, shape index: {}]   ;;  %s58_s1 = inlined_call_operand.vmem [shape: f32[32,1], index: 1, kind: output, shape index: {}]  }
   0x1   :  { %v5_v0 = vld [vmem:[%s57_s0] sm:$0xff]   ;;  %s29_s0 = smov 127  }
   0x2   :  { %6 = vrot.lane.b32.xlu0 %v5_v0, %s29_s0  ;;  %18 = vrot.lane.b32.xlu1 %v5_v0, %s30_s8  ;;  %4 = vst.msk [vmem:[%s58_s1] ss:$4 sm:$0xff] %vm3_vm0, %v5_v0  }
   0x6   :  { %12 = vrot.lane.b32.xlu0 %v5_v0, %s31_s11 }
  0x74   :  { %v7_v1 = vpop.permute.xlu0 %6   ;;  %v19_v2 = vpop.permute.xlu1 %18  }
  0x75   :  { %23 = vst.msk [vmem:[%s58_s1 + $0x1] ss:$4 sm:$0xff] %vm3_vm0, %v7_v1   ;;  %25 = vst.msk [vmem:[%s58_s1 + $0x3] ss:$4 sm:$0xff] %vm3_vm0, %v19_v2  }
  0x78   :  { %v13_v3 = vpop.permute.xlu0 %12  }
  0x79   :  { %24 = vst.msk [vmem:[%s58_s1 + $0x2] ss:$4 sm:$0xff] %vm3_vm0, %v13_v3  }

// kernel: up_forward_pallas.2
= control target key start
LH: loop header
LB: loop body
LE: loop exit
PB: predicated region body
PF: predicated region fallthrough
CT: control target
= control target key end

     0   :  { %s648_s12 = smov 0   ;;  %s713_s0 = inlined_call_operand.vmem [shape: f32[2,8,384], index: 0, kind: input, shape index: {}]   ;;  %s714_s1 = inlined_call_operand.vmem [shape: f32[32,64], index: 1, kind: input, shape index: {}]   ;;  %s715_s2 = inlined_call_operand.vmem [shape: f32[32,1], index: 2, kind: input, shape index: {}]   ;;  %s716_s3 = inlined_call_operand.vmem [shape: f32[2,32,256], index: 3, kind: output, shape index: {}]  }
   0x1 LB: > { %s517_s13 = sadd.s32 4294967295, %s617_s12   ;;  %p521_p0 = scmp.ge.s32.totalorder %s617_s12, 1  ;;  %s617_s12 = sphi %s648_s12, %s13_s12  }
   0x2   : > { %p137_p1 = scmp.lt.s32.totalorder %s617_s12, 3 }
   0x4   : > { %p138_p2 = pnand %p521_p0, %p137_p1 }
   0x5   : > { %p161_p3 = scmp.lt.s32.totalorder (!%p138_p2), %s517_s13, 1  ;;  %s619_s18 = smov (!%p138_p2), 85   ;;  %v625_v4 = vmov (!%p138_p2), 0.0   ;;  %v329_v5 = vld [vmem:[%s715_s2 + $0x8] sm:$0xff] (!%p138_p2)  ;;  %v627_v6 = vmov (!%p138_p2), 0   ;;  %v328_v7 = vld [vmem:[%s715_s2] sm:$0xff] (!%p138_p2) }
   0x6   : > { %141 = sbr.rel (%p138_p2) target bundleno = 388 (0x184), region = 32  ;;  %s620_s19 = smov (!%p138_p2), 86   ;;  %429 = vmatprep.mubr.f32.mxu0 (!%p138_p2), %v625_v4  ;;  %441 = vmatprep.mubr.f32.mxu1 (!%p138_p2), %v625_v4  ;;  %v330_v8 = vld [vmem:[%s715_s2 + $0x10] sm:$0xff] (!%p138_p2)  ;;  %v331_v9 = vld [vmem:[%s715_s2 + $0x18] sm:$0xff] (!%p138_p2)  ;;  %vm183_vm0 = vcmask (!%p138_p2), 695296   ;;  %vm202_vm1 = vcmask (!%p138_p2), 703488  }
   0x7   : > { %s621_s20 = smov (!%p138_p2), 92   ;;  %s622_s21 = smov (!%p138_p2), 91   ;;  %610 = vset.pattern.permute.xlu1 (!%p138_p2), %v627_v6  ;;  %609 = vset.pattern.permute.xlu0 (!%p138_p2), %v627_v6  ;;  %vm240_vm2 = vcmask (!%p138_p2), 752640   ;;  %vm221_vm3 = vcmask (!%p138_p2), 744448   ;;  %vm278_vm4 = vcmask (!%p138_p2), 998400   ;;  %vm259_vm5 = vcmask (!%p138_p2), 990208  }
   0x8   : > { %s623_s22 = smov (!%p138_p2), 122   ;;  %s624_s23 = smov (!%p138_p2), 121   ;;  %vm297_vm6 = vcmask (!%p138_p2), 1039360   ;;  %v308_v60 = vld [vmem:[%s714_s1] sm:$0xff] (!%p138_p2)  ;;  %vm352_vm7 = vcmask (!%p138_p2), 523264   ;;  %v310_v61 = vld [vmem:[%s714_s1 + $0x10] sm:$0xff] (!%p138_p2) }
   0x9   : > { %s626_s24 = smov (!%p138_p2), 127   ;;  %v309_v62 = vld [vmem:[%s714_s1 + $0x8] sm:$0xff] (!%p138_p2)  ;;  %v311_v63 = vld [vmem:[%s714_s1 + $0x18] sm:$0xff] (!%p138_p2) }
   0xd   : > { %s718_s13 = smov (!%p161_p3, %s517_s13), 1 }
   0xe   : > { %s556_s14 = smul.u32 24, %s718_s13  ;;  %s531_s16 = sshll.u32 %s718_s13, 6 }
  0x10   : > { %s165_s17 = scalar_lea.vmem %s713_s0, %s556_s14 }
  0x11   : > { %v662_v0 = vld [vmem:[%s165_s17 + $0x8] sm:$0xff]  ;;  %v173_v1 = vld [vmem:[%s165_s17 + $0x10] sm:$0xff]  ;;  %v664_v2 = vld [vmem:[%s165_s17] sm:$0xff] }
  0x12   : > { %v574_v3 = vpack.i.bf16 %v173_v1, %v662_v0  ;;  %177 = vrot.lane.b32.xlu1 %v664_v2, %s619_s18 }
  0x14   : > { %575 = vrot.lane.b32.xlu0 %v574_v3, %s619_s18 }
  0x16   : > { %196 = vrot.lane.b32.xlu1 %v664_v2, %s620_s19 }
  0x18   : > { %580 = vrot.lane.b32.xlu0 %v574_v3, %s620_s19  ;;  %s170_s19 = scalar_lea.vmem %s716_s3, %s531_s16 }
  0x1a   : > { %590 = vrot.lane.b32.xlu1 %v574_v3, %s621_s20 }
  0x1c   : > { %585 = vrot.lane.b32.xlu0 %v574_v3, %s622_s21 }
  0x1e   : > { %234 = vrot.lane.b32.xlu1 %v664_v2, %s621_s20 }
  0x20   : > { %215 = vrot.lane.b32.xlu0 %v664_v2, %s622_s21 }
  0x22   : > { %600 = vrot.lane.b32.xlu1 %v574_v3, %s623_s22 }
  0x24   : > { %595 = vrot.lane.b32.xlu0 %v574_v3, %s624_s23 }
  0x26   : > { %272 = vrot.lane.b32.xlu1 %v664_v2, %s623_s22 }
  0x28   : > { %253 = vrot.lane.b32.xlu0 %v664_v2, %s624_s23 }
  0x2a   : > { %291 = vrot.lane.b32.xlu1 %v664_v2, %s626_s24 }
  0x2c   : > { %605 = vrot.lane.b32.xlu0 %v574_v3, %s626_s24 }
  0x2e   : > { %339 = vperm.xlu1 %610, %v329_v5  }
  0x30   : > { %334 = vperm.xlu0 %609, %v328_v7  }
  0x32   : > { %344 = vperm.xlu1 %610, %v330_v8  }
  0x34   : > { %349 = vperm.xlu0 %609, %v331_v9  }
  0x84   : > { %v178_v10 = vpop.permute.xlu1 %177 }
  0x86   : > { %v576_v11 = vpop.permute.xlu0 %575 }
  0x87   : > { %v578_v12 = vunpack.i.h.bf16 %v576_v11  ;;  %v577_v13 = vunpack.i.l.bf16 %v576_v11 }
  0x88   : > { %v197_v14 = vpop.permute.xlu1 %196 }
  0x89   : > { %v184_v18 = vsel %vm183_vm0, %v178_v10, %v577_v13  ;;  %v185_v20 = vsel %vm183_vm0, %v577_v13, %v578_v12 }
  0x8a   : > { %v581_v15 = vpop.permute.xlu0 %580 }
  0x8b   : > { %v583_v16 = vunpack.i.h.bf16 %v581_v15  ;;  %v582_v17 = vunpack.i.l.bf16 %v581_v15 }
  0x8c   : > { %v591_v19 = vpop.permute.xlu1 %590 }
  0x8d   : > { %v203_v21 = vsel %vm202_vm1, %v197_v14, %v582_v17  ;;  %v593_v22 = vunpack.i.h.bf16 %v591_v19  ;;  %v592_v23 = vunpack.i.l.bf16 %v591_v19  ;;  %v204_v24 = vsel %vm202_vm1, %v582_v17, %v583_v16 }
  0x8e   : > { %v586_v25 = vpop.permute.xlu0 %585  ;;  %v532_v26 = vpack.c.bf16 %v204_v24, %v185_v20  ;;  %v534_v27 = vpack.c.bf16 %v203_v21, %v184_v18 }
  0x8f   : > { %v588_v28 = vunpack.i.h.bf16 %v586_v25  ;;  %v587_v29 = vunpack.i.l.bf16 %v586_v25  ;;  %v242_v30 = vsel %vm240_vm2, %v592_v23, %v593_v22 }
  0x90   : > { %533 = vmatprep.subr.bf16.mxu0 %v532_v26  ;;  %548 = vmatprep.subr.bf16.mxu1 %v532_v26  ;;  %v235_v31 = vpop.permute.xlu1 %234 }
  0x91   : > { %535 = vmatpush1.bf16.msra.mxu0 %v534_v27  ;;  %552 = vmatpush1.bf16.msra.mxu1 %v534_v27  ;;  %v241_v32 = vsel %vm240_vm2, %v235_v31, %v592_v23  ;;  %v223_v33 = vsel %vm221_vm3, %v587_v29, %v588_v28 }
  0x92   : > { %v216_v34 = vpop.permute.xlu0 %215  ;;  %v536_v35 = vpack.c.bf16 %v242_v30, %v223_v33 }
  0x93   : > { %v222_v36 = vsel %vm221_vm3, %v216_v34, %v587_v29 }
  0x94   : > { %v538_v37 = vpack.c.bf16 %v241_v32, %v222_v36  ;;  %537 = vmatprep.subr.bf16.mxu0 %v536_v35  ;;  %549 = vmatprep.subr.bf16.mxu1 %v536_v35  ;;  %v601_v38 = vpop.permute.xlu1 %600 }
  0x95   : > { %v603_v39 = vunpack.i.h.bf16 %v601_v38  ;;  %v602_v40 = vunpack.i.l.bf16 %v601_v38 }
  0x96   : > { %v596_v41 = vpop.permute.xlu0 %595  ;;  %539 = vmatpush1.bf16.msra.mxu0 %v538_v37  ;;  %553 = vmatpush1.bf16.msra.mxu1 %v538_v37 }
  0x97   : > { %v598_v42 = vunpack.i.h.bf16 %v596_v41  ;;  %v597_v43 = vunpack.i.l.bf16 %v596_v41  ;;  %v280_v44 = vsel %vm278_vm4, %v602_v40, %v603_v39 }
  0x98   : > { %v273_v45 = vpop.permute.xlu1 %272 }
  0x99   : > { %v279_v46 = vsel %vm278_vm4, %v273_v45, %v602_v40  ;;  %v261_v47 = vsel %vm259_vm5, %v597_v43, %v598_v42 }
  0x9a   : > { %v254_v48 = vpop.permute.xlu0 %253  ;;  %v540_v49 = vpack.c.bf16 %v280_v44, %v261_v47 }
  0x9b   : > { %v260_v50 = vsel %vm259_vm5, %v254_v48, %v597_v43 }
  0x9c   : > { %v542_v51 = vpack.c.bf16 %v279_v46, %v260_v50  ;;  %541 = vmatprep.subr.bf16.mxu0 %v540_v49  ;;  %550 = vmatprep.subr.bf16.mxu1 %v540_v49  ;;  %v292_v53 = vpop.permute.xlu1 %291 }
  0x9e   : > { %v606_v52 = vpop.permute.xlu0 %605  ;;  %543 = vmatpush1.bf16.msra.mxu0 %v542_v51  ;;  %554 = vmatpush1.bf16.msra.mxu1 %v542_v51 }
  0x9f   : > { %v608_v54 = vunpack.i.h.bf16 %v606_v52  ;;  %v607_v55 = vunpack.i.l.bf16 %v606_v52 }
  0xa1   : > { %v298_v56 = vsel %vm297_vm6, %v292_v53, %v607_v55  ;;  %v299_v57 = vsel %vm297_vm6, %v607_v55, %v608_v54 }
  0xa2   : > { %v546_v58 = vpack.c.bf16 %v664_v2, %v298_v56  ;;  %v544_v59 = vpack.c.bf16 %v662_v0, %v299_v57 }
  0xa4   : > { %545 = vmatprep.subr.bf16.mxu0 %v544_v59  ;;  %551 = vmatprep.subr.bf16.mxu1 %v544_v59 }
  0xa5   : > { %547 = vmatpush1.bf16.msra.mxu0 %v546_v58  ;;  %555 = vmatpush1.bf16.msra.mxu1 %v546_v58 }
  0xa8   : > { %525 = vmatmul.mubr.msk.f32.vlgmr.msra.gmra.mrb[0].mxu0 %vm352_vm7, %v308_v60  ;;  %527 = vmatmul.mubr.msk.f32.vlgmr.msra.gmra.mrb[0].mxu1 %vm352_vm7, %v310_v61 }
  0xa9   : > { %435 = vmatprep.mubr.f32.mxu0 %v625_v4  ;;  %447 = vmatprep.mubr.f32.mxu1 %v625_v4 }
  0xac   : > { %526 = vmatmul.mubr.msk.f32.gmra.mrb[2].mxu0 %vm352_vm7, %v309_v62  ;;  %528 = vmatmul.mubr.msk.f32.gmra.mrb[2].mxu1 %vm352_vm7, %v311_v63 }
  0xad   : > { %v340_v0 = vpop.permute.xlu1 %339 }
  0xaf   : > { %v335_v1 = vpop.permute.xlu0 %334 }
  0xb1   : > { %v345_v2 = vpop.permute.xlu1 %344 }
  0xb3   : > { %v350_v11 = vpop.permute.xlu0 %349 }
 0x17b   : > { %v431_v3 = vpop.f32.mrb[0].mxu0  ;;  %v443_v4 = vpop.f32.mrb[0].mxu1 }
 0x17c   : > { %v432_v5 = vadd.f32 %v431_v3, %v335_v1  ;;  %v444_v6 = vadd.f32 %v443_v4, %v345_v2  ;;  %v433_v7 = vpop.f32.mrb[1].mxu0  ;;  %v445_v8 = vpop.f32.mrb[1].mxu1 }
 0x17d   : > { %v434_v9 = vadd.f32 %v433_v7, %v335_v1  ;;  %v446_v10 = vadd.f32 %v445_v8, %v345_v2 }
 0x17e   : > { %454 = vst [vmem:[%s170_s19] sm:$0xff] %v432_v5  ;;  %458 = vst [vmem:[%s170_s19 + $0x20] sm:$0xff] %v444_v6 }
 0x17f   : > { %455 = vst [vmem:[%s170_s19 + $0x8] sm:$0xff] %v434_v9  ;;  %459 = vst [vmem:[%s170_s19 + $0x28] sm:$0xff] %v446_v10  ;;  %v437_v12 = vpop.f32.mrb[2].mxu0  ;;  %v449_v13 = vpop.f32.mrb[2].mxu1 }
 0x180   : > { %v438_v14 = vadd.f32 %v437_v12, %v340_v0  ;;  %v450_v15 = vadd.f32 %v449_v13, %v350_v11  ;;  %v439_v16 = vpop.f32.mrb[3].mxu0  ;;  %v451_v17 = vpop.f32.mrb[3].mxu1 }
 0x181   : > { %v440_v18 = vadd.f32 %v439_v16, %v340_v0  ;;  %v452_v19 = vadd.f32 %v451_v17, %v350_v11 }
 0x182   : > { %456 = vst [vmem:[%s170_s19 + $0x10] sm:$0xff] %v438_v14  ;;  %460 = vst [vmem:[%s170_s19 + $0x30] sm:$0xff] %v450_v15 }
 0x183   : > { %457 = vst [vmem:[%s170_s19 + $0x18] sm:$0xff] %v440_v18  ;;  %461 = vst [vmem:[%s170_s19 + $0x38] sm:$0xff] %v452_v19 }
 0x184 PF: > { %s13_s12 = sadd.s32 1, %s617_s12  }
 0x185   : > { %p10_p4 = scmp.ge.s32.totalorder %s13_s12, 4  }
 0x187   :  { %12 = sbr.rel (!%p10_p4) target bundleno = 1 (0x1), region = 62 }

// kernel: up_forward_pallas.3
= control target key start
LH: loop header
LB: loop body
LE: loop exit
PB: predicated region body
PF: predicated region fallthrough
CT: control target
= control target key end

     0   :  { %s6325_s18 = smov 0   ;;  %s8015_s0 = inlined_call_operand.vmem [shape: f32[2,8,1280], index: 0, kind: input, shape index: {}]   ;;  %s8016_s1 = inlined_call_operand.vmem [shape: f32[2,8,1280], index: 1, kind: input, shape index: {}]   ;;  %s8017_s2 = inlined_call_operand.vmem [shape: f32[8,216], index: 2, kind: input, shape index: {}]   ;;  %s8018_s3 = inlined_call_operand.vmem [shape: f32[8,216], index: 3, kind: input, shape index: {}]   ;;  %s8019_s4 = inlined_call_operand.vmem [shape: f32[1,1024], index: 4, kind: input, shape index: {}]   ;;  %s8020_s5 = inlined_call_operand.vmem [shape: f32[2,8,1024], index: 5, kind: output, shape index: {}]  }
   0x1 LB: > { %s4783_s19 = sadd.s32 4294967295, %s6266_s18   ;;  %p4787_p0 = scmp.ge.s32.totalorder %s6266_s18, 1  ;;  %s6266_s18 = sphi %s6325_s18, %s15_s18  }
   0x2   : > { %p197_p1 = scmp.lt.s32.totalorder %s6266_s18, 3 }
   0x4   : > { %p198_p2 = pnand %p4787_p0, %p197_p1 }
   0x6   : > { %201 = sbr.rel (%p198_p2) target bundleno = 1883 (0x75b), region = 40 }
   0xd   : > { %p230_p3 = scmp.lt.s32.totalorder %s4783_s19, 1  ;;  %v8067_v12 = vmov 0.0   ;;  %s6269_s27 = smov 111   ;;  %vm379_vm0 = vcmask 900096   ;;  %vm318_vm1 = vcmask 908288   ;;  %vm440_vm2 = vcmask 891904  }
   0xe   : > { %s6270_s28 = smov 110   ;;  %s6271_s29 = smov 101   ;;  %vm501_vm3 = vcmask 826368   ;;  %vm562_vm4 = vcmask 818176   ;;  %vm623_vm5 = vcmask 809984   ;;  %vm8075_vm6 = vcmask 719872  }
   0xf   : > { %s8384_s19 = smov (!%p230_p3, %s4783_s19), 1  ;;  %s6272_s30 = smov 109   ;;  %vm8074_vm7 = vcmask 744448   ;;  %vm8072_vm8 = vcmask 736256   ;;  %vm8071_vm9 = vcmask 728064   ;;  %vm8070_vm10 = vcmask 89088  }
  0x10   : > { %s5219_s20 = smul.u32 80, %s8384_s19  ;;  %s6273_s6 = smov 99   ;;  %vm8036_vm11 = vcmask 80896   ;;  %vm8073_vm12 = vcmask 72704   ;;  %vm8034_vm13 = vcmask 7168   ;;  %vm8042_vm14 = vcmask 1039360  }
  0x11   : > { %s6274_s7 = smov 100   ;;  %s6275_s8 = smov 90   ;;  %vm8044_vm15 = vcmask 973824  }
  0x12   : > { %s6339_s23 = scalar_lea.vmem %s8015_s0, %s5219_s20  ;;  %s6344_s26 = scalar_lea.vmem %s8016_s1, %s5219_s20 }
  0x13   : > { %v251_v0 = vld [vmem:[%s6339_s23 + $0x18] sm:$0xff]  ;;  %v249_v2 = vld [vmem:[%s6339_s23 + $0x8] sm:$0xff]  ;;  %v250_v4 = vld [vmem:[%s6339_s23 + $0x10] sm:$0xff]  ;;  %s6276_s9 = smov 91   ;;  %s6277_s10 = smov 11  }
  0x14   : > { %v259_v1 = vld [vmem:[%s6344_s26 + $0x18] sm:$0xff]  ;;  %v257_v5 = vld [vmem:[%s6344_s26 + $0x8] sm:$0xff]  ;;  %v258_v6 = vld [vmem:[%s6344_s26 + $0x10] sm:$0xff]  ;;  %s6278_s11 = smov 89   ;;  %s6279_s12 = smov 9  }
  0x15   : > { %v6349_v3 = vadd.f32 %v259_v1, %v251_v0  ;;  %v6354_v7 = vadd.f32 %v257_v5, %v249_v2  ;;  %v6356_v8 = vadd.f32 %v258_v6, %v250_v4  ;;  %v252_v9 = vld [vmem:[%s6339_s23 + $0x20] sm:$0xff]  ;;  %v253_v10 = vld [vmem:[%s6339_s23 + $0x28] sm:$0xff]  ;;  %v254_v19 = vld [vmem:[%s6339_s23 + $0x30] sm:$0xff]  ;;  %s6280_s13 = smov 10   ;;  %s8049_s14 = smov 1  }
  0x16   : > { %v260_v11 = vld [vmem:[%s6344_s26 + $0x20] sm:$0xff]  ;;  %v261_v14 = vld [vmem:[%s6344_s26 + $0x28] sm:$0xff]  ;;  %v262_v20 = vld [vmem:[%s6344_s26 + $0x30] sm:$0xff]  ;;  %s8076_s15 = smov 127   ;;  %s8079_s16 = smov 119  }
  0x17   : > { %v6363_v13 = vpack.i.bf16 %v6349_v3, %v8067_v12  ;;  %v6368_v15 = vpack.i.bf16 %v6356_v8, %v6354_v7  ;;  %v6372_v16 = vadd.f32 %v260_v11, %v252_v9  ;;  %v6374_v17 = vadd.f32 %v261_v14, %v253_v10  ;;  %v255_v22 = vld [vmem:[%s6339_s23 + $0x38] sm:$0xff]  ;;  %v256_v25 = vld [vmem:[%s6339_s23 + $0x40] sm:$0xff]  ;;  %s8077_s17 = smov 118   ;;  %s8078_s20 = smov 117  }
  0x18   : > { %v6388_v21 = vadd.f32 %v262_v20, %v254_v19  ;;  %v263_v23 = vld [vmem:[%s6344_s26 + $0x38] sm:$0xff]  ;;  %v264_v26 = vld [vmem:[%s6344_s26 + $0x40] sm:$0xff]  ;;  %v6452_v28 = vpack.i.bf16 %v6349_v3, %v6356_v8  ;;  %s8056_s21 = smov 39   ;;  %s8054_s22 = smov 38  }
  0x19   : > { %5266 = vrot.lane.b32.xlu1 %v6363_v13, %s6269_s27  ;;  %5256 = vrot.lane.b32.xlu0 %v6368_v15, %s6269_s27  ;;  %v5280_v18 = vpack.i.bf16 %v6374_v17, %v6372_v16  ;;  %v6400_v24 = vadd.f32 %v263_v23, %v255_v22  ;;  %v6415_v27 = vadd.f32 %v264_v26, %v256_v25  ;;  %s8025_s23 = smov 37   ;;  %s8027_s24 = smov 29  }
  0x1a   : > { %v6460_v29 = vpack.i.bf16 %v6372_v16, %v6354_v7  ;;  %v5470_v30 = vpack.i.bf16 %v6388_v21, %v6374_v17  ;;  %s8021_s25 = smov 28   ;;  %s8023_s26 = smov 27  }
  0x1d   : > { %5271 = vrot.lane.b32.xlu1 %v6363_v13, %s6270_s28  ;;  %5261 = vrot.lane.b32.xlu0 %v6368_v15, %s6270_s28 }
  0x21   : > { %5281 = vrot.lane.b32.xlu1 %v5280_v18, %s6270_s28  ;;  %5276 = vrot.lane.b32.xlu0 %v5280_v18, %s6269_s27 }
  0x25   : > { %5291 = vrot.lane.b32.xlu1 %v6368_v15, %s6271_s29  ;;  %5286 = vrot.lane.b32.xlu0 %v6368_v15, %s6272_s30 }
  0x29   : > { %5301 = vrot.lane.b32.xlu1 %v6363_v13, %s6271_s29  ;;  %5296 = vrot.lane.b32.xlu0 %v6363_v13, %s6272_s30 }
  0x2d   : > { %5311 = vrot.lane.b32.xlu1 %v5280_v18, %s6271_s29  ;;  %5306 = vrot.lane.b32.xlu0 %v5280_v18, %s6272_s30 }
  0x31   : > { %5321 = vrot.lane.b32.xlu1 %v6368_v15, %s6273_s6  ;;  %5316 = vrot.lane.b32.xlu0 %v6368_v15, %s6274_s7 }
  0x35   : > { %5331 = vrot.lane.b32.xlu1 %v6363_v13, %s6273_s6  ;;  %5326 = vrot.lane.b32.xlu0 %v6363_v13, %s6274_s7 }
  0x39   : > { %5341 = vrot.lane.b32.xlu1 %v5280_v18, %s6273_s6  ;;  %5336 = vrot.lane.b32.xlu0 %v5280_v18, %s6274_s7 }
  0x3d   : > { %5351 = vrot.lane.b32.xlu1 %v6368_v15, %s6275_s8  ;;  %5346 = vrot.lane.b32.xlu0 %v6368_v15, %s6276_s9 }
  0x41   : > { %5361 = vrot.lane.b32.xlu1 %v6363_v13, %s6275_s8  ;;  %5356 = vrot.lane.b32.xlu0 %v6363_v13, %s6276_s9 }
  0x45   : > { %5371 = vrot.lane.b32.xlu1 %v5280_v18, %s6275_s8  ;;  %5366 = vrot.lane.b32.xlu0 %v5280_v18, %s6276_s9 }
  0x49   : > { %5381 = vrot.lane.b32.xlu1 %v6368_v15, %s6277_s10  ;;  %5376 = vrot.lane.b32.xlu0 %v6368_v15, %s6278_s11 }
  0x4d   : > { %5391 = vrot.lane.b32.xlu1 %v6363_v13, %s6277_s10  ;;  %5386 = vrot.lane.b32.xlu0 %v6363_v13, %s6278_s11 }
  0x51   : > { %5401 = vrot.lane.b32.xlu1 %v5280_v18, %s6277_s10  ;;  %5396 = vrot.lane.b32.xlu0 %v5280_v18, %s6278_s11 }
  0x55   : > { %5411 = vrot.lane.b32.xlu1 %v6368_v15, %s6279_s12  ;;  %5406 = vrot.lane.b32.xlu0 %v6368_v15, %s6280_s13 }
  0x59   : > { %5421 = vrot.lane.b32.xlu1 %v6363_v13, %s6279_s12  ;;  %5416 = vrot.lane.b32.xlu0 %v6363_v13, %s6280_s13 }
  0x5d   : > { %5431 = vrot.lane.b32.xlu1 %v5280_v18, %s6279_s12  ;;  %5426 = vrot.lane.b32.xlu0 %v5280_v18, %s6280_s13 }
  0x61   : > { %5441 = vrot.lane.b32.xlu1 %v6363_v13, %s8049_s14  ;;  %5436 = vrot.lane.b32.xlu0 %v6368_v15, %s8049_s14 }
  0x65   : > { %5451 = vrot.lane.b32.xlu1 %v6452_v28, %s8076_s15  ;;  %5446 = vrot.lane.b32.xlu0 %v5280_v18, %s8049_s14 }
  0x69   : > { %5461 = vrot.lane.b32.xlu1 %v6460_v29, %s8076_s15  ;;  %5456 = vrot.lane.b32.xlu0 %v6452_v28, %s8079_s16 }
  0x6d   : > { %5471 = vrot.lane.b32.xlu1 %v5470_v30, %s8076_s15  ;;  %5466 = vrot.lane.b32.xlu0 %v6460_v29, %s8079_s16 }
  0x71   : > { %5481 = vrot.lane.b32.xlu1 %v6452_v28, %s8077_s17  ;;  %5476 = vrot.lane.b32.xlu0 %v5470_v30, %s8079_s16 }
  0x75   : > { %5491 = vrot.lane.b32.xlu1 %v6460_v29, %s8077_s17  ;;  %5486 = vrot.lane.b32.xlu0 %v6452_v28, %s8078_s20 }
  0x79   : > { %5501 = vrot.lane.b32.xlu1 %v5470_v30, %s8077_s17  ;;  %5496 = vrot.lane.b32.xlu0 %v6460_v29, %s8078_s20 }
  0x7d   : > { %5511 = vrot.lane.b32.xlu1 %v6452_v28, %s8056_s21  ;;  %5506 = vrot.lane.b32.xlu0 %v5470_v30, %s8078_s20 }
  0x81   : > { %5521 = vrot.lane.b32.xlu1 %v6460_v29, %s8056_s21  ;;  %5516 = vrot.lane.b32.xlu0 %v6452_v28, %s8054_s22 }
  0x85   : > { %1361 = vrot.lane.b32.xlu1 %v6374_v17, %s8056_s21  ;;  %5526 = vrot.lane.b32.xlu0 %v6460_v29, %s8054_s22 }
  0x89   : > { %5531 = vrot.lane.b32.xlu1 %v6452_v28, %s8025_s23  ;;  %1422 = vrot.lane.b32.xlu0 %v6374_v17, %s8054_s22 }
  0x8b   : > { %v5267_v31 = vpop.permute.xlu1 %5266  ;;  %v5257_v32 = vpop.permute.xlu0 %5256 }
  0x8c   : > { %v5268_v33 = vunpack.i.l.bf16 %v5267_v31  ;;  %v5259_v34 = vunpack.i.h.bf16 %v5257_v32  ;;  %v5258_v35 = vunpack.i.l.bf16 %v5257_v32  ;;  %v5269_v41 = vunpack.i.h.bf16 %v5267_v31 }
  0x8d   : > { %5541 = vrot.lane.b32.xlu1 %v6460_v29, %s8025_s23  ;;  %5536 = vrot.lane.b32.xlu0 %v6452_v28, %s8027_s24 }
  0x8e   : > { %v320_v44 = vsel %vm318_vm1, %v5258_v35, %v5259_v34  ;;  %v319_v46 = vsel %vm318_vm1, %v5268_v33, %v5258_v35  ;;  %v321_v61 = vsel %vm318_vm1, %v5259_v34, %v5269_v41 }
  0x8f   : > { %v5272_v36 = vpop.permute.xlu1 %5271  ;;  %v5262_v38 = vpop.permute.xlu0 %5261 }
  0x90   : > { %v5273_v37 = vunpack.i.l.bf16 %v5272_v36  ;;  %v5264_v39 = vunpack.i.h.bf16 %v5262_v38  ;;  %v5263_v40 = vunpack.i.l.bf16 %v5262_v38  ;;  %v5274_v42 = vunpack.i.h.bf16 %v5272_v36 }
  0x91   : > { %1483 = vrot.lane.b32.xlu1 %v6374_v17, %s8025_s23  ;;  %5546 = vrot.lane.b32.xlu0 %v6460_v29, %s8027_s24  ;;  %s8063_s23 = smov 17  }
  0x92   : > { %v381_v45 = vsel %vm379_vm0, %v5263_v40, %v5264_v39  ;;  %v380_v47 = vsel %vm379_vm0, %v5273_v37, %v5263_v40  ;;  %v382_v57 = vsel %vm379_vm0, %v5264_v39, %v5274_v42 }
  0x93   : > { %v6505_v43 = vpop.permute.xlu1 %5281  ;;  %v6513_v50 = vpop.permute.xlu0 %5276  ;;  %v4803_v51 = vpack.c.bf16 %v381_v45, %v320_v44  ;;  %v4805_v52 = vpack.c.bf16 %v380_v47, %v319_v46  ;;  %v4857_v6 = vpack.c.bf16 %v382_v57, %v321_v61 }
  0x94   : > { %v8059_v48 = vunpack.i.h.bf16 %v6505_v43  ;;  %v5283_v49 = vunpack.i.l.bf16 %v6505_v43  ;;  %v8058_v53 = vunpack.i.h.bf16 %v6513_v50  ;;  %v5278_v54 = vunpack.i.l.bf16 %v6513_v50 }
  0x95   : > { %5551 = vrot.lane.b32.xlu1 %v6452_v28, %s8021_s25  ;;  %1544 = vrot.lane.b32.xlu0 %v6374_v17, %s8027_s24  ;;  %s8119_s24 = smov 29  }
  0x96   : > { %v6522_v55 = vsel %vm379_vm0, %v5283_v49, %v8059_v48  ;;  %4804 = vmatprep.subr.bf16.mxu0 %v4803_v51  ;;  %v383_v56 = vsel %vm379_vm0, %v5274_v42, %v5283_v49  ;;  %v6531_v58 = vsel %vm318_vm1, %v5278_v54, %v8058_v53  ;;  %v322_v60 = vsel %vm318_vm1, %v5269_v41, %v5278_v54 }
  0x97   : > { %4806 = vmatpush1.bf16.msra.mxu0 %v4805_v52  ;;  %v5292_v59 = vpop.permute.xlu1 %5291  ;;  %v5287_v0 = vpop.permute.xlu0 %5286  ;;  %v4855_v1 = vpack.c.bf16 %v383_v56, %v322_v60 }
  0x98   : > { %v5294_v62 = vunpack.i.h.bf16 %v5292_v59  ;;  %v5293_v63 = vunpack.i.l.bf16 %v5292_v59  ;;  %v5289_v4 = vunpack.i.h.bf16 %v5287_v0  ;;  %v5288_v5 = vunpack.i.l.bf16 %v5287_v0 }
  0x99   : > { %5561 = vrot.lane.b32.xlu1 %v6460_v29, %s8021_s25  ;;  %5556 = vrot.lane.b32.xlu0 %v6452_v28, %s8023_s26  ;;  %v6587_v0 = vpack.i.bf16 %v6400_v24, %v6388_v21 }
  0x9a   : > { %4856 = vmatprep.subr.bf16.mxu1 %v4855_v1  ;;  %v503_v9 = vsel %vm501_vm3, %v5293_v63, %v5294_v62  ;;  %v442_v11 = vsel %vm440_vm2, %v5288_v5, %v5289_v4 }
  0x9b   : > { %4858 = vmatpush1.bf16.msra.mxu1 %v4857_v6  ;;  %v5302_v10 = vpop.permute.xlu1 %5301  ;;  %v5297_v14 = vpop.permute.xlu0 %5296  ;;  %v4807_v15 = vpack.c.bf16 %v503_v9, %v442_v11  ;;  %v6598_v6 = vld [vmem:[%s8017_s2 + $0x8] sm:$0xff] }
  0x9c   : > { %v5303_v13 = vunpack.i.l.bf16 %v5302_v10  ;;  %v5304_v18 = vunpack.i.h.bf16 %v5302_v10  ;;  %v5298_v19 = vunpack.i.l.bf16 %v5297_v14  ;;  %v5299_v20 = vunpack.i.h.bf16 %v5297_v14  ;;  %4792 = vmatprep.mubr.msk.f32.mxu0 %vm8075_vm6, %v6598_v6  ;;  %4793 = vmatprep.mubr.msk.f32.mxu1 %vm8075_vm6, %v6598_v6 }
  0x9d   : > { %1605 = vrot.lane.b32.xlu1 %v6374_v17, %s8021_s25  ;;  %5566 = vrot.lane.b32.xlu0 %v6460_v29, %s8023_s26  ;;  %s6292_s25 = smov 19  }
  0x9e   : > { %4808 = vmatprep.subr.bf16.mxu0 %v4807_v15  ;;  %v502_v22 = vsel %vm501_vm3, %v5303_v13, %v5293_v63  ;;  %v441_v25 = vsel %vm440_vm2, %v5298_v19, %v5288_v5  ;;  %v504_v35 = vsel %vm501_vm3, %v5294_v62, %v5304_v18  ;;  %v443_v38 = vsel %vm440_vm2, %v5289_v4, %v5299_v20 }
  0x9f   : > { %v6548_v23 = vpop.permute.xlu1 %5311  ;;  %v6553_v31 = vpop.permute.xlu0 %5306  ;;  %v4809_v32 = vpack.c.bf16 %v502_v22, %v441_v25  ;;  %v4861_v52 = vpack.c.bf16 %v504_v35, %v443_v38 }
  0xa0   : > { %v8051_v26 = vunpack.i.h.bf16 %v6548_v23  ;;  %v5313_v30 = vunpack.i.l.bf16 %v6548_v23  ;;  %v8046_v33 = vunpack.i.h.bf16 %v6553_v31  ;;  %v5308_v34 = vunpack.i.l.bf16 %v6553_v31 }
  0xa1   : > { %5571 = vrot.lane.b32.xlu1 %v6452_v28, %s6292_s25  ;;  %1666 = vrot.lane.b32.xlu0 %v6374_v17, %s8023_s26  ;;  %s8065_s26 = smov 18  }
  0xa2   : > { %v6563_v36 = vsel %vm501_vm3, %v5313_v30, %v8051_v26  ;;  %4810 = vmatpush1.bf16.msra.mxu0 %v4809_v32  ;;  %v505_v37 = vsel %vm501_vm3, %v5304_v18, %v5313_v30  ;;  %v6572_v39 = vsel %vm440_vm2, %v5308_v34, %v8046_v33  ;;  %v444_v41 = vsel %vm440_vm2, %v5299_v20, %v5308_v34 }
  0xa3   : > { %v5322_v40 = vpop.permute.xlu1 %5321  ;;  %v5317_v45 = vpop.permute.xlu0 %5316  ;;  %v4859_v46 = vpack.c.bf16 %v505_v37, %v444_v41 }
  0xa4   : > { %v5324_v42 = vunpack.i.h.bf16 %v5322_v40  ;;  %v5323_v44 = vunpack.i.l.bf16 %v5322_v40  ;;  %v5319_v49 = vunpack.i.h.bf16 %v5317_v45  ;;  %v5318_v51 = vunpack.i.l.bf16 %v5317_v45 }
  0xa5   : > { %5581 = vrot.lane.b32.xlu1 %v6460_v29, %s6292_s25  ;;  %5576 = vrot.lane.b32.xlu0 %v6452_v28, %s8065_s26 }
  0xa6   : > { %4860 = vmatprep.subr.bf16.mxu1 %v4859_v46  ;;  %v625_v54 = vsel %vm623_vm5, %v5323_v44, %v5324_v42  ;;  %v564_v57 = vsel %vm562_vm4, %v5318_v51, %v5319_v49 }
  0xa7   : > { %4862 = vmatpush1.bf16.msra.mxu1 %v4861_v52  ;;  %v5332_v56 = vpop.permute.xlu1 %5331  ;;  %v5327_v60 = vpop.permute.xlu0 %5326  ;;  %v4811_v61 = vpack.c.bf16 %v625_v54, %v564_v57 }
  0xa8   : > { %v5333_v59 = vunpack.i.l.bf16 %v5332_v56  ;;  %v5334_v62 = vunpack.i.h.bf16 %v5332_v56  ;;  %v5328_v63 = vunpack.i.l.bf16 %v5327_v60  ;;  %v5329_v28 = vunpack.i.h.bf16 %v5327_v60 }
  0xa9   : > { %1727 = vrot.lane.b32.xlu1 %v6374_v17, %s6292_s25  ;;  %5586 = vrot.lane.b32.xlu0 %v6460_v29, %s8065_s26 }
  0xaa   : > { %4812 = vmatprep.subr.bf16.mxu0 %v4811_v61  ;;  %v624_v1 = vsel %vm623_vm5, %v5333_v59, %v5323_v44  ;;  %v563_v5 = vsel %vm562_vm4, %v5328_v63, %v5318_v51  ;;  %v626_v15 = vsel %vm623_vm5, %v5324_v42, %v5334_v62  ;;  %v565_v20 = vsel %vm562_vm4, %v5319_v49, %v5329_v28 }
  0xab   : > { %v6592_v4 = vpop.permute.xlu1 %5341  ;;  %v6602_v11 = vpop.permute.xlu0 %5336  ;;  %v4813_v29 = vpack.c.bf16 %v624_v1, %v563_v5  ;;  %v4865_v42 = vpack.c.bf16 %v626_v15, %v565_v20 }
  0xac   : > { %v8041_v9 = vunpack.i.h.bf16 %v6592_v4  ;;  %v5343_v10 = vunpack.i.l.bf16 %v6592_v4  ;;  %v8040_v13 = vunpack.i.h.bf16 %v6602_v11  ;;  %v5338_v14 = vunpack.i.l.bf16 %v6602_v11 }
  0xad   : > { %5591 = vrot.lane.b32.xlu1 %v6587_v0, %s6269_s27  ;;  %1788 = vrot.lane.b32.xlu0 %v6374_v17, %s8065_s26 }
  0xae   : > { %v6616_v18 = vsel %vm623_vm5, %v5343_v10, %v8041_v9  ;;  %4814 = vmatpush1.bf16.msra.mxu0 %v4813_v29  ;;  %v627_v19 = vsel %vm623_vm5, %v5334_v62, %v5343_v10  ;;  %v6625_v22 = vsel %vm562_vm4, %v5338_v14, %v8040_v13  ;;  %v566_v30 = vsel %vm562_vm4, %v5329_v28, %v5338_v14 }
  0xaf   : > { %v5352_v25 = vpop.permute.xlu1 %5351  ;;  %v5347_v35 = vpop.permute.xlu0 %5346  ;;  %v4863_v37 = vpack.c.bf16 %v627_v19, %v566_v30 }
  0xb0   : > { %v5354_v32 = vunpack.i.h.bf16 %v5352_v25  ;;  %v5353_v34 = vunpack.i.l.bf16 %v5352_v25  ;;  %v5349_v40 = vunpack.i.h.bf16 %v5347_v35  ;;  %v5348_v41 = vunpack.i.l.bf16 %v5347_v35 }
  0xb1   : > { %1843 = vrot.lane.b32.xlu1 %v6356_v8, %s8063_s23  ;;  %5596 = vrot.lane.b32.xlu0 %v6587_v0, %s6270_s28 }
  0xb2   : > { %4864 = vmatprep.subr.bf16.mxu1 %v4863_v37  ;;  %v747_v44 = vsel %vm8072_vm8, %v5353_v34, %v5354_v32  ;;  %v686_v46 = vsel %vm8074_vm7, %v5348_v41, %v5349_v40 }
  0xb3   : > { %4866 = vmatpush1.bf16.msra.mxu1 %v4865_v42  ;;  %v5362_v45 = vpop.permute.xlu1 %5361  ;;  %v5357_v51 = vpop.permute.xlu0 %5356  ;;  %v4815_v52 = vpack.c.bf16 %v747_v44, %v686_v46 }
  0xb4   : > { %v5363_v49 = vunpack.i.l.bf16 %v5362_v45  ;;  %v5364_v54 = vunpack.i.h.bf16 %v5362_v45  ;;  %v5358_v56 = vunpack.i.l.bf16 %v5357_v51  ;;  %v5359_v57 = vunpack.i.h.bf16 %v5357_v51 }
  0xb5   : > { %1841 = vrot.lane.b32.xlu1 %v6354_v7, %s8063_s23  ;;  %1845 = vrot.lane.b32.xlu0 %v6349_v3, %s8063_s23 }
  0xb6   : > { %4816 = vmatprep.subr.bf16.mxu0 %v4815_v52  ;;  %v746_v59 = vsel %vm8072_vm8, %v5363_v49, %v5353_v34  ;;  %v685_v61 = vsel %vm8074_vm7, %v5358_v56, %v5348_v41  ;;  %v748_v29 = vsel %vm8072_vm8, %v5354_v32, %v5364_v54  ;;  %v687_v19 = vsel %vm8074_vm7, %v5349_v40, %v5359_v57 }
  0xb7   : > { %v6641_v60 = vpop.permute.xlu1 %5371  ;;  %v6646_v28 = vpop.permute.xlu0 %5366  ;;  %v4817_v1 = vpack.c.bf16 %v746_v59, %v685_v61  ;;  %v4869_v40 = vpack.c.bf16 %v748_v29, %v687_v19 }
  0xb8   : > { %v8039_v62 = vunpack.i.h.bf16 %v6641_v60  ;;  %v5373_v63 = vunpack.i.l.bf16 %v6641_v60  ;;  %v8037_v5 = vunpack.i.h.bf16 %v6646_v28  ;;  %v5368_v10 = vunpack.i.l.bf16 %v6646_v28 }
  0xb9   : > { %377 = vrot.lane.b32.xlu1 %v6415_v27, %s6270_s28  ;;  %316 = vrot.lane.b32.xlu0 %v6415_v27, %s6269_s27 }
  0xba   : > { %v6656_v14 = vsel %vm8072_vm8, %v5373_v63, %v8039_v62  ;;  %4818 = vmatpush1.bf16.msra.mxu0 %v4817_v1  ;;  %v749_v15 = vsel %vm8072_vm8, %v5364_v54, %v5373_v63  ;;  %v6665_v20 = vsel %vm8074_vm7, %v5368_v10, %v8037_v5  ;;  %v688_v30 = vsel %vm8074_vm7, %v5359_v57, %v5368_v10 }
  0xbb   : > { %v5382_v25 = vpop.permute.xlu1 %5381  ;;  %v5377_v35 = vpop.permute.xlu0 %5376  ;;  %v4867_v37 = vpack.c.bf16 %v749_v15, %v688_v30 }
  0xbc   : > { %v5384_v32 = vunpack.i.h.bf16 %v5382_v25  ;;  %v5383_v34 = vunpack.i.l.bf16 %v5382_v25  ;;  %v5379_v42 = vunpack.i.h.bf16 %v5377_v35  ;;  %v5378_v44 = vunpack.i.l.bf16 %v5377_v35 }
  0xbd   : > { %5606 = vrot.lane.b32.xlu1 %v6587_v0, %s6271_s29  ;;  %5601 = vrot.lane.b32.xlu0 %v6587_v0, %s6272_s30 }
  0xbe   : > { %4868 = vmatprep.subr.bf16.mxu1 %v4867_v37  ;;  %v869_v45 = vsel %vm8070_vm10, %v5383_v34, %v5384_v32  ;;  %v808_v49 = vsel %vm8071_vm9, %v5378_v44, %v5379_v42 }
  0xbf   : > { %4870 = vmatpush1.bf16.msra.mxu1 %v4869_v40  ;;  %v5392_v46 = vpop.permute.xlu1 %5391  ;;  %v5387_v52 = vpop.permute.xlu0 %5386  ;;  %v4819_v54 = vpack.c.bf16 %v869_v45, %v808_v49 }
  0xc0   : > { %v5393_v51 = vunpack.i.l.bf16 %v5392_v46  ;;  %v5394_v56 = vunpack.i.h.bf16 %v5392_v46  ;;  %v5388_v57 = vunpack.i.l.bf16 %v5387_v52  ;;  %v5389_v59 = vunpack.i.h.bf16 %v5387_v52 }
  0xc1   : > { %1849 = vrot.lane.b32.xlu1 %v6374_v17, %s8063_s23  ;;  %1847 = vrot.lane.b32.xlu0 %v6372_v16, %s8063_s23 }
  0xc2   : > { %4820 = vmatprep.subr.bf16.mxu0 %v4819_v54  ;;  %v868_v61 = vsel %vm8070_vm10, %v5393_v51, %v5383_v34  ;;  %v807_v1 = vsel %vm8071_vm9, %v5388_v57, %v5378_v44  ;;  %v870_v34 = vsel %vm8070_vm10, %v5384_v32, %v5394_v56  ;;  %v809_v44 = vsel %vm8071_vm9, %v5379_v42, %v5389_v59 }
  0xc3   : > { %v6681_v63 = vpop.permute.xlu1 %5401  ;;  %v6686_v15 = vpop.permute.xlu0 %5396  ;;  %v4821_v19 = vpack.c.bf16 %v868_v61, %v807_v1  ;;  %v4873_v42 = vpack.c.bf16 %v870_v34, %v809_v44 }
  0xc4   : > { %v8031_v10 = vunpack.i.h.bf16 %v6681_v63  ;;  %v5403_v29 = vunpack.i.l.bf16 %v6681_v63  ;;  %v8030_v25 = vunpack.i.h.bf16 %v6686_v15  ;;  %v5398_v30 = vunpack.i.l.bf16 %v6686_v15 }
  0xc5   : > { %499 = vrot.lane.b32.xlu1 %v6415_v27, %s6271_s29  ;;  %438 = vrot.lane.b32.xlu0 %v6415_v27, %s6272_s30 }
  0xc6   : > { %v6696_v35 = vsel %vm8070_vm10, %v5403_v29, %v8031_v10  ;;  %4822 = vmatpush1.bf16.msra.mxu0 %v4821_v19  ;;  %v871_v37 = vsel %vm8070_vm10, %v5394_v56, %v5403_v29  ;;  %v6705_v40 = vsel %vm8071_vm9, %v5398_v30, %v8030_v25  ;;  %v810_v32 = vsel %vm8071_vm9, %v5389_v59, %v5398_v30 }
  0xc7   : > { %v5412_v45 = vpop.permute.xlu1 %5411  ;;  %v5407_v51 = vpop.permute.xlu0 %5406  ;;  %v4871_v52 = vpack.c.bf16 %v871_v37, %v810_v32 }
  0xc8   : > { %v5414_v46 = vunpack.i.h.bf16 %v5412_v45  ;;  %v5413_v49 = vunpack.i.l.bf16 %v5412_v45  ;;  %v5409_v56 = vunpack.i.h.bf16 %v5407_v51  ;;  %v5408_v57 = vunpack.i.l.bf16 %v5407_v51 }
  0xc9   : > { %5616 = vrot.lane.b32.xlu1 %v6587_v0, %s6273_s6  ;;  %5611 = vrot.lane.b32.xlu0 %v6587_v0, %s6274_s7 }
  0xca   : > { %4872 = vmatprep.subr.bf16.mxu1 %v4871_v52  ;;  %v991_v59 = vsel %vm8073_vm12, %v5413_v49, %v5414_v46  ;;  %v930_v1 = vsel %vm8036_vm11, %v5408_v57, %v5409_v56 }
  0xcb   : > { %4874 = vmatpush1.bf16.msra.mxu1 %v4873_v42  ;;  %v5422_v61 = vpop.permute.xlu1 %5421  ;;  %v5417_v19 = vpop.permute.xlu0 %5416  ;;  %v4823_v30 = vpack.c.bf16 %v991_v59, %v930_v1 }
  0xcc   : > { %v5423_v29 = vunpack.i.l.bf16 %v5422_v61  ;;  %v5424_v37 = vunpack.i.h.bf16 %v5422_v61  ;;  %v5418_v45 = vunpack.i.l.bf16 %v5417_v19  ;;  %v5419_v32 = vunpack.i.h.bf16 %v5417_v19 }
  0xcd   : > { %621 = vrot.lane.b32.xlu1 %v6415_v27, %s6273_s6  ;;  %560 = vrot.lane.b32.xlu0 %v6415_v27, %s6274_s7 }
  0xce   : > { %4824 = vmatprep.subr.bf16.mxu0 %v4823_v30  ;;  %v990_v34 = vsel %vm8073_vm12, %v5423_v29, %v5413_v49  ;;  %v929_v51 = vsel %vm8036_vm11, %v5418_v45, %v5408_v57  ;;  %v992_v49 = vsel %vm8073_vm12, %v5414_v46, %v5424_v37  ;;  %v931_v30 = vsel %vm8036_vm11, %v5409_v56, %v5419_v32 }
  0xcf   : > { %v6721_v44 = vpop.permute.xlu1 %5431  ;;  %v6726_v59 = vpop.permute.xlu0 %5426  ;;  %v4825_v61 = vpack.c.bf16 %v990_v34, %v929_v51  ;;  %v4877_v56 = vpack.c.bf16 %v992_v49, %v931_v30 }
  0xd0   : > { %v8029_v52 = vunpack.i.h.bf16 %v6721_v44  ;;  %v5433_v42 = vunpack.i.l.bf16 %v6721_v44  ;;  %v8033_v1 = vunpack.i.h.bf16 %v6726_v59  ;;  %v5428_v19 = vunpack.i.l.bf16 %v6726_v59 }
  0xd1   : > { %5626 = vrot.lane.b32.xlu1 %v6587_v0, %s6275_s8  ;;  %5621 = vrot.lane.b32.xlu0 %v6587_v0, %s6276_s9 }
  0xd2   : > { %v6736_v57 = vsel %vm8073_vm12, %v5433_v42, %v8029_v52  ;;  %4826 = vmatpush1.bf16.msra.mxu0 %v4825_v61  ;;  %v993_v29 = vsel %vm8073_vm12, %v5424_v37, %v5433_v42  ;;  %v6745_v45 = vsel %vm8036_vm11, %v5428_v19, %v8033_v1  ;;  %v932_v46 = vsel %vm8036_vm11, %v5419_v32, %v5428_v19 }
  0xd3   : > { %v5442_v34 = vpop.permute.xlu1 %5441  ;;  %v5437_v54 = vpop.permute.xlu0 %5436  ;;  %v4875_v52 = vpack.c.bf16 %v993_v29, %v932_v46  ;;  %vm8053_vm11 = vcmask 957440  }
  0xd4   : > { %v5443_v51 = vunpack.i.l.bf16 %v5442_v34  ;;  %v5439_v61 = vunpack.i.h.bf16 %v5437_v54  ;;  %v5438_v10 = vunpack.i.l.bf16 %v5437_v54  ;;  %v5444_v37 = vunpack.i.h.bf16 %v5442_v34 }
  0xd5   : > { %743 = vrot.lane.b32.xlu1 %v6415_v27, %s6275_s8  ;;  %682 = vrot.lane.b32.xlu0 %v6415_v27, %s6276_s9 }
  0xd6   : > { %4876 = vmatprep.subr.bf16.mxu1 %v4875_v52  ;;  %v1052_v42 = vsel %vm8034_vm13, %v5438_v10, %v5439_v61  ;;  %v1051_v19 = vsel %vm8034_vm13, %v5443_v51, %v5438_v10  ;;  %v1053_v52 = vsel %vm8034_vm13, %v5439_v61, %v5444_v37 }
  0xd7   : > { %4878 = vmatpush1.bf16.msra.mxu1 %v4877_v56  ;;  %v6754_v32 = vpop.permute.xlu1 %5451  ;;  %v6758_v29 = vpop.permute.xlu0 %5446  ;;  %v4827_v54 = vpack.c.bf16 %v6356_v8, %v1052_v42  ;;  %v4829_v46 = vpack.c.bf16 %v6354_v7, %v1051_v19  ;;  %v4881_v61 = vpack.c.bf16 %v6349_v3, %v1053_v52 }
  0xd8   : > { %v8032_v49 = vunpack.i.l.bf16 %v6758_v29  ;;  %v5454_v30 = vunpack.i.h.bf16 %v6754_v32  ;;  %v5453_v10 = vunpack.i.l.bf16 %v6754_v32 }
  0xd9   : > { %5636 = vrot.lane.b32.xlu1 %v6587_v0, %s6277_s10  ;;  %5631 = vrot.lane.b32.xlu0 %v6587_v0, %s6278_s11 }
  0xda   : > { %4828 = vmatprep.subr.bf16.mxu0 %v4827_v54  ;;  %v1054_v7 = vsel %vm8034_vm13, %v5444_v37, %v8032_v49  ;;  %v1129_v37 = vsel %vm8042_vm14, %v5453_v10, %v5454_v30  ;;  %vm8048_vm13 = vcmask 965632  }
  0xdb   : > { %4830 = vmatpush1.bf16.msra.mxu0 %v4829_v46  ;;  %v5462_v34 = vpop.permute.xlu1 %5461  ;;  %v5457_v8 = vpop.permute.xlu0 %5456  ;;  %v4879_v51 = vpack.c.bf16 %v6372_v16, %v1054_v7 }
  0xdc   : > { %v5459_v56 = vunpack.i.h.bf16 %v5457_v8  ;;  %v5458_v42 = vunpack.i.l.bf16 %v5457_v8  ;;  %v5463_v32 = vunpack.i.l.bf16 %v5462_v34 }
  0xdd   : > { %865 = vrot.lane.b32.xlu1 %v6415_v27, %s6277_s10  ;;  %804 = vrot.lane.b32.xlu0 %v6415_v27, %s6278_s11 }
  0xde   : > { %4880 = vmatprep.subr.bf16.mxu1 %v4879_v51  ;;  %v1190_v16 = vsel %vm8044_vm15, %v5458_v42, %v5459_v56 }
  0xdf   : > { %4882 = vmatpush1.bf16.msra.mxu1 %v4881_v61  ;;  %v6779_v19 = vpop.permute.xlu1 %5471  ;;  %v5467_v54 = vpop.permute.xlu0 %5466  ;;  %v4831_v46 = vpack.c.bf16 %v1190_v16, %v1129_v37  ;;  %v1128_v61 = vsel %vm8042_vm14, %v5463_v32, %v5453_v10  ;;  %v5464_v37 = vunpack.i.h.bf16 %v5462_v34 }
  0xe0   : > { %v5468_v7 = vunpack.i.l.bf16 %v5467_v54  ;;  %v8035_v3 = vunpack.i.h.bf16 %v6779_v19  ;;  %v5473_v52 = vunpack.i.l.bf16 %v6779_v19  ;;  %v5469_v8 = vunpack.i.h.bf16 %v5467_v54 }
  0xe1   : > { %5646 = vrot.lane.b32.xlu1 %v6587_v0, %s6279_s12  ;;  %5641 = vrot.lane.b32.xlu0 %v6587_v0, %s6280_s13 }
  0xe2   : > { %4832 = vmatprep.subr.bf16.mxu0 %v4831_v46  ;;  %v1189_v49 = vsel %vm8044_vm15, %v5468_v7, %v5458_v42  ;;  %v6802_v54 = vsel %vm8042_vm14, %v5473_v52, %v8035_v3  ;;  %v1131_v10 = vsel %vm8042_vm14, %v5464_v37, %v5473_v52 }
  0xe3   : > { %v6789_v51 = vpop.permute.xlu1 %5481  ;;  %v6793_v16 = vpop.permute.xlu0 %5476  ;;  %v4833_v25 = vpack.c.bf16 %v1189_v49, %v1128_v61  ;;  %v1191_v49 = vsel %vm8044_vm15, %v5459_v56, %v5469_v8 }
  0xe4   : > { %v8038_v1 = vunpack.i.h.bf16 %v6793_v16  ;;  %v5478_v41 = vunpack.i.l.bf16 %v6793_v16  ;;  %v5484_v34 = vunpack.i.h.bf16 %v6789_v51  ;;  %v5483_v42 = vunpack.i.l.bf16 %v6789_v51 }
  0xe5   : > { %987 = vrot.lane.b32.xlu1 %v6415_v27, %s6279_s12  ;;  %926 = vrot.lane.b32.xlu0 %v6415_v27, %s6280_s13 }
  0xe6   : > { %4834 = vmatpush1.bf16.msra.mxu0 %v4833_v25  ;;  %v6813_v32 = vsel %vm8044_vm15, %v5478_v41, %v8038_v1  ;;  %v1192_v7 = vsel %vm8044_vm15, %v5469_v8, %v5478_v41  ;;  %v1130_v25 = vsel %vm8042_vm14, %v5454_v30, %v5464_v37  ;;  %v5660_v1 = vpack.i.bf16 %v6415_v27, %v6400_v24 }
  0xe7   : > { %v5492_v46 = vpop.permute.xlu1 %5491  ;;  %v5487_v61 = vpop.permute.xlu0 %5486  ;;  %v4883_v3 = vpack.c.bf16 %v1192_v7, %v1131_v10  ;;  %v4885_v51 = vpack.c.bf16 %v1191_v49, %v1130_v25  ;;  %v1251_v8 = vsel %vm8048_vm13, %v5483_v42, %v5484_v34  ;;  %vm8052_vm14 = vcmask 318464  }
  0xe8   : > { %v5489_v52 = vunpack.i.h.bf16 %v5487_v61  ;;  %v5488_v5 = vunpack.i.l.bf16 %v5487_v61  ;;  %v5493_v41 = vunpack.i.l.bf16 %v5492_v46  ;;  %v5494_v38 = vunpack.i.h.bf16 %v5492_v46 }
  0xe9   : > { %1048 = vrot.lane.b32.xlu1 %v6415_v27, %s8049_s14  ;;  %5651 = vrot.lane.b32.xlu0 %v6587_v0, %s8049_s14  ;;  %vm8047_vm15 = vcmask 310272   ;;  %s8120_s14 = smov 37  }
  0xea   : > { %4884 = vmatprep.subr.bf16.mxu1 %v4883_v3  ;;  %v1312_v37 = vsel %vm8053_vm11, %v5488_v5, %v5489_v52  ;;  %v1252_v47 = vsel %vm8048_vm13, %v5484_v34, %v5494_v38 }
  0xeb   : > { %4886 = vmatpush1.bf16.msra.mxu1 %v4885_v51  ;;  %v6825_v30 = vpop.permute.xlu1 %5501  ;;  %v5497_v10 = vpop.permute.xlu0 %5496  ;;  %v4835_v7 = vpack.c.bf16 %v1312_v37, %v1251_v8  ;;  %v1250_v51 = vsel %vm8048_vm13, %v5493_v41, %v5483_v42 }
  0xec   : > { %v5498_v61 = vunpack.i.l.bf16 %v5497_v10  ;;  %v8043_v49 = vunpack.i.h.bf16 %v6825_v30  ;;  %v5503_v25 = vunpack.i.l.bf16 %v6825_v30  ;;  %v5499_v56 = vunpack.i.h.bf16 %v5497_v10 }
  0xed   : > { %5661 = vrot.lane.b32.xlu1 %v5660_v1, %s8079_s16  ;;  %5656 = vrot.lane.b32.xlu0 %v5660_v1, %s8076_s15 }
  0xee   : > { %4836 = vmatprep.subr.bf16.mxu0 %v4835_v7  ;;  %v1311_v62 = vsel %vm8053_vm11, %v5498_v61, %v5488_v5  ;;  %v6844_v10 = vsel %vm8048_vm13, %v5503_v25, %v8043_v49  ;;  %v1253_v5 = vsel %vm8048_vm13, %v5494_v38, %v5503_v25  ;;  %vm8061_vm13 = vcmask 236544  }
  0xef   : > { %v5512_v3 = vpop.permute.xlu1 %5511  ;;  %v6835_v13 = vpop.permute.xlu0 %5506  ;;  %v4837_v8 = vpack.c.bf16 %v1311_v62, %v1250_v51  ;;  %v1313_v62 = vsel %vm8053_vm11, %v5489_v52, %v5499_v56 }
  0xf0   : > { %v8045_v37 = vunpack.i.h.bf16 %v6835_v13  ;;  %v5508_v9 = vunpack.i.l.bf16 %v6835_v13  ;;  %v5514_v42 = vunpack.i.h.bf16 %v5512_v3  ;;  %v5513_v46 = vunpack.i.l.bf16 %v5512_v3 }
  0xf1   : > { %1186 = vrot.lane.b32.xlu1 %v8067_v12, %s8079_s16  ;;  %1125 = vrot.lane.b32.xlu0 %v8067_v12, %s8076_s15  ;;  %v4889_v3 = vpack.c.bf16 %v1313_v62, %v1252_v47 }
  0xf2   : > { %4838 = vmatpush1.bf16.msra.mxu0 %v4837_v8  ;;  %v6853_v41 = vsel %vm8053_vm11, %v5508_v9, %v8045_v37  ;;  %v1314_v61 = vsel %vm8053_vm11, %v5499_v56, %v5508_v9  ;;  %v1373_v9 = vsel %vm8052_vm14, %v5513_v46, %v5514_v42  ;;  %vm1676_vm11 = vcmask 220160  }
  0xf3   : > { %v5522_v7 = vpop.permute.xlu1 %5521  ;;  %v5517_v51 = vpop.permute.xlu0 %5516  ;;  %v4887_v49 = vpack.c.bf16 %v1314_v61, %v1253_v5 }
  0xf4   : > { %v5519_v52 = vunpack.i.h.bf16 %v5517_v51  ;;  %v5518_v8 = vunpack.i.l.bf16 %v5517_v51  ;;  %v5523_v37 = vunpack.i.l.bf16 %v5522_v7  ;;  %v5524_v51 = vunpack.i.h.bf16 %v5522_v7 }
  0xf5   : > { %5671 = vrot.lane.b32.xlu1 %v5660_v1, %s8078_s20  ;;  %5666 = vrot.lane.b32.xlu0 %v5660_v1, %s8077_s17 }
  0xf6   : > { %4888 = vmatprep.subr.bf16.mxu1 %v4887_v49  ;;  %v1434_v38 = vsel %vm8047_vm15, %v5518_v8, %v5519_v52  ;;  %v1372_v1 = vsel %vm8052_vm14, %v5523_v37, %v5513_v46  ;;  %v1374_v46 = vsel %vm8052_vm14, %v5514_v42, %v5524_v51 }
  0xf7   : > { %4890 = vmatpush1.bf16.msra.mxu1 %v4889_v3  ;;  %v6861_v33 = vpop.permute.xlu1 %1361  ;;  %v5527_v34 = vpop.permute.xlu0 %5526  ;;  %v4839_v56 = vpack.c.bf16 %v1434_v38, %v1373_v9 }
  0xf8   : > { %v5529_v5 = vunpack.i.h.bf16 %v5527_v34  ;;  %v5528_v61 = vunpack.i.l.bf16 %v5527_v34  ;;  %v1375_v38 = vsel %vm8052_vm14, %v5524_v51, %v6861_v33  ;;  %v6882_v34 = vpack.i.bf16 %v8067_v12, %v6415_v27 }
  0xf9   : > { %1308 = vrot.lane.b32.xlu1 %v8067_v12, %s8078_s20  ;;  %1247 = vrot.lane.b32.xlu0 %v8067_v12, %s8077_s17  ;;  %vm8062_vm14 = vcmask 228352  }
  0xfa   : > { %4840 = vmatprep.subr.bf16.mxu0 %v4839_v56  ;;  %v1433_v49 = vsel %vm8047_vm15, %v5528_v61, %v5518_v8  ;;  %v1435_v9 = vsel %vm8047_vm15, %v5519_v52, %v5529_v5 }
  0xfb   : > { %v5532_v47 = vpop.permute.xlu1 %5531  ;;  %v6871_v62 = vpop.permute.xlu0 %1422  ;;  %v4841_v3 = vpack.c.bf16 %v1433_v49, %v1372_v1  ;;  %v4893_v61 = vpack.c.bf16 %v1435_v9, %v1374_v46 }
  0xfc   : > { %v1436_v7 = vsel %vm8047_vm15, %v5529_v5, %v6871_v62  ;;  %v5534_v52 = vunpack.i.h.bf16 %v5532_v47  ;;  %v5533_v8 = vunpack.i.l.bf16 %v5532_v47  ;;  %vm8060_vm15 = vcmask 302080  }
  0xfd   : > { %5681 = vrot.lane.b32.xlu1 %v6587_v0, %s8054_s22  ;;  %5676 = vrot.lane.b32.xlu0 %v6587_v0, %s8056_s21  ;;  %v4891_v37 = vpack.c.bf16 %v1436_v7, %v1375_v38 }
  0xfe   : > { %4842 = vmatpush1.bf16.msra.mxu0 %v4841_v3  ;;  %v1495_v42 = vsel %vm8060_vm15, %v5533_v8, %v5534_v52 }
  0xff   : > { %v5542_v56 = vpop.permute.xlu1 %5541  ;;  %v5537_v1 = vpop.permute.xlu0 %5536  ;;  %4892 = vmatprep.subr.bf16.mxu1 %v4891_v37 }
 0x100   : > { %v5539_v5 = vunpack.i.h.bf16 %v5537_v1  ;;  %v5538_v49 = vunpack.i.l.bf16 %v5537_v1  ;;  %4894 = vmatpush1.bf16.msra.mxu1 %v4893_v61  ;;  %v5543_v3 = vunpack.i.l.bf16 %v5542_v56  ;;  %v5544_v46 = vunpack.i.h.bf16 %v5542_v56 }
 0x101   : > { %5691 = vrot.lane.b32.xlu1 %v6882_v34, %s8054_s22  ;;  %5686 = vrot.lane.b32.xlu0 %v6882_v34, %s8056_s21  ;;  %s8121_s22 = smov 27   ;;  %s8122_s21 = smov 28  }
 0x102   : > { %v1556_v51 = vsel %vm8061_vm13, %v5538_v49, %v5539_v5  ;;  %v1494_v1 = vsel %vm8060_vm15, %v5543_v3, %v5533_v8 }
 0x103   : > { %v6891_v38 = vpop.permute.xlu1 %1483  ;;  %v5547_v47 = vpop.permute.xlu0 %5546  ;;  %v4843_v9 = vpack.c.bf16 %v1556_v51, %v1495_v42 }
 0x104   : > { %v5549_v7 = vunpack.i.h.bf16 %v5547_v47  ;;  %v5548_v37 = vunpack.i.l.bf16 %v5547_v47  ;;  %v1497_v51 = vsel %vm8060_vm15, %v5544_v46, %v6891_v38 }
 0x105   : > { %5701 = vrot.lane.b32.xlu1 %v6587_v0, %s8119_s24  ;;  %5696 = vrot.lane.b32.xlu0 %v6587_v0, %s8120_s14 }
 0x106   : > { %4844 = vmatprep.subr.bf16.mxu0 %v4843_v9  ;;  %v1555_v25 = vsel %vm8061_vm13, %v5548_v37, %v5538_v49  ;;  %v1557_v42 = vsel %vm8061_vm13, %v5539_v5, %v5549_v7  ;;  %v1496_v49 = vsel %vm8060_vm15, %v5534_v52, %v5544_v46  ;;  %vm1737_vm15 = vcmask 154624  }
 0x107   : > { %v5552_v61 = vpop.permute.xlu1 %5551  ;;  %v6901_v26 = vpop.permute.xlu0 %1544  ;;  %v4845_v2 = vpack.c.bf16 %v1555_v25, %v1494_v1  ;;  %v4897_v5 = vpack.c.bf16 %v1557_v42, %v1496_v49 }
 0x108   : > { %v1558_v56 = vsel %vm8061_vm13, %v5549_v7, %v6901_v26  ;;  %v5554_v3 = vunpack.i.h.bf16 %v5552_v61  ;;  %v5553_v25 = vunpack.i.l.bf16 %v5552_v61  ;;  %vm1798_vm13 = vcmask 146432  }
 0x109   : > { %5711 = vrot.lane.b32.xlu1 %v6882_v34, %s8119_s24  ;;  %5706 = vrot.lane.b32.xlu0 %v6882_v34, %s8120_s14  ;;  %v4895_v8 = vpack.c.bf16 %v1558_v56, %v1497_v51 }
 0x10a   : > { %4846 = vmatpush1.bf16.msra.mxu0 %v4845_v2  ;;  %v1617_v52 = vsel %vm8062_vm14, %v5553_v25, %v5554_v3 }
 0x10b   : > { %v5562_v47 = vpop.permute.xlu1 %5561  ;;  %v5557_v9 = vpop.permute.xlu0 %5556  ;;  %4896 = vmatprep.subr.bf16.mxu1 %v4895_v8 }
 0x10c   : > { %v5559_v37 = vunpack.i.h.bf16 %v5557_v9  ;;  %v5558_v7 = vunpack.i.l.bf16 %v5557_v9  ;;  %4898 = vmatpush1.bf16.msra.mxu1 %v4897_v5  ;;  %v5563_v2 = vunpack.i.l.bf16 %v5562_v47  ;;  %v5564_v8 = vunpack.i.h.bf16 %v5562_v47 }
 0x10d   : > { %5721 = vrot.lane.b32.xlu1 %v6587_v0, %s8121_s22  ;;  %5716 = vrot.lane.b32.xlu0 %v6587_v0, %s8122_s21 }
 0x10e   : > { %v1678_v46 = vsel %vm1676_vm11, %v5558_v7, %v5559_v37  ;;  %v1616_v5 = vsel %vm8062_vm14, %v5563_v2, %v5553_v25 }
 0x10f   : > { %v6917_v1 = vpop.permute.xlu1 %1605  ;;  %v5567_v61 = vpop.permute.xlu0 %5566  ;;  %v4847_v42 = vpack.c.bf16 %v1678_v46, %v1617_v52 }
 0x110   : > { %v5569_v51 = vunpack.i.h.bf16 %v5567_v61  ;;  %v5568_v56 = vunpack.i.l.bf16 %v5567_v61  ;;  %v1619_v46 = vsel %vm8062_vm14, %v5564_v8, %v6917_v1 }
 0x111   : > { %5731 = vrot.lane.b32.xlu1 %v6882_v34, %s8121_s22  ;;  %5726 = vrot.lane.b32.xlu0 %v6882_v34, %s8122_s21 }
 0x112   : > { %4848 = vmatprep.subr.bf16.mxu0 %v4847_v42  ;;  %v1677_v9 = vsel %vm1676_vm11, %v5568_v56, %v5558_v7  ;;  %v1679_v52 = vsel %vm1676_vm11, %v5559_v37, %v5569_v51  ;;  %v1618_v7 = vsel %vm8062_vm14, %v5554_v3, %v5564_v8  ;;  %vm1859_vm14 = vcmask 138240  }
 0x113   : > { %v5572_v49 = vpop.permute.xlu1 %5571  ;;  %v6927_v53 = vpop.permute.xlu0 %1666  ;;  %v4849_v48 = vpack.c.bf16 %v1677_v9, %v1616_v5  ;;  %v4901_v37 = vpack.c.bf16 %v1679_v52, %v1618_v7 }
 0x114   : > { %v1680_v47 = vsel %vm1676_vm11, %v5569_v51, %v6927_v53  ;;  %v5574_v2 = vunpack.i.h.bf16 %v5572_v49  ;;  %v5573_v61 = vunpack.i.l.bf16 %v5572_v49 }
 0x115   : > { %5741 = vrot.lane.b32.xlu1 %v6587_v0, %s8065_s26  ;;  %5736 = vrot.lane.b32.xlu0 %v6587_v0, %s6292_s25  ;;  %v4899_v25 = vpack.c.bf16 %v1680_v47, %v1619_v46 }
 0x116   : > { %4850 = vmatpush1.bf16.msra.mxu0 %v4849_v48  ;;  %v1739_v3 = vsel %vm1737_vm15, %v5573_v61, %v5574_v2 }
 0x117   : > { %v5582_v42 = vpop.permute.xlu1 %5581  ;;  %v5577_v56 = vpop.permute.xlu0 %5576  ;;  %4900 = vmatprep.subr.bf16.mxu1 %v4899_v25 }
 0x118   : > { %v5579_v5 = vunpack.i.h.bf16 %v5577_v56  ;;  %v5578_v51 = vunpack.i.l.bf16 %v5577_v56  ;;  %4902 = vmatpush1.bf16.msra.mxu1 %v4901_v37  ;;  %v5583_v48 = vunpack.i.l.bf16 %v5582_v42  ;;  %v5584_v47 = vunpack.i.h.bf16 %v5582_v42 }
 0x119   : > { %5751 = vrot.lane.b32.xlu1 %v6882_v34, %s8065_s26  ;;  %5746 = vrot.lane.b32.xlu0 %v6882_v34, %s6292_s25  ;;  %s8199_s26 = smov 1  }
 0x11a   : > { %v1800_v8 = vsel %vm1798_vm13, %v5578_v51, %v5579_v5  ;;  %v1738_v25 = vsel %vm1737_vm15, %v5583_v48, %v5573_v61 }
 0x11b   : > { %v6943_v0 = vpop.permute.xlu1 %1727  ;;  %v5587_v49 = vpop.permute.xlu0 %5586  ;;  %v4851_v9 = vpack.c.bf16 %v1800_v8, %v1739_v3 }
 0x11c   : > { %8123 = vst [vmem:[#allocation5_spill] sm:$0xff] %v6943_v0  ;;  %v5589_v52 = vunpack.i.h.bf16 %v5587_v49  ;;  %v5588_v46 = vunpack.i.l.bf16 %v5587_v49  ;;  %v1741_v8 = vsel %vm1737_vm15, %v5584_v47, %v6943_v0 }
 0x11d   : > { %1853 = vrot.lane.b32.xlu1 %v6400_v24, %s8063_s23  ;;  %1851 = vrot.lane.b32.xlu0 %v6388_v21, %s8063_s23 }
 0x11e   : > { %4852 = vmatprep.subr.bf16.mxu0 %v4851_v9  ;;  %v1799_v7 = vsel %vm1798_vm13, %v5588_v46, %v5578_v51  ;;  %v1801_v3 = vsel %vm1798_vm13, %v5579_v5, %v5589_v52  ;;  %v1740_v51 = vsel %vm1737_vm15, %v5574_v2, %v5584_v47  ;;  %v8125_v47 = vunpack.i.h.bf16 %v6513_v50 }
 0x11f   : > { %v5592_v34 = vpop.permute.xlu1 %5591  ;;  %v6953_v37 = vpop.permute.xlu0 %1788  ;;  %v4853_v56 = vpack.c.bf16 %v1799_v7, %v1738_v25  ;;  %v4905_v49 = vpack.c.bf16 %v1801_v3, %v1740_v51  ;;  %v8124_v25 = vunpack.i.h.bf16 %v6505_v43  ;;  %v8126_v50 = vpack.c.bf16 %v6522_v55, %v6531_v58 }
 0x120   : > { %v1802_v42 = vsel %vm1798_vm13, %v5589_v52, %v6953_v37  ;;  %v5593_v5 = vunpack.i.l.bf16 %v5592_v34  ;;  %v8128_v55 = vunpack.i.h.bf16 %v6553_v31  ;;  %v8129_v31 = vpack.c.bf16 %v6563_v36, %v6572_v39  ;;  %v6259_v36 = vld [vmem:[%s8017_s2 + $0x8] sm:$0xff] }
 0x121   : > { %1857 = vrot.lane.b32.xlu1 %v8067_v12, %s8063_s23  ;;  %1855 = vrot.lane.b32.xlu0 %v6415_v27, %s8063_s23  ;;  %v4903_v61 = vpack.c.bf16 %v1802_v42, %v1741_v8  ;;  %v6978_v42 = vld [vmem:[%s8017_s2] sm:$0xff]  ;;  %s8200_s23 = smov 39  }
 0x122   : > { %4854 = vmatpush1.bf16.msra.mxu0 %v4853_v56  ;;  %v324_v3 = vsel %vm318_vm1, %v8125_v47, %v5593_v5  ;;  %v5594_v47 = vunpack.i.h.bf16 %v5592_v34 }
 0x123   : > { %v1844_v48 = vpop.permute.xlu1 %1843  ;;  %v5597_v9 = vpop.permute.xlu0 %5596  ;;  %4904 = vmatprep.subr.bf16.mxu1 %v4903_v61 }
 0x124   : > { %v5598_v46 = vunpack.i.l.bf16 %v5597_v9  ;;  %4906 = vmatpush1.bf16.msra.mxu1 %v4905_v49  ;;  %v5599_v49 = vunpack.i.h.bf16 %v5597_v9 }
 0x125   : > { %3423 = vrot.lane.b32.xlu1 %v8067_v12, %s8079_s16 }
 0x126   : > { %v385_v7 = vsel %vm379_vm0, %v8124_v25, %v5598_v46 }
 0x127   : > { %v1842_v52 = vpop.permute.xlu1 %1841  ;;  %v1846_v56 = vpop.permute.xlu0 %1845  ;;  %v4907_v43 = vpack.c.bf16 %v385_v7, %v324_v3  ;;  %v8127_v7 = vunpack.i.h.bf16 %v6548_v23 }
 0x128   : > { %v1860_v8 = vsel %vm1859_vm14, %v1842_v52, %v1844_v48  ;;  %v1861_v2 = vsel %vm1859_vm14, %v1844_v48, %v1846_v56 }
 0x129   : > { %3543 = vrot.lane.b32.xlu1 %v8067_v12, %s8078_s20  ;;  %2158 = vmatprep.subr.mxu0 %v1861_v2 }
 0x12a   : > { %2159 = vmatpush1.msra.mxu0 %v1860_v8 }
 0x12b   : > { %v378_v61 = vpop.permute.xlu1 %377  ;;  %v317_v51 = vpop.permute.xlu0 %316  ;;  %4908 = vmatprep.subr.bf16.mxu0 %v4907_v43  ;;  %2171 = vmatmul.mubr.f32.vlgmr.msra.gmra.mrb[0].mxu0 %v6978_v42 }
 0x12c   : > { %4910 = vmatpush1.bf16.msra.mxu0 %v8126_v50  ;;  %4794 = vmatprep.mubr.msk.f32.mxu0 %vm8075_vm6, %v6598_v6  ;;  %v387_v3 = vsel %vm379_vm0, %v5599_v49, %v378_v61  ;;  %v326_v43 = vsel %vm318_vm1, %v5594_v47, %v317_v51  ;;  %v386_v6 = vsel %vm379_vm0, %v5598_v46, %v5599_v49 }
 0x12d   : > { %v325_v61 = vsel %vm318_vm1, %v5593_v5, %v5594_v47  ;;  %v4959_v51 = vpack.c.bf16 %v387_v3, %v326_v43 }
 0x12f   : > { %v5607_v48 = vpop.permute.xlu1 %5606  ;;  %v5602_v25 = vpop.permute.xlu0 %5601 }
 0x130   : > { %v5608_v52 = vunpack.i.l.bf16 %v5607_v48  ;;  %v5603_v2 = vunpack.i.l.bf16 %v5602_v25  ;;  %v5609_v9 = vunpack.i.h.bf16 %v5607_v48  ;;  %v5604_v50 = vunpack.i.h.bf16 %v5602_v25 }
 0x131   : > { %v4961_v48 = vpack.c.bf16 %v386_v6, %v325_v61 }
 0x132   : > { %v507_v8 = vsel %vm501_vm3, %v8127_v7, %v5608_v52  ;;  %v446_v58 = vsel %vm440_vm2, %v8128_v55, %v5603_v2  ;;  %v508_v49 = vsel %vm501_vm3, %v5608_v52, %v5609_v9  ;;  %v447_v25 = vsel %vm440_vm2, %v5603_v2, %v5604_v50 }
 0x133   : > { %v6993_v12 = vpop.permute.xlu1 %1849  ;;  %v1848_v34 = vpop.permute.xlu0 %1847  ;;  %v4911_v0 = vpack.c.bf16 %v507_v8, %v446_v58  ;;  %v8130_v58 = vunpack.i.h.bf16 %v6592_v4  ;;  %v8132_v4 = vpack.c.bf16 %v6616_v18, %v6625_v22 }
 0x134   : > { %v1863_v23 = vsel %vm1859_vm14, %v1848_v34, %v6993_v12  ;;  %v1862_v7 = vsel %vm1859_vm14, %v1846_v56, %v1848_v34  ;;  %v4965_v56 = vpack.c.bf16 %v508_v49, %v447_v25 }
 0x135   : > { %2229 = vmatprep.subr.mxu1 %v1863_v23  ;;  %4912 = vmatprep.subr.bf16.mxu0 %v4911_v0 }
 0x136   : > { %2230 = vmatpush1.msra.mxu1 %v1862_v7  ;;  %4914 = vmatpush1.bf16.msra.mxu0 %v8129_v31 }
 0x137   : > { %v500_v46 = vpop.permute.xlu1 %499  ;;  %v439_v55 = vpop.permute.xlu0 %438  ;;  %4960 = vmatprep.subr.bf16.mxu1 %v4959_v51  ;;  %2242 = vmatmul.mubr.f32.vlgmr.msra.gmra.mrb[0].mxu1 %v6978_v42 }
 0x138   : > { %v509_v8 = vsel %vm501_vm3, %v5609_v9, %v500_v46  ;;  %v448_v5 = vsel %vm440_vm2, %v5604_v50, %v439_v55  ;;  %4962 = vmatpush1.bf16.msra.mxu1 %v4961_v48  ;;  %4795 = vmatprep.mubr.msk.f32.mxu1 %vm8075_vm6, %v6259_v36  ;;  %v8131_v50 = vunpack.i.h.bf16 %v6602_v11 }
 0x139   : > { %v4963_v39 = vpack.c.bf16 %v509_v8, %v448_v5 }
 0x13b   : > { %v5617_v0 = vpop.permute.xlu1 %5616  ;;  %v5612_v2 = vpop.permute.xlu0 %5611  ;;  %4964 = vmatprep.subr.bf16.mxu1 %v4963_v39  ;;  %v8133_v39 = vunpack.i.h.bf16 %v6641_v60  ;;  %v8135_v60 = vpack.c.bf16 %v6656_v14, %v6665_v20 }
 0x13c   : > { %v5619_v52 = vunpack.i.h.bf16 %v5617_v0  ;;  %v5618_v47 = vunpack.i.l.bf16 %v5617_v0  ;;  %v5614_v3 = vunpack.i.h.bf16 %v5612_v2  ;;  %v5613_v43 = vunpack.i.l.bf16 %v5612_v2  ;;  %4966 = vmatpush1.bf16.msra.mxu1 %v4965_v56 }
 0x13e   : > { %v629_v6 = vsel %vm623_vm5, %v8130_v58, %v5618_v47  ;;  %v568_v34 = vsel %vm562_vm4, %v8131_v50, %v5613_v43  ;;  %v630_v23 = vsel %vm623_vm5, %v5618_v47, %v5619_v52  ;;  %v569_v7 = vsel %vm562_vm4, %v5613_v43, %v5614_v3 }
 0x13f   : > { %v622_v9 = vpop.permute.xlu1 %621  ;;  %v561_v51 = vpop.permute.xlu0 %560  ;;  %v4915_v31 = vpack.c.bf16 %v629_v6, %v568_v34  ;;  %v4969_v11 = vpack.c.bf16 %v630_v23, %v569_v7 }
 0x140   : > { %v631_v61 = vsel %vm623_vm5, %v5619_v52, %v622_v9  ;;  %v570_v46 = vsel %vm562_vm4, %v5614_v3, %v561_v51  ;;  %v8134_v52 = vunpack.i.h.bf16 %v6646_v28  ;;  %v8136_v51 = vunpack.i.h.bf16 %v6681_v63 }
 0x141   : > { %v4967_v48 = vpack.c.bf16 %v631_v61, %v570_v46  ;;  %4916 = vmatprep.subr.bf16.mxu0 %v4915_v31  ;;  %v8138_v63 = vpack.c.bf16 %v6696_v35, %v6705_v40 }
 0x142   : > { %4918 = vmatpush1.bf16.msra.mxu0 %v8132_v4 }
 0x143   : > { %v5627_v49 = vpop.permute.xlu1 %5626  ;;  %v5622_v55 = vpop.permute.xlu0 %5621  ;;  %4968 = vmatprep.subr.bf16.mxu1 %v4967_v48  ;;  %v8137_v48 = vunpack.i.h.bf16 %v6686_v15 }
 0x144   : > { %v5629_v25 = vunpack.i.h.bf16 %v5627_v49  ;;  %v5628_v8 = vunpack.i.l.bf16 %v5627_v49  ;;  %v5624_v5 = vunpack.i.h.bf16 %v5622_v55  ;;  %v5623_v36 = vunpack.i.l.bf16 %v5622_v55  ;;  %4970 = vmatpush1.bf16.msra.mxu1 %v4969_v11 }
 0x146   : > { %v751_v0 = vsel %vm8072_vm8, %v8133_v39, %v5628_v8  ;;  %v690_v47 = vsel %vm8074_vm7, %v8134_v52, %v5623_v36  ;;  %v752_v18 = vsel %vm8072_vm8, %v5628_v8, %v5629_v25  ;;  %v691_v22 = vsel %vm8074_vm7, %v5623_v36, %v5624_v5 }
 0x147   : > { %v744_v56 = vpop.permute.xlu1 %743  ;;  %v683_v3 = vpop.permute.xlu0 %682  ;;  %v4919_v43 = vpack.c.bf16 %v751_v0, %v690_v47  ;;  %v4973_v28 = vpack.c.bf16 %v752_v18, %v691_v22  ;;  %v8139_v47 = vunpack.i.h.bf16 %v6721_v44 }
 0x148   : > { %v753_v2 = vsel %vm8072_vm8, %v5629_v25, %v744_v56  ;;  %v692_v58 = vsel %vm8074_vm7, %v5624_v5, %v683_v3 }
 0x149   : > { %v4971_v6 = vpack.c.bf16 %v753_v2, %v692_v58  ;;  %4920 = vmatprep.subr.bf16.mxu0 %v4919_v43  ;;  %v8140_v2 = vunpack.i.h.bf16 %v6726_v59 }
 0x14a   : > { %4922 = vmatpush1.bf16.msra.mxu0 %v8135_v60 }
 0x14b   : > { %v5637_v9 = vpop.permute.xlu1 %5636  ;;  %v5632_v23 = vpop.permute.xlu0 %5631  ;;  %4972 = vmatprep.subr.bf16.mxu1 %v4971_v6 }
 0x14c   : > { %v5639_v50 = vunpack.i.h.bf16 %v5637_v9  ;;  %v5638_v34 = vunpack.i.l.bf16 %v5637_v9  ;;  %v5634_v7 = vunpack.i.h.bf16 %v5632_v23  ;;  %v5633_v61 = vunpack.i.l.bf16 %v5632_v23  ;;  %4974 = vmatpush1.bf16.msra.mxu1 %v4973_v28 }
 0x14d   : > { %v5449_v9 = vunpack.i.h.bf16 %v6758_v29  ;;  %v8144_v28 = vpack.c.bf16 %v6736_v57, %v6745_v45 }
 0x14e   : > { %v873_v31 = vsel %vm8070_vm10, %v8136_v51, %v5638_v34  ;;  %v812_v4 = vsel %vm8071_vm9, %v8137_v48, %v5633_v61  ;;  %v874_v14 = vsel %vm8070_vm10, %v5638_v34, %v5639_v50  ;;  %v813_v20 = vsel %vm8071_vm9, %v5633_v61, %v5634_v7 }
 0x14f   : > { %v866_v46 = vpop.permute.xlu1 %865  ;;  %v805_v11 = vpop.permute.xlu0 %804  ;;  %v4923_v25 = vpack.c.bf16 %v873_v31, %v812_v4  ;;  %v4977_v15 = vpack.c.bf16 %v874_v14, %v813_v20  ;;  %v8145_v61 = vunpack.i.l.bf16 %v6758_v29 }
 0x150   : > { %v875_v49 = vsel %vm8070_vm10, %v5639_v50, %v866_v46  ;;  %v814_v8 = vsel %vm8071_vm9, %v5634_v7, %v805_v11  ;;  %vm8141_vm10 = vcmask 80896  }
 0x151   : > { %v4975_v55 = vpack.c.bf16 %v875_v49, %v814_v8  ;;  %4924 = vmatprep.subr.bf16.mxu0 %v4923_v25  ;;  %vm8142_vm9 = vmmov %vm8141_vm10 }
 0x152   : > { %4926 = vmatpush1.bf16.msra.mxu0 %v8138_v63  ;;  %vm8143_vm8 = vmmov %vm8142_vm9 }
 0x153   : > { %v5647_v5 = vpop.permute.xlu1 %5646  ;;  %v5642_v0 = vpop.permute.xlu0 %5641  ;;  %4976 = vmatprep.subr.bf16.mxu1 %v4975_v55  ;;  %v8150_v55 = vunpack.i.h.bf16 %v6793_v16 }
 0x154   : > { %v5649_v36 = vunpack.i.h.bf16 %v5647_v5  ;;  %v5648_v39 = vunpack.i.l.bf16 %v5647_v5  ;;  %v5644_v56 = vunpack.i.h.bf16 %v5642_v0  ;;  %v5643_v52 = vunpack.i.l.bf16 %v5642_v0  ;;  %4978 = vmatpush1.bf16.msra.mxu1 %v4977_v15 }
 0x155   : > { %v8152_v15 = vunpack.i.h.bf16 %v6779_v19 }
 0x156   : > { %v995_v18 = vsel %vm8073_vm12, %v8139_v47, %v5648_v39  ;;  %v934_v3 = vsel %vm8141_vm10, %v8140_v2, %v5643_v52  ;;  %v996_v35 = vsel %vm8073_vm12, %v5648_v39, %v5649_v36  ;;  %v935_v40 = vsel %vm8142_vm9, %v5643_v52, %v5644_v56 }
 0x157   : > { %v988_v22 = vpop.permute.xlu1 %987  ;;  %v927_v58 = vpop.permute.xlu0 %926  ;;  %v4927_v6 = vpack.c.bf16 %v995_v18, %v934_v3  ;;  %v4981_v50 = vpack.c.bf16 %v996_v35, %v935_v40  ;;  %vm8146_vm9 = vcmask 7168   ;;  %v8159_v35 = vunpack.i.h.bf16 %v6835_v13 }
 0x158   : > { %v997_v43 = vsel %vm8073_vm12, %v5649_v36, %v988_v22  ;;  %v936_v60 = vsel %vm8143_vm8, %v5644_v56, %v927_v58  ;;  %v1055_v51 = vsel %vm8146_vm9, %v8145_v61, %v5449_v9  ;;  %vm8147_vm8 = vmmov %vm8146_vm9  ;;  %vm8151_vm9 = vcmask 973824  }
 0x159   : > { %v4979_v44 = vpack.c.bf16 %v997_v43, %v936_v60  ;;  %4928 = vmatprep.subr.bf16.mxu0 %v4927_v6  ;;  %vm8148_vm10 = vmmov %vm8147_vm8  ;;  %v4933_v29 = vpack.c.bf16 %v6374_v17, %v1055_v51  ;;  %v8158_v56 = vpack.c.bf16 %v6813_v32, %v6802_v54  ;;  %v8161_v58 = vunpack.i.h.bf16 %v6825_v30 }
 0x15a   : > { %4930 = vmatpush1.bf16.msra.mxu0 %v8144_v28  ;;  %vm8149_vm12 = vmmov %vm8147_vm8  ;;  %v8167_v13 = vpack.c.bf16 %v6853_v41, %v6844_v10 }
 0x15b   : > { %v1049_v59 = vpop.permute.xlu1 %1048  ;;  %v5652_v34 = vpop.permute.xlu0 %5651  ;;  %4980 = vmatprep.subr.bf16.mxu1 %v4979_v44 }
 0x15c   : > { %v5654_v23 = vunpack.i.h.bf16 %v5652_v34  ;;  %v5653_v7 = vunpack.i.l.bf16 %v5652_v34  ;;  %4982 = vmatpush1.bf16.msra.mxu1 %v4981_v50 }
 0x15e   : > { %v1057_v31 = vsel %vm8147_vm8, %v5653_v7, %v5654_v23  ;;  %v1056_v48 = vsel %vm8148_vm10, %v5449_v9, %v5653_v7  ;;  %v1058_v4 = vsel %vm8149_vm12, %v5654_v23, %v1049_v59  ;;  %vm8153_vm12 = vcmask 1039360   ;;  %vm8154_vm8 = vmmov %vm8151_vm9 }
 0x15f   : > { %v5662_v46 = vpop.permute.xlu1 %5661  ;;  %v5657_v14 = vpop.permute.xlu0 %5656  ;;  %v4931_v20 = vpack.c.bf16 %v6388_v21, %v1056_v48  ;;  %v4983_v49 = vpack.c.bf16 %v6415_v27, %v1058_v4  ;;  %v4985_v8 = vpack.c.bf16 %v6400_v24, %v1057_v31  ;;  %vm8155_vm10 = vmmov %vm8153_vm12 }
 0x160   : > { %v5664_v57 = vunpack.i.h.bf16 %v5662_v46  ;;  %v5663_v45 = vunpack.i.l.bf16 %v5662_v46  ;;  %v5659_v11 = vunpack.i.h.bf16 %v5657_v14  ;;  %v5658_v25 = vunpack.i.l.bf16 %v5657_v14  ;;  %vm8156_vm7 = vmmov %vm8154_vm8 }
 0x161   : > { %4932 = vmatprep.subr.bf16.mxu0 %v4931_v20  ;;  %4984 = vmatprep.subr.bf16.mxu1 %v4983_v49  ;;  %vm8157_vm6 = vmmov %vm8155_vm10 }
 0x162   : > { %v1194_v63 = vsel %vm8151_vm9, %v8150_v55, %v5663_v45  ;;  %4934 = vmatpush1.bf16.msra.mxu0 %v4933_v29  ;;  %4986 = vmatpush1.bf16.msra.mxu1 %v4985_v8  ;;  %v1133_v21 = vsel %vm8153_vm12, %v8152_v15, %v5658_v25  ;;  %v1195_v27 = vsel %vm8154_vm8, %v5663_v45, %v5664_v57 }
 0x163   : > { %v1187_v5 = vpop.permute.xlu1 %1186  ;;  %v1134_v36 = vsel %vm8155_vm10, %v5658_v25, %v5659_v11  ;;  %v1126_v24 = vpop.permute.xlu0 %1125  ;;  %v4935_v39 = vpack.c.bf16 %v1194_v63, %v1133_v21 }
 0x164   : > { %v1196_v17 = vsel %vm8156_vm7, %v5664_v57, %v1187_v5  ;;  %v1135_v0 = vsel %vm8157_vm6, %v5659_v11, %v1126_v24  ;;  %v4989_v19 = vpack.c.bf16 %v1195_v27, %v1134_v36  ;;  %vm8160_vm7 = vcmask 957440  }
 0x165   : > { %v4987_v16 = vpack.c.bf16 %v1196_v17, %v1135_v0  ;;  %4936 = vmatprep.subr.bf16.mxu0 %v4935_v39  ;;  %vm8162_vm6 = vcmask 965632   ;;  %vm8163_vm9 = vmmov %vm8160_vm7 }
 0x166   : > { %4938 = vmatpush1.bf16.msra.mxu0 %v8158_v56  ;;  %vm8164_vm12 = vmmov %vm8162_vm6 }
 0x167   : > { %v5672_v52 = vpop.permute.xlu1 %5671  ;;  %v5667_v22 = vpop.permute.xlu0 %5666  ;;  %4988 = vmatprep.subr.bf16.mxu1 %v4987_v16  ;;  %vm8165_vm8 = vmmov %vm8160_vm7 }
 0x168   : > { %v5674_v47 = vunpack.i.h.bf16 %v5672_v52  ;;  %v5673_v18 = vunpack.i.l.bf16 %v5672_v52  ;;  %v5669_v2 = vunpack.i.h.bf16 %v5667_v22  ;;  %v5668_v3 = vunpack.i.l.bf16 %v5667_v22  ;;  %4990 = vmatpush1.bf16.msra.mxu1 %v4989_v19  ;;  %vm8166_vm10 = vmmov %vm8162_vm6 }
 0x16a   : > { %v1316_v40 = vsel %vm8160_vm7, %v8159_v35, %v5673_v18  ;;  %v1255_v6 = vsel %vm8162_vm6, %v8161_v58, %v5668_v3  ;;  %v1317_v54 = vsel %vm8163_vm9, %v5673_v18, %v5674_v47  ;;  %v1256_v32 = vsel %vm8164_vm12, %v5668_v3, %v5669_v2 }
 0x16b   : > { %v1309_v43 = vpop.permute.xlu1 %1308  ;;  %v1248_v9 = vpop.permute.xlu0 %1247  ;;  %v4939_v44 = vpack.c.bf16 %v1316_v40, %v1255_v6  ;;  %v4993_v30 = vpack.c.bf16 %v1317_v54, %v1256_v32  ;;  %vm8168_vm7 = vcmask 310272   ;;  %vm8170_vm9 = vcmask 318464  }
 0x16c   : > { %v1318_v60 = vsel %vm8165_vm8, %v5674_v47, %v1309_v43  ;;  %v1257_v28 = vsel %vm8166_vm10, %v5669_v2, %v1248_v9  ;;  %vm8169_vm6 = vmmov %vm8168_vm7 }
 0x16d   : > { %v4991_v59 = vpack.c.bf16 %v1318_v60, %v1257_v28  ;;  %4940 = vmatprep.subr.bf16.mxu0 %v4939_v44  ;;  %vm8171_vm12 = vmmov %vm8170_vm9 }
 0x16e   : > { %4942 = vmatpush1.bf16.msra.mxu0 %v8167_v13  ;;  %vm8172_vm8 = vmmov %vm8169_vm6 }
 0x16f   : > { %v5682_v50 = vpop.permute.xlu1 %5681  ;;  %v5677_v7 = vpop.permute.xlu0 %5676  ;;  %4992 = vmatprep.subr.bf16.mxu1 %v4991_v59  ;;  %vm8173_vm10 = vmmov %vm8169_vm6 }
 0x170   : > { %v5684_v34 = vunpack.i.h.bf16 %v5682_v50  ;;  %v5683_v23 = vunpack.i.l.bf16 %v5682_v50  ;;  %v5679_v61 = vunpack.i.h.bf16 %v5677_v7  ;;  %v5678_v51 = vunpack.i.l.bf16 %v5677_v7  ;;  %4994 = vmatpush1.bf16.msra.mxu1 %v4993_v30 }
 0x172   : > { %v1437_v31 = vsel %vm8168_vm7, %v6871_v62, %v5683_v23  ;;  %v1438_v46 = vsel %vm8169_vm6, %v5683_v23, %v5684_v34  ;;  %v1376_v48 = vsel %vm8170_vm9, %v6861_v33, %v5678_v51  ;;  %v1377_v10 = vsel %vm8171_vm12, %v5678_v51, %v5679_v61  ;;  %vm8174_vm7 = vmmov %vm8170_vm9 }
 0x173   : > { %v5692_v4 = vpop.permute.xlu1 %5691  ;;  %v5687_v45 = vpop.permute.xlu0 %5686  ;;  %v4943_v14 = vpack.c.bf16 %v1438_v46, %v1377_v10  ;;  %v4945_v20 = vpack.c.bf16 %v1437_v31, %v1376_v48  ;;  %vm8175_vm6 = vmmov %vm8174_vm7  ;;  %vm8176_vm9 = vcmask 236544  }
 0x174   : > { %v5694_v41 = vunpack.i.h.bf16 %v5692_v4  ;;  %v5693_v57 = vunpack.i.l.bf16 %v5692_v4  ;;  %v5689_v49 = vunpack.i.h.bf16 %v5687_v45  ;;  %v5688_v11 = vunpack.i.l.bf16 %v5687_v45  ;;  %vm8177_vm12 = vmmov %vm8176_vm9 }
 0x175   : > { %4944 = vmatprep.subr.bf16.mxu0 %v4943_v14 }
 0x176   : > { %v1439_v25 = vsel %vm8172_vm8, %v5684_v34, %v5693_v57  ;;  %v1440_v62 = vsel %vm8173_vm10, %v5693_v57, %v5694_v41  ;;  %v1378_v29 = vsel %vm8174_vm7, %v5679_v61, %v5688_v11  ;;  %4946 = vmatpush1.bf16.msra.mxu0 %v4945_v20  ;;  %v1379_v33 = vsel %vm8175_vm6, %v5688_v11, %v5689_v49  ;;  %vm8180_vm7 = vmmov %vm8176_vm9 }
 0x177   : > { %v5702_v8 = vpop.permute.xlu1 %5701  ;;  %v5697_v5 = vpop.permute.xlu0 %5696  ;;  %v4995_v15 = vpack.c.bf16 %v1440_v62, %v1379_v33  ;;  %v4997_v21 = vpack.c.bf16 %v1439_v25, %v1378_v29  ;;  %vm8178_vm8 = vcmask 302080   ;;  %vm8181_vm6 = vmmov %vm8180_vm7  ;;  %v8188_v62 = vld [vmem:[#allocation5_spill] sm:$0xff] }
 0x178   : > { %v5704_v55 = vunpack.i.h.bf16 %v5702_v8  ;;  %v5703_v63 = vunpack.i.l.bf16 %v5702_v8  ;;  %v5699_v27 = vunpack.i.h.bf16 %v5697_v5  ;;  %v5698_v36 = vunpack.i.l.bf16 %v5697_v5  ;;  %vm8179_vm10 = vmmov %vm8178_vm8 }
 0x179   : > { %4996 = vmatprep.subr.bf16.mxu1 %v4995_v15 }
 0x17a   : > { %v1559_v17 = vsel %vm8176_vm9, %v6901_v26, %v5703_v63  ;;  %v1560_v24 = vsel %vm8177_vm12, %v5703_v63, %v5704_v55  ;;  %v1498_v39 = vsel %vm8178_vm8, %v6891_v38, %v5698_v36  ;;  %4998 = vmatpush1.bf16.msra.mxu1 %v4997_v21  ;;  %v1499_v16 = vsel %vm8179_vm10, %v5698_v36, %v5699_v27  ;;  %vm8182_vm9 = vmmov %vm8178_vm8 }
 0x17b   : > { %v5712_v0 = vpop.permute.xlu1 %5711  ;;  %v5707_v19 = vpop.permute.xlu0 %5706  ;;  %v4947_v47 = vpack.c.bf16 %v1560_v24, %v1499_v16  ;;  %v4949_v18 = vpack.c.bf16 %v1559_v17, %v1498_v39  ;;  %vm8183_vm12 = vmmov %vm8178_vm8  ;;  %vm8184_vm8 = vcmask 228352  }
 0x17c   : > { %v5714_v56 = vunpack.i.h.bf16 %v5712_v0  ;;  %v5713_v52 = vunpack.i.l.bf16 %v5712_v0  ;;  %v5709_v22 = vunpack.i.h.bf16 %v5707_v19  ;;  %v5708_v2 = vunpack.i.l.bf16 %v5707_v19  ;;  %vm8185_vm10 = vmmov %vm8184_vm8 }
 0x17d   : > { %4948 = vmatprep.subr.bf16.mxu0 %v4947_v47 }
 0x17e   : > { %v1561_v3 = vsel %vm8180_vm7, %v5704_v55, %v5713_v52  ;;  %v1562_v26 = vsel %vm8181_vm6, %v5713_v52, %v5714_v56  ;;  %v1500_v35 = vsel %vm8182_vm9, %v5699_v27, %v5708_v2  ;;  %4950 = vmatpush1.bf16.msra.mxu0 %v4949_v18  ;;  %v1501_v40 = vsel %vm8183_vm12, %v5708_v2, %v5709_v22  ;;  %vm8186_vm7 = vmmov %vm8184_vm8 }
 0x17f   : > { %v5722_v38 = vpop.permute.xlu1 %5721  ;;  %v5717_v6 = vpop.permute.xlu0 %5716  ;;  %v4999_v54 = vpack.c.bf16 %v1562_v26, %v1501_v40  ;;  %v5001_v32 = vpack.c.bf16 %v1561_v3, %v1500_v35  ;;  %vm8187_vm6 = vmmov %vm8186_vm7  ;;  %v2391_v26 = vlaneseq }
 0x180   : > { %v5724_v43 = vunpack.i.h.bf16 %v5722_v38  ;;  %v5723_v58 = vunpack.i.l.bf16 %v5722_v38  ;;  %v5719_v60 = vunpack.i.h.bf16 %v5717_v6  ;;  %v5718_v9 = vunpack.i.l.bf16 %v5717_v6 }
 0x181   : > { %5000 = vmatprep.subr.bf16.mxu1 %v4999_v54  ;;  %v2392_v35 = vshrl.u32 %v2391_v26, 7 }
 0x182   : > { %v1681_v44 = vsel %vm1676_vm11, %v6927_v53, %v5723_v58  ;;  %v1682_v28 = vsel %vm1676_vm11, %v5723_v58, %v5724_v43  ;;  %v1620_v59 = vsel %vm8184_vm8, %v6917_v1, %v5718_v9  ;;  %5002 = vmatpush1.bf16.msra.mxu1 %v5001_v32  ;;  %v1621_v50 = vsel %vm8185_vm10, %v5718_v9, %v5719_v60 }
 0x183   : > { %v5732_v13 = vpop.permute.xlu1 %5731  ;;  %v5727_v23 = vpop.permute.xlu0 %5726  ;;  %v4951_v7 = vpack.c.bf16 %v1682_v28, %v1621_v50  ;;  %v4953_v61 = vpack.c.bf16 %v1681_v44, %v1620_v59  ;;  %v2393_v38 = vsub.s32 0, %v2392_v35  ;;  %v2397_v40 = vsub.s32 1, %v2392_v35 }
 0x184   : > { %v5734_v30 = vunpack.i.h.bf16 %v5732_v13  ;;  %v5733_v34 = vunpack.i.l.bf16 %v5732_v13  ;;  %v5729_v51 = vunpack.i.h.bf16 %v5727_v23  ;;  %v5728_v31 = vunpack.i.l.bf16 %v5727_v23 }
 0x185   : > { %4952 = vmatprep.subr.bf16.mxu0 %v4951_v7  ;;  %v2405_v44 = vsub.s32 3, %v2392_v35 }
 0x186   : > { %v1683_v46 = vsel %vm1676_vm11, %v5724_v43, %v5733_v34  ;;  %v1684_v53 = vsel %vm1676_vm11, %v5733_v34, %v5734_v30  ;;  %v1622_v48 = vsel %vm8186_vm7, %v5719_v60, %v5728_v31  ;;  %4954 = vmatpush1.bf16.msra.mxu0 %v4953_v61  ;;  %v1623_v4 = vsel %vm8187_vm6, %v5728_v31, %v5729_v51 }
 0x187   : > { %v5742_v1 = vpop.permute.xlu1 %5741  ;;  %v5737_v57 = vpop.permute.xlu0 %5736  ;;  %v5003_v45 = vpack.c.bf16 %v1684_v53, %v1623_v4  ;;  %v5005_v14 = vpack.c.bf16 %v1683_v46, %v1622_v48  ;;  %v2409_v61 = vsub.s32 4, %v2392_v35  ;;  %v2413_v51 = vsub.s32 5, %v2392_v35 }
 0x188   : > { %v5744_v10 = vunpack.i.h.bf16 %v5742_v1  ;;  %v5743_v41 = vunpack.i.l.bf16 %v5742_v1  ;;  %v5739_v20 = vunpack.i.h.bf16 %v5737_v57  ;;  %v5738_v49 = vunpack.i.l.bf16 %v5737_v57 }
 0x189   : > { %5004 = vmatprep.subr.bf16.mxu1 %v5003_v45  ;;  %v2417_v46 = vsub.s32 6, %v2392_v35  ;;  %v2421_v48 = vsub.s32 7, %v2392_v35 }
 0x18a   : > { %v1803_v11 = vsel %vm1798_vm13, %v6953_v37, %v5743_v41  ;;  %v1804_v25 = vsel %vm1798_vm13, %v5743_v41, %v5744_v10  ;;  %v1742_v29 = vsel %vm1737_vm15, %v8188_v62, %v5738_v49  ;;  %5006 = vmatpush1.bf16.msra.mxu1 %v5005_v14  ;;  %v1743_v33 = vsel %vm1737_vm15, %v5738_v49, %v5739_v20 }
 0x18b   : > { %v5752_v8 = vpop.permute.xlu1 %5751  ;;  %v5747_v5 = vpop.permute.xlu0 %5746  ;;  %v4955_v15 = vpack.c.bf16 %v1804_v25, %v1743_v33  ;;  %v4957_v21 = vpack.c.bf16 %v1803_v11, %v1742_v29  ;;  %v8197_v33 = vmov 0.0  }
 0x18c   : > { %v5754_v55 = vunpack.i.h.bf16 %v5752_v8  ;;  %v5753_v63 = vunpack.i.l.bf16 %v5752_v8  ;;  %v5749_v27 = vunpack.i.h.bf16 %v5747_v5  ;;  %v5748_v36 = vunpack.i.l.bf16 %v5747_v5 }
 0x18d   : > { %4956 = vmatprep.subr.bf16.mxu0 %v4955_v15 }
 0x18e   : > { %v1805_v17 = vsel %vm1798_vm13, %v5744_v10, %v5753_v63  ;;  %v1806_v37 = vsel %vm1798_vm13, %v5753_v63, %v5754_v55  ;;  %v1744_v24 = vsel %vm1737_vm15, %v5739_v20, %v5748_v36  ;;  %4958 = vmatpush1.bf16.msra.mxu0 %v4957_v21  ;;  %v1745_v0 = vsel %vm1737_vm15, %v5748_v36, %v5749_v27 }
 0x18f   : > { %v1854_v39 = vpop.permute.xlu1 %1853  ;;  %v1852_v16 = vpop.permute.xlu0 %1851  ;;  %v5007_v56 = vpack.c.bf16 %v1806_v37, %v1745_v0  ;;  %v5009_v52 = vpack.c.bf16 %v1805_v17, %v1744_v24 }
 0x190   : > { %v1865_v19 = vsel %vm1859_vm14, %v1852_v16, %v1854_v39  ;;  %v1864_v47 = vsel %vm1859_vm14, %v6993_v12, %v1852_v16  ;;  %v281_v12 = vld [vmem:[%s8019_s4] sm:$0xff] }
 0x191   : > { %2300 = vmatprep.subr.mxu0 %v1865_v19  ;;  %5008 = vmatprep.subr.bf16.mxu1 %v5007_v56  ;;  %v7154_v43 = vrot.slane %v281_v12, %v2393_v38  ;;  %v7156_v58 = vrot.slane %v281_v12, %v2397_v40  ;;  %v7162_v59 = vrot.slane %v281_v12, %v2405_v44 }
 0x192   : > { %2301 = vmatpush1.msra.mxu0 %v1864_v47  ;;  %5010 = vmatpush1.bf16.msra.mxu1 %v5009_v52  ;;  %v7166_v31 = vrot.slane %v281_v12, %v2409_v61  ;;  %v7168_v53 = vrot.slane %v281_v12, %v2413_v51  ;;  %v7171_v41 = vrot.slane %v281_v12, %v2417_v46 }
 0x193   : > { %v1858_v18 = vpop.permute.xlu1 %1857  ;;  %v1856_v22 = vpop.permute.xlu0 %1855  ;;  %2313 = vmatmul.mubr.f32.vlgmr.msra.gmra.mrb[2].mxu0 %v6978_v42  ;;  %8189 = vst [vmem:[#allocation5_spill] sm:$0xff] %v7154_v43  ;;  %8190 = vst [vmem:[#allocation6_spill] sm:$0xff] %v7156_v58  ;;  %v7174_v45 = vrot.slane %v281_v12, %v2421_v48 }
 0x194   : > { %v1867_v2 = vsel %vm1859_vm14, %v1856_v22, %v1858_v18  ;;  %v1866_v3 = vsel %vm1859_vm14, %v1854_v39, %v1856_v22  ;;  %8192 = vst [vmem:[#allocation8_spill] sm:$0xff] %v7162_v59  ;;  %8193 = vst [vmem:[#allocation9_spill] sm:$0xff] %v7166_v31 }
 0x195   : > { %2371 = vmatprep.subr.mxu1 %v1867_v2  ;;  %8194 = vst [vmem:[#allocation10_spill] sm:$0xff] %v7168_v53  ;;  %8195 = vst [vmem:[#allocation11_spill] sm:$0xff] %v7171_v41 }
 0x196   : > { %2372 = vmatpush1.msra.mxu1 %v1866_v3  ;;  %8196 = vst [vmem:[#allocation12_spill] sm:$0xff] %v7174_v45 }
 0x197   : > { %2384 = vmatmul.mubr.f32.vlgmr.msra.gmra.mrb[2].mxu1 %v6978_v42  ;;  %v2401_v42 = vsub.s32 2, %v2392_v35 }
 0x199   : > { %v7160_v28 = vrot.slane %v281_v12, %v2401_v42 }
 0x19b   : > { %8191 = vst [vmem:[#allocation7_spill] sm:$0xff] %v7160_v28 }
 0x1fe   : > { %v2172_v6 = vpop.f32.mrb[0].mxu0 }
 0x1ff   : > { %v2431_v54 = vmul.f32 %v7154_v43, %v2172_v6  ;;  %v2174_v32 = vpop.f32.mrb[1].mxu0 }
 0x200   : > { %v2432_v60 = vmul.f32 %v7156_v58, %v2174_v32 }
 0x202   : > { %v2439_v9 = vadd.f32 %v2432_v60, %v2431_v54 }
 0x20a   : > { %v2243_v13 = vpop.f32.mrb[0].mxu1 }
 0x20b   : > { %v2433_v50 = vmul.f32 %v7160_v28, %v2243_v13  ;;  %v2245_v30 = vpop.f32.mrb[1].mxu1 }
 0x20c   : > { %v2434_v34 = vmul.f32 %v7162_v59, %v2245_v30 }
 0x20d   : > { %v2440_v23 = vadd.f32 %v2439_v9, %v2433_v50 }
 0x20f   : > { %v2441_v7 = vadd.f32 %v2440_v23, %v2434_v34 }
 0x266   : > { %v2314_v1 = vpop.f32.mrb[2].mxu0 }
 0x267   : > { %v2435_v4 = vmul.f32 %v7166_v31, %v2314_v1  ;;  %v2316_v10 = vpop.f32.mrb[3].mxu0 }
 0x268   : > { %v2436_v57 = vmul.f32 %v7168_v53, %v2316_v10 }
 0x269   : > { %v2442_v14 = vadd.f32 %v2441_v7, %v2435_v4 }
 0x26a   : > { %v2385_v20 = vpop.f32.mrb[2].mxu1 }
 0x26b   : > { %v2443_v49 = vadd.f32 %v2442_v14, %v2436_v57  ;;  %v2437_v11 = vmul.f32 %v7171_v41, %v2385_v20  ;;  %v2387_v25 = vpop.f32.mrb[3].mxu1 }
 0x26c   : > { %v2438_v62 = vmul.f32 %v7174_v45, %v2387_v25 }
 0x26d   : > { %v2444_v29 = vadd.f32 %v2443_v49, %v2437_v11 }
 0x26f   : > { %v2445_v8 = vadd.f32 %v2444_v29, %v2438_v62 }
 0x271   : > { %2446 = vadd.xlane.f32.xlu0 %v2445_v8 }
 0x287   : > { %3363 = vrot.lane.b32.xlu0 %v8197_v33, %s8076_s15 }
 0x28b   : > { %3483 = vrot.lane.b32.xlu0 %v8197_v33, %s8077_s17 }
 0x2fe   : > { %v2447_v55 = vpop.xlane.xlu0 %2446 }
 0x2ff   : > { %v2448_v63 = vmul.f32 0.001953125, %v2447_v55 }
 0x301   : > { %v2449_v5 = vsub.f32 %v2172_v6, %v2448_v63  ;;  %v2450_v15 = vsub.f32 %v2174_v32, %v2448_v63  ;;  %v2451_v21 = vsub.f32 %v2243_v13, %v2448_v63  ;;  %v2452_v27 = vsub.f32 %v2245_v30, %v2448_v63  ;;  %v7199_v13 = vpop.permute.xlu1 %3423 }
 0x302   : > { %v2453_v36 = vsub.f32 %v2314_v1, %v2448_v63  ;;  %v7185_v39 = vsub.f32 %v2316_v10, %v2448_v63  ;;  %v7188_v52 = vsub.f32 %v2385_v20, %v2448_v63  ;;  %v7191_v22 = vsub.f32 %v2387_v25, %v2448_v63 }
 0x303   : > { %v2457_v17 = vmul.f32 %v2449_v5, %v7154_v43  ;;  %v2458_v37 = vmul.f32 %v2450_v15, %v7156_v58  ;;  %v2459_v24 = vmul.f32 %v2451_v21, %v7160_v28  ;;  %v2460_v0 = vmul.f32 %v2452_v27, %v7162_v59 }
 0x304   : > { %v2461_v19 = vmul.f32 %v2453_v36, %v7166_v31  ;;  %v2462_v2 = vmul.f32 %v7185_v39, %v7168_v53  ;;  %v2463_v35 = vmul.f32 %v7188_v52, %v7171_v41  ;;  %v2464_v40 = vmul.f32 %v7191_v22, %v7174_v45 }
 0x305   : > { %v2465_v16 = vmul.f32 %v2457_v17, %v2457_v17  ;;  %v2466_v56 = vmul.f32 %v2458_v37, %v2458_v37  ;;  %v2467_v47 = vmul.f32 %v2459_v24, %v2459_v24  ;;  %v2468_v3 = vmul.f32 %v2460_v0, %v2460_v0  ;;  %v7201_v50 = vpop.permute.xlu1 %3543 }
 0x306   : > { %v2469_v38 = vmul.f32 %v2461_v19, %v2461_v19  ;;  %v2470_v6 = vmul.f32 %v2462_v2, %v2462_v2  ;;  %v2471_v32 = vmul.f32 %v2463_v35, %v2463_v35  ;;  %v2472_v9 = vmul.f32 %v2464_v40, %v2464_v40  ;;  %8198 = vst [vmem:[#allocation13_spill] sm:$0xff] %v7201_v50  ;;  %v7307_v19 = vpop.permute.xlu0 %3363 }
 0x307   : > { %v2473_v18 = vadd.f32 %v2466_v56, %v2465_v16 }
 0x309   : > { %v2474_v26 = vadd.f32 %v2473_v18, %v2467_v47 }
 0x30a   : > { %v7317_v47 = vpop.permute.xlu0 %3483 }
 0x30b   : > { %v2475_v12 = vadd.f32 %v2474_v26, %v2468_v3 }
 0x30d   : > { %v2476_v54 = vadd.f32 %v2475_v12, %v2469_v38 }
 0x30f   : > { %v2477_v60 = vadd.f32 %v2476_v54, %v2470_v6 }
 0x311   : > { %v2478_v42 = vadd.f32 %v2477_v60, %v2471_v32 }
 0x313   : > { %v2479_v44 = vadd.f32 %v2478_v42, %v2472_v9 }
 0x315   : > { %2480 = vadd.xlane.f32.xlu1 %v2479_v44 }
 0x3a2   : > { %v2481_v30 = vpop.xlane.xlu1 %2480 }
 0x3a3   : > { %v2482_v34 = vmul.f32 0.001953125, %v2481_v30 }
 0x3a5   : > { %v2483_v23 = vadd.f32 1e-05, %v2482_v34 }
 0x3a7   : > { %6255 = vrsqrt.f32 %v2483_v23 }
 0x3b1   : > { %v7203_v7 = vpop.eup %6255 }
 0x3b2   : > { %v2485_v61 = vmul.f32 %v7203_v7, %v2449_v5  ;;  %v2486_v51 = vmul.f32 %v7203_v7, %v2450_v15  ;;  %v2487_v46 = vmul.f32 %v7203_v7, %v2451_v21  ;;  %v2488_v48 = vmul.f32 %v7203_v7, %v2452_v27 }
 0x3b3   : > { %v2489_v1 = vmul.f32 %v7203_v7, %v2453_v36  ;;  %v2490_v17 = vmul.f32 %v7203_v7, %v7185_v39 }
 0x3b4   : > { %vm2493_vm9 = vcmp.ge.f32.partialorder %v2485_v61, 0.0  ;;  %vm2494_vm12 = vcmp.ge.f32.partialorder %v2486_v51, 0.0  ;;  %vm2495_vm8 = vcmp.ge.f32.partialorder %v2487_v46, 0.0  ;;  %v2501_v4 = vmul.f32 0.01, %v2485_v61 }
 0x3b5   : > { %v2502_v10 = vmul.f32 0.01, %v2486_v51  ;;  %v2503_v57 = vmul.f32 0.01, %v2487_v46  ;;  %v2504_v49 = vmul.f32 0.01, %v2488_v48 }
 0x3b6   : > { %v2509_v14 = vsel %vm2493_vm9, %v2485_v61, %v2501_v4  ;;  %v2505_v11 = vmul.f32 0.01, %v2489_v1  ;;  %vm2496_vm10 = vcmp.ge.f32.partialorder %v2488_v48, 0.0  ;;  %vm2497_vm7 = vcmp.ge.f32.partialorder %v2489_v1, 0.0 }
 0x3b7   : > { %v2510_v20 = vsel %vm2494_vm12, %v2486_v51, %v2502_v10  ;;  %v2511_v25 = vsel %vm2495_vm8, %v2487_v46, %v2503_v57  ;;  %v7211_v62 = vmul.f32 %v2509_v14, %v7154_v43  ;;  %v2512_v63 = vsel %vm2496_vm10, %v2488_v48, %v2504_v49 }
 0x3b8   : > { %v7214_v29 = vmul.f32 %v2510_v20, %v7156_v58  ;;  %v7217_v8 = vmul.f32 %v2511_v25, %v7160_v28  ;;  %v2513_v5 = vsel %vm2497_vm7, %v2489_v1, %v2505_v11  ;;  %v7224_v15 = vmul.f32 %v2512_v63, %v7162_v59 }
 0x3b9   : > { %v7227_v21 = vmul.f32 %v2513_v5, %v7166_v31  ;;  %v2506_v37 = vmul.f32 0.01, %v2490_v17  ;;  %vm2498_vm6 = vcmp.ge.f32.partialorder %v2490_v17, 0.0  ;;  %vm8203_vm12 = vcmask 719872  }
 0x3ba   : > { %v5760_v55 = vpack.i.bf16 %v7214_v29, %v7211_v62  ;;  %v5770_v27 = vpack.i.bf16 %v7217_v8, %v8197_v33  ;;  %v7273_v24 = vpack.i.bf16 %v7217_v8, %v7214_v29  ;;  %v7283_v16 = vpack.i.bf16 %v7224_v15, %v7211_v62  ;;  %vm8204_vm8 = vmmov %vm8203_vm12 }
 0x3bb   : > { %v5780_v36 = vpack.i.bf16 %v7227_v21, %v7224_v15  ;;  %v2514_v0 = vsel %vm2498_vm6, %v2490_v17, %v2506_v37  ;;  %vm8206_vm7 = vcmask 744448   ;;  %vm8207_vm6 = vcmask 736256  }
 0x3bc   : > { %5761 = vrot.lane.b32.xlu1 %v5760_v55, %s6270_s28  ;;  %5756 = vrot.lane.b32.xlu0 %v5760_v55, %s6269_s27  ;;  %v7279_v39 = vmul.f32 %v2514_v0, %v7168_v53  ;;  %v2491_v0 = vmul.f32 %v7203_v7, %v7188_v52 }
 0x3be   : > { %v5970_v56 = vpack.i.bf16 %v7279_v39, %v7227_v21  ;;  %vm2499_vm9 = vcmp.ge.f32.partialorder %v2491_v0, 0.0 }
 0x3c0   : > { %5771 = vrot.lane.b32.xlu1 %v5770_v27, %s6270_s28  ;;  %5766 = vrot.lane.b32.xlu0 %v5770_v27, %s6269_s27 }
 0x3c4   : > { %5781 = vrot.lane.b32.xlu1 %v5780_v36, %s6270_s28  ;;  %5776 = vrot.lane.b32.xlu0 %v5780_v36, %s6269_s27 }
 0x3c8   : > { %5791 = vrot.lane.b32.xlu1 %v5760_v55, %s6271_s29  ;;  %5786 = vrot.lane.b32.xlu0 %v5760_v55, %s6272_s30 }
 0x3cc   : > { %5801 = vrot.lane.b32.xlu1 %v5770_v27, %s6271_s29  ;;  %5796 = vrot.lane.b32.xlu0 %v5770_v27, %s6272_s30 }
 0x3d0   : > { %5811 = vrot.lane.b32.xlu1 %v5780_v36, %s6271_s29  ;;  %5806 = vrot.lane.b32.xlu0 %v5780_v36, %s6272_s30 }
 0x3d4   : > { %5821 = vrot.lane.b32.xlu1 %v5760_v55, %s6273_s6  ;;  %5816 = vrot.lane.b32.xlu0 %v5760_v55, %s6274_s7 }
 0x3d8   : > { %5831 = vrot.lane.b32.xlu1 %v5770_v27, %s6273_s6  ;;  %5826 = vrot.lane.b32.xlu0 %v5770_v27, %s6274_s7 }
 0x3dc   : > { %5841 = vrot.lane.b32.xlu1 %v5780_v36, %s6273_s6  ;;  %5836 = vrot.lane.b32.xlu0 %v5780_v36, %s6274_s7 }
 0x3e0   : > { %5851 = vrot.lane.b32.xlu1 %v5760_v55, %s6275_s8  ;;  %5846 = vrot.lane.b32.xlu0 %v5760_v55, %s6276_s9 }
 0x3e4   : > { %5861 = vrot.lane.b32.xlu1 %v5770_v27, %s6275_s8  ;;  %5856 = vrot.lane.b32.xlu0 %v5770_v27, %s6276_s9 }
 0x3e8   : > { %5871 = vrot.lane.b32.xlu1 %v5780_v36, %s6275_s8  ;;  %5866 = vrot.lane.b32.xlu0 %v5780_v36, %s6276_s9 }
 0x3ec   : > { %5881 = vrot.lane.b32.xlu1 %v5760_v55, %s6277_s10  ;;  %5876 = vrot.lane.b32.xlu0 %v5760_v55, %s6278_s11 }
 0x3f0   : > { %5891 = vrot.lane.b32.xlu1 %v5770_v27, %s6277_s10  ;;  %5886 = vrot.lane.b32.xlu0 %v5770_v27, %s6278_s11 }
 0x3f4   : > { %5901 = vrot.lane.b32.xlu1 %v5780_v36, %s6277_s10  ;;  %5896 = vrot.lane.b32.xlu0 %v5780_v36, %s6278_s11 }
 0x3f8   : > { %5911 = vrot.lane.b32.xlu1 %v5760_v55, %s6279_s12  ;;  %5906 = vrot.lane.b32.xlu0 %v5760_v55, %s6280_s13 }
 0x3fc   : > { %5921 = vrot.lane.b32.xlu1 %v5770_v27, %s6279_s12  ;;  %5916 = vrot.lane.b32.xlu0 %v5770_v27, %s6280_s13 }
 0x400   : > { %5931 = vrot.lane.b32.xlu1 %v5780_v36, %s6279_s12  ;;  %5926 = vrot.lane.b32.xlu0 %v5780_v36, %s6280_s13 }
 0x404   : > { %5941 = vrot.lane.b32.xlu1 %v5770_v27, %s8199_s26  ;;  %5936 = vrot.lane.b32.xlu0 %v5760_v55, %s8199_s26 }
 0x408   : > { %5951 = vrot.lane.b32.xlu1 %v7273_v24, %s8076_s15  ;;  %5946 = vrot.lane.b32.xlu0 %v5780_v36, %s8199_s26 }
 0x40c   : > { %5961 = vrot.lane.b32.xlu1 %v7283_v16, %s8076_s15  ;;  %5956 = vrot.lane.b32.xlu0 %v7273_v24, %s8079_s16 }
 0x410   : > { %5971 = vrot.lane.b32.xlu1 %v5970_v56, %s8076_s15  ;;  %5966 = vrot.lane.b32.xlu0 %v7283_v16, %s8079_s16  ;;  %s8201_s15 = smov 38  }
 0x414   : > { %5981 = vrot.lane.b32.xlu1 %v7273_v24, %s8077_s17  ;;  %5976 = vrot.lane.b32.xlu0 %v5970_v56, %s8079_s16  ;;  %s8205_s16 = smov 17  }
 0x418   : > { %5991 = vrot.lane.b32.xlu1 %v7283_v16, %s8077_s17  ;;  %5986 = vrot.lane.b32.xlu0 %v7273_v24, %s8078_s20 }
 0x41c   : > { %6001 = vrot.lane.b32.xlu1 %v5970_v56, %s8077_s17  ;;  %5996 = vrot.lane.b32.xlu0 %v7283_v16, %s8078_s20  ;;  %s8202_s17 = smov 18  }
 0x420   : > { %6011 = vrot.lane.b32.xlu1 %v7273_v24, %s8200_s23  ;;  %6006 = vrot.lane.b32.xlu0 %v5970_v56, %s8078_s20 }
 0x424   : > { %6021 = vrot.lane.b32.xlu1 %v7283_v16, %s8200_s23  ;;  %6016 = vrot.lane.b32.xlu0 %v7273_v24, %s8201_s15 }
 0x428   : > { %3595 = vrot.lane.b32.xlu1 %v7227_v21, %s8200_s23  ;;  %6026 = vrot.lane.b32.xlu0 %v7283_v16, %s8201_s15 }
 0x42c   : > { %6031 = vrot.lane.b32.xlu1 %v7273_v24, %s8120_s14  ;;  %3655 = vrot.lane.b32.xlu0 %v7227_v21, %s8201_s15 }
 0x42e   : > { %v5762_v18 = vpop.permute.xlu1 %5761  ;;  %v5757_v2 = vpop.permute.xlu0 %5756 }
 0x42f   : > { %v5764_v3 = vunpack.i.h.bf16 %v5762_v18  ;;  %v5763_v26 = vunpack.i.l.bf16 %v5762_v18  ;;  %v5759_v35 = vunpack.i.h.bf16 %v5757_v2  ;;  %v5758_v38 = vunpack.i.l.bf16 %v5757_v2 }
 0x430   : > { %6041 = vrot.lane.b32.xlu1 %v7283_v16, %s8120_s14  ;;  %6036 = vrot.lane.b32.xlu0 %v7273_v24, %s8119_s24 }
 0x431   : > { %v2570_v12 = vsel %vm318_vm1, %v5758_v38, %v5759_v35  ;;  %v2630_v40 = vsel %vm379_vm0, %v5763_v26, %v5764_v3 }
 0x432   : > { %v5772_v6 = vpop.permute.xlu1 %5771  ;;  %v5767_v54 = vpop.permute.xlu0 %5766  ;;  %v5011_v32 = vpack.c.bf16 %v2630_v40, %v2570_v12  ;;  %v2507_v40 = vmul.f32 0.01, %v2491_v0 }
 0x433   : > { %v5773_v60 = vunpack.i.l.bf16 %v5772_v6  ;;  %v5768_v9 = vunpack.i.l.bf16 %v5767_v54  ;;  %v5774_v42 = vunpack.i.h.bf16 %v5772_v6  ;;  %v5769_v44 = vunpack.i.h.bf16 %v5767_v54 }
 0x434   : > { %3715 = vrot.lane.b32.xlu1 %v7227_v21, %s8120_s14  ;;  %6046 = vrot.lane.b32.xlu0 %v7283_v16, %s8119_s24 }
 0x435   : > { %v2629_v30 = vsel %vm379_vm0, %v5773_v60, %v5763_v26  ;;  %v2569_v34 = vsel %vm318_vm1, %v5768_v9, %v5758_v38  ;;  %5012 = vmatprep.subr.bf16.mxu0 %v5011_v32  ;;  %v2631_v10 = vsel %vm379_vm0, %v5764_v3, %v5774_v42  ;;  %v2571_v57 = vsel %vm318_vm1, %v5759_v35, %v5769_v44 }
 0x436   : > { %v7335_v23 = vpop.permute.xlu1 %5781  ;;  %v7337_v61 = vpop.permute.xlu0 %5776  ;;  %v5013_v51 = vpack.c.bf16 %v2629_v30, %v2569_v34  ;;  %v5065_v56 = vpack.c.bf16 %v2631_v10, %v2571_v57 }
 0x437   : > { %v8089_v46 = vunpack.i.h.bf16 %v7335_v23  ;;  %v5783_v48 = vunpack.i.l.bf16 %v7335_v23  ;;  %v8088_v1 = vunpack.i.h.bf16 %v7337_v61  ;;  %v5778_v4 = vunpack.i.l.bf16 %v7337_v61 }
 0x438   : > { %6051 = vrot.lane.b32.xlu1 %v7273_v24, %s8122_s21  ;;  %3775 = vrot.lane.b32.xlu0 %v7227_v21, %s8119_s24 }
 0x439   : > { %v7352_v14 = vsel %vm379_vm0, %v5783_v48, %v8089_v46  ;;  %v7357_v20 = vsel %vm318_vm1, %v5778_v4, %v8088_v1  ;;  %5014 = vmatpush1.bf16.msra.mxu0 %v5013_v51  ;;  %v2572_v49 = vsel %vm318_vm1, %v5769_v44, %v5778_v4  ;;  %v2632_v11 = vsel %vm379_vm0, %v5774_v42, %v5783_v48 }
 0x43a   : > { %v5792_v25 = vpop.permute.xlu1 %5791  ;;  %v5787_v55 = vpop.permute.xlu0 %5786  ;;  %v5063_v63 = vpack.c.bf16 %v2632_v11, %v2572_v49  ;;  %v2515_v48 = vsel %vm2499_vm9, %v2491_v0, %v2507_v40  ;;  %vm8208_vm9 = vmmov %vm8207_vm6 }
 0x43b   : > { %v5794_v27 = vunpack.i.h.bf16 %v5792_v25  ;;  %v5793_v36 = vunpack.i.l.bf16 %v5792_v25  ;;  %v5789_v17 = vunpack.i.h.bf16 %v5787_v55  ;;  %v5788_v37 = vunpack.i.l.bf16 %v5787_v55 }
 0x43c   : > { %6061 = vrot.lane.b32.xlu1 %v7283_v16, %s8122_s21  ;;  %6056 = vrot.lane.b32.xlu0 %v7273_v24, %s8121_s22 }
 0x43d   : > { %5064 = vmatprep.subr.bf16.mxu1 %v5063_v63  ;;  %v2690_v18 = vsel %vm440_vm2, %v5788_v37, %v5789_v17  ;;  %v2750_v2 = vsel %vm501_vm3, %v5793_v36, %v5794_v27 }
 0x43e   : > { %5066 = vmatpush1.bf16.msra.mxu1 %v5065_v56  ;;  %v5802_v3 = vpop.permute.xlu1 %5801  ;;  %v5797_v26 = vpop.permute.xlu0 %5796  ;;  %v5015_v35 = vpack.c.bf16 %v2750_v2, %v2690_v18 }
 0x43f   : > { %v5803_v38 = vunpack.i.l.bf16 %v5802_v3  ;;  %v5798_v12 = vunpack.i.l.bf16 %v5797_v26  ;;  %v5804_v52 = vunpack.i.h.bf16 %v5802_v3  ;;  %v5799_v6 = vunpack.i.h.bf16 %v5797_v26 }
 0x440   : > { %3835 = vrot.lane.b32.xlu1 %v7227_v21, %s8122_s21  ;;  %6066 = vrot.lane.b32.xlu0 %v7283_v16, %s8121_s22  ;;  %v7412_v26 = vmul.f32 %v2515_v48, %v7171_v41 }
 0x441   : > { %v2749_v54 = vsel %vm501_vm3, %v5803_v38, %v5793_v36  ;;  %v2689_v32 = vsel %vm440_vm2, %v5798_v12, %v5788_v37  ;;  %5016 = vmatprep.subr.bf16.mxu0 %v5015_v35  ;;  %v2751_v4 = vsel %vm501_vm3, %v5794_v27, %v5804_v52  ;;  %v2691_v10 = vsel %vm440_vm2, %v5789_v17, %v5799_v6 }
 0x442   : > { %v7377_v60 = vpop.permute.xlu1 %5811  ;;  %v7379_v9 = vpop.permute.xlu0 %5806  ;;  %v5017_v42 = vpack.c.bf16 %v2749_v54, %v2689_v32  ;;  %v5069_v18 = vpack.c.bf16 %v2751_v4, %v2691_v10 }
 0x443   : > { %v8084_v44 = vunpack.i.h.bf16 %v7377_v60  ;;  %v5813_v30 = vunpack.i.l.bf16 %v7377_v60  ;;  %v8086_v34 = vunpack.i.h.bf16 %v7379_v9  ;;  %v5808_v51 = vunpack.i.l.bf16 %v7379_v9 }
 0x444   : > { %6071 = vrot.lane.b32.xlu1 %v7273_v24, %s6292_s25  ;;  %3895 = vrot.lane.b32.xlu0 %v7227_v21, %s8121_s22 }
 0x445   : > { %v7394_v57 = vsel %vm501_vm3, %v5813_v30, %v8084_v44  ;;  %v7399_v49 = vsel %vm440_vm2, %v5808_v51, %v8086_v34  ;;  %5018 = vmatpush1.bf16.msra.mxu0 %v5017_v42  ;;  %v2692_v11 = vsel %vm440_vm2, %v5799_v6, %v5808_v51  ;;  %v2752_v25 = vsel %vm501_vm3, %v5804_v52, %v5813_v30  ;;  %v7423_v42 = vld [vmem:[%s8018_s3 + $0x8] sm:$0xff] }
 0x446   : > { %v5822_v55 = vpop.permute.xlu1 %5821  ;;  %v5817_v63 = vpop.permute.xlu0 %5816  ;;  %v5067_v27 = vpack.c.bf16 %v2752_v25, %v2692_v11  ;;  %v2492_v30 = vmul.f32 %v7203_v7, %v7191_v22  ;;  %4796 = vmatprep.mubr.msk.f32.mxu0 %vm8203_vm12, %v7423_v42  ;;  %4797 = vmatprep.mubr.msk.f32.mxu1 %vm8204_vm8, %v7423_v42  ;;  %vm8209_vm12 = vmmov %vm8206_vm7 }
 0x447   : > { %v5824_v17 = vunpack.i.h.bf16 %v5822_v55  ;;  %v5823_v37 = vunpack.i.l.bf16 %v5822_v55  ;;  %v5819_v0 = vunpack.i.h.bf16 %v5817_v63  ;;  %v5818_v56 = vunpack.i.l.bf16 %v5817_v63  ;;  %vm8210_vm8 = vmmov %vm8207_vm6 }
 0x448   : > { %6081 = vrot.lane.b32.xlu1 %v7283_v16, %s6292_s25  ;;  %6076 = vrot.lane.b32.xlu0 %v7273_v24, %s8202_s17  ;;  %vm2500_vm10 = vcmp.ge.f32.partialorder %v2492_v30, 0.0 }
 0x449   : > { %5068 = vmatprep.subr.bf16.mxu1 %v5067_v27  ;;  %v2810_v2 = vsel %vm562_vm4, %v5818_v56, %v5819_v0  ;;  %v2870_v3 = vsel %vm623_vm5, %v5823_v37, %v5824_v17 }
 0x44a   : > { %5070 = vmatpush1.bf16.msra.mxu1 %v5069_v18  ;;  %v5832_v35 = vpop.permute.xlu1 %5831  ;;  %v5827_v38 = vpop.permute.xlu0 %5826  ;;  %v5019_v12 = vpack.c.bf16 %v2870_v3, %v2810_v2 }
 0x44b   : > { %v5833_v40 = vunpack.i.l.bf16 %v5832_v35  ;;  %v5828_v52 = vunpack.i.l.bf16 %v5827_v38  ;;  %v5834_v6 = vunpack.i.h.bf16 %v5832_v35  ;;  %v5829_v54 = vunpack.i.h.bf16 %v5827_v38 }
 0x44c   : > { %3955 = vrot.lane.b32.xlu1 %v7227_v21, %s6292_s25  ;;  %6086 = vrot.lane.b32.xlu0 %v7283_v16, %s8202_s17  ;;  %v7433_v16 = vpack.i.bf16 %v7412_v26, %v7279_v39 }
 0x44d   : > { %v2869_v24 = vsel %vm623_vm5, %v5833_v40, %v5823_v37  ;;  %v2809_v32 = vsel %vm562_vm4, %v5828_v52, %v5818_v56  ;;  %5020 = vmatprep.subr.bf16.mxu0 %v5019_v12  ;;  %v2871_v25 = vsel %vm623_vm5, %v5824_v17, %v5834_v6  ;;  %v2811_v55 = vsel %vm562_vm4, %v5819_v0, %v5829_v54 }
 0x44e   : > { %v7427_v51 = vpop.permute.xlu1 %5841  ;;  %v7429_v48 = vpop.permute.xlu0 %5836  ;;  %v5021_v4 = vpack.c.bf16 %v2869_v24, %v2809_v32  ;;  %v2508_v0 = vmul.f32 0.01, %v2492_v30  ;;  %v5073_v52 = vpack.c.bf16 %v2871_v25, %v2811_v55 }
 0x44f   : > { %v8081_v10 = vunpack.i.h.bf16 %v7427_v51  ;;  %v5843_v11 = vunpack.i.l.bf16 %v7427_v51  ;;  %v8083_v22 = vunpack.i.h.bf16 %v7429_v48  ;;  %v5838_v7 = vunpack.i.l.bf16 %v7429_v48 }
 0x450   : > { %6091 = vrot.lane.b32.xlu1 %v7433_v16, %s6269_s27  ;;  %4015 = vrot.lane.b32.xlu0 %v7227_v21, %s8202_s17 }
 0x451   : > { %v7452_v63 = vsel %vm623_vm5, %v5843_v11, %v8081_v10  ;;  %v7457_v27 = vsel %vm562_vm4, %v5838_v7, %v8083_v22  ;;  %5022 = vmatpush1.bf16.msra.mxu0 %v5021_v4  ;;  %v2812_v17 = vsel %vm562_vm4, %v5829_v54, %v5838_v7  ;;  %v2872_v37 = vsel %vm623_vm5, %v5834_v6, %v5843_v11 }
 0x452   : > { %v5852_v56 = vpop.permute.xlu1 %5851  ;;  %v5847_v18 = vpop.permute.xlu0 %5846  ;;  %v5071_v2 = vpack.c.bf16 %v2872_v37, %v2812_v17  ;;  %v2516_v11 = vsel %vm2500_vm10, %v2492_v30, %v2508_v0  ;;  %vm8211_vm10 = vmmov %vm8206_vm7 }
 0x453   : > { %v5854_v35 = vunpack.i.h.bf16 %v5852_v56  ;;  %v5853_v38 = vunpack.i.l.bf16 %v5852_v56  ;;  %v5849_v12 = vunpack.i.h.bf16 %v5847_v18  ;;  %v5848_v40 = vunpack.i.l.bf16 %v5847_v18 }
 0x454   : > { %4069 = vrot.lane.b32.xlu1 %v7214_v29, %s8205_s16  ;;  %6096 = vrot.lane.b32.xlu0 %v7433_v16, %s6270_s28  ;;  %v7476_v18 = vmul.f32 %v2516_v11, %v7174_v45 }
 0x455   : > { %5072 = vmatprep.subr.bf16.mxu1 %v5071_v2  ;;  %v2930_v6 = vsel %vm8206_vm7, %v5848_v40, %v5849_v12  ;;  %v2990_v54 = vsel %vm8207_vm6, %v5853_v38, %v5854_v35  ;;  %vm8212_vm7 = vmmov %vm8207_vm6 }
 0x456   : > { %5074 = vmatpush1.bf16.msra.mxu1 %v5073_v52  ;;  %v5862_v24 = vpop.permute.xlu1 %5861  ;;  %v5857_v32 = vpop.permute.xlu0 %5856  ;;  %v5023_v4 = vpack.c.bf16 %v2990_v54, %v2930_v6  ;;  %vm8213_vm6 = vmmov %vm8211_vm10 }
 0x457   : > { %v5863_v7 = vunpack.i.l.bf16 %v5862_v24  ;;  %v5858_v17 = vunpack.i.l.bf16 %v5857_v32  ;;  %v5864_v37 = vunpack.i.h.bf16 %v5862_v24  ;;  %v5859_v56 = vunpack.i.h.bf16 %v5857_v32 }
 0x458   : > { %4067 = vrot.lane.b32.xlu1 %v7211_v62, %s8205_s16  ;;  %4071 = vrot.lane.b32.xlu0 %v7217_v8, %s8205_s16 }
 0x459   : > { %v2989_v25 = vsel %vm8208_vm9, %v5863_v7, %v5853_v38  ;;  %v2929_v55 = vsel %vm8209_vm12, %v5858_v17, %v5848_v40  ;;  %5024 = vmatprep.subr.bf16.mxu0 %v5023_v4  ;;  %v2991_v38 = vsel %vm8210_vm8, %v5854_v35, %v5864_v37  ;;  %v2931_v40 = vsel %vm8211_vm10, %v5849_v12, %v5859_v56  ;;  %vm8214_vm9 = vmmov %vm8213_vm6 }
 0x45a   : > { %v7478_v2 = vpop.permute.xlu1 %5871  ;;  %v7480_v30 = vpop.permute.xlu0 %5866  ;;  %v5025_v0 = vpack.c.bf16 %v2989_v25, %v2929_v55  ;;  %vm8215_vm12 = vmmov %vm8212_vm7  ;;  %vm8216_vm8 = vcmask 728064   ;;  %vm8217_vm10 = vcmask 89088  }
 0x45b   : > { %v8080_v52 = vunpack.i.h.bf16 %v7478_v2  ;;  %v5873_v6 = vunpack.i.l.bf16 %v7478_v2  ;;  %v8082_v54 = vunpack.i.h.bf16 %v7480_v30  ;;  %v5868_v24 = vunpack.i.l.bf16 %v7480_v30 }
 0x45c   : > { %2627 = vrot.lane.b32.xlu1 %v7476_v18, %s6270_s28  ;;  %2567 = vrot.lane.b32.xlu0 %v7476_v18, %s6269_s27  ;;  %s8251_s27 = smov 119   ;;  %s8252_s28 = smov 127  }
 0x45d   : > { %v7495_v32 = vsel %vm8212_vm7, %v5873_v6, %v8080_v52  ;;  %v7500_v4 = vsel %vm8213_vm6, %v5868_v24, %v8082_v54  ;;  %5026 = vmatpush1.bf16.msra.mxu0 %v5025_v0  ;;  %v2932_v35 = vsel %vm8214_vm9, %v5859_v56, %v5868_v24  ;;  %v2992_v12 = vsel %vm8215_vm12, %v5864_v37, %v5873_v6  ;;  %vm8218_vm7 = vmmov %vm8217_vm10 }
 0x45e   : > { %v5882_v11 = vpop.permute.xlu1 %5881  ;;  %v5877_v7 = vpop.permute.xlu0 %5876  ;;  %v5075_v17 = vpack.c.bf16 %v2992_v12, %v2932_v35  ;;  %v5077_v0 = vpack.c.bf16 %v2991_v38, %v2931_v40  ;;  %vm8219_vm6 = vmmov %vm8216_vm8 }
 0x45f   : > { %v5884_v55 = vunpack.i.h.bf16 %v5882_v11  ;;  %v5883_v3 = vunpack.i.l.bf16 %v5882_v11  ;;  %v5879_v52 = vunpack.i.h.bf16 %v5877_v7  ;;  %v5878_v10 = vunpack.i.l.bf16 %v5877_v7  ;;  %vm8220_vm9 = vmmov %vm8218_vm7 }
 0x460   : > { %6106 = vrot.lane.b32.xlu1 %v7433_v16, %s6271_s29  ;;  %6101 = vrot.lane.b32.xlu0 %v7433_v16, %s6272_s30  ;;  %vm8221_vm12 = vmmov %vm8219_vm6 }
 0x461   : > { %5076 = vmatprep.subr.bf16.mxu1 %v5075_v17  ;;  %v3050_v37 = vsel %vm8216_vm8, %v5878_v10, %v5879_v52  ;;  %v3110_v56 = vsel %vm8217_vm10, %v5883_v3, %v5884_v55  ;;  %vm8222_vm8 = vmmov %vm8218_vm7 }
 0x462   : > { %5078 = vmatpush1.bf16.msra.mxu1 %v5077_v0  ;;  %v5892_v6 = vpop.permute.xlu1 %5891  ;;  %v5887_v24 = vpop.permute.xlu0 %5886  ;;  %v5027_v35 = vpack.c.bf16 %v3110_v56, %v3050_v37  ;;  %vm8223_vm10 = vmmov %vm8219_vm6 }
 0x463   : > { %v5893_v12 = vunpack.i.l.bf16 %v5892_v6  ;;  %v5888_v11 = vunpack.i.l.bf16 %v5887_v24  ;;  %v5894_v25 = vunpack.i.h.bf16 %v5892_v6  ;;  %v5889_v7 = vunpack.i.h.bf16 %v5887_v24 }
 0x464   : > { %4075 = vrot.lane.b32.xlu1 %v7227_v21, %s8205_s16  ;;  %4073 = vrot.lane.b32.xlu0 %v7224_v15, %s8205_s16 }
 0x465   : > { %v3109_v38 = vsel %vm8218_vm7, %v5893_v12, %v5883_v3  ;;  %v3049_v40 = vsel %vm8219_vm6, %v5888_v11, %v5878_v10  ;;  %5028 = vmatprep.subr.bf16.mxu0 %v5027_v35  ;;  %v3111_v22 = vsel %vm8220_vm9, %v5884_v55, %v5894_v25  ;;  %v3051_v3 = vsel %vm8221_vm12, %v5879_v52, %v5889_v7  ;;  %vm8224_vm7 = vmmov %vm8219_vm6 }
 0x466   : > { %v7518_v17 = vpop.permute.xlu1 %5901  ;;  %v7520_v0 = vpop.permute.xlu0 %5896  ;;  %v5029_v37 = vpack.c.bf16 %v3109_v38, %v3049_v40  ;;  %vm8225_vm6 = vmmov %vm8222_vm8  ;;  %vm8226_vm9 = vcmask 80896   ;;  %vm8227_vm12 = vcmask 72704  }
 0x467   : > { %v8085_v56 = vunpack.i.h.bf16 %v7518_v17  ;;  %v5903_v6 = vunpack.i.l.bf16 %v7518_v17  ;;  %v8087_v24 = vunpack.i.h.bf16 %v7520_v0  ;;  %v5898_v54 = vunpack.i.l.bf16 %v7520_v0 }
 0x468   : > { %2747 = vrot.lane.b32.xlu1 %v7476_v18, %s6271_s29  ;;  %2687 = vrot.lane.b32.xlu0 %v7476_v18, %s6272_s30  ;;  %s8258_s29 = smov 117   ;;  %s8259_s30 = smov 118  }
 0x469   : > { %v7535_v10 = vsel %vm8222_vm8, %v5903_v6, %v8085_v56  ;;  %v7540_v35 = vsel %vm8223_vm10, %v5898_v54, %v8087_v24  ;;  %5030 = vmatpush1.bf16.msra.mxu0 %v5029_v37  ;;  %v3052_v55 = vsel %vm8224_vm7, %v5889_v7, %v5898_v54  ;;  %v3112_v52 = vsel %vm8225_vm6, %v5894_v25, %v5903_v6  ;;  %vm8228_vm8 = vmmov %vm8227_vm12 }
 0x46a   : > { %v5912_v12 = vpop.permute.xlu1 %5911  ;;  %v5907_v11 = vpop.permute.xlu0 %5906  ;;  %v5079_v38 = vpack.c.bf16 %v3112_v52, %v3052_v55  ;;  %v5081_v37 = vpack.c.bf16 %v3111_v22, %v3051_v3  ;;  %vm8229_vm10 = vmmov %vm8226_vm9 }
 0x46b   : > { %v5914_v36 = vunpack.i.h.bf16 %v5912_v12  ;;  %v5913_v44 = vunpack.i.l.bf16 %v5912_v12  ;;  %v5909_v56 = vunpack.i.h.bf16 %v5907_v11  ;;  %v5908_v34 = vunpack.i.l.bf16 %v5907_v11  ;;  %vm8230_vm7 = vmmov %vm8228_vm8 }
 0x46c   : > { %6116 = vrot.lane.b32.xlu1 %v7433_v16, %s6273_s6  ;;  %6111 = vrot.lane.b32.xlu0 %v7433_v16, %s6274_s7  ;;  %vm8231_vm6 = vmmov %vm8226_vm9 }
 0x46d   : > { %5080 = vmatprep.subr.bf16.mxu1 %v5079_v38  ;;  %v3170_v54 = vsel %vm8226_vm9, %v5908_v34, %v5909_v56  ;;  %v3230_v25 = vsel %vm8227_vm12, %v5913_v44, %v5914_v36  ;;  %vm8232_vm9 = vmmov %vm8230_vm7 }
 0x46e   : > { %5082 = vmatpush1.bf16.msra.mxu1 %v5081_v37  ;;  %v5922_v7 = vpop.permute.xlu1 %5921  ;;  %v5917_v6 = vpop.permute.xlu0 %5916  ;;  %v5031_v55 = vpack.c.bf16 %v3230_v25, %v3170_v54  ;;  %vm8233_vm12 = vmmov %vm8231_vm6 }
 0x46f   : > { %v5923_v52 = vunpack.i.l.bf16 %v5922_v7  ;;  %v5918_v12 = vunpack.i.l.bf16 %v5917_v6  ;;  %v5924_v40 = vunpack.i.h.bf16 %v5922_v7  ;;  %v5919_v11 = vunpack.i.h.bf16 %v5917_v6 }
 0x470   : > { %2867 = vrot.lane.b32.xlu1 %v7476_v18, %s6273_s6  ;;  %2807 = vrot.lane.b32.xlu0 %v7476_v18, %s6274_s7 }
 0x471   : > { %v3229_v22 = vsel %vm8228_vm8, %v5923_v52, %v5913_v44  ;;  %v3169_v3 = vsel %vm8229_vm10, %v5918_v12, %v5908_v34  ;;  %5032 = vmatprep.subr.bf16.mxu0 %v5031_v55  ;;  %v3231_v5 = vsel %vm8230_vm7, %v5914_v36, %v5924_v40  ;;  %v3171_v44 = vsel %vm8231_vm6, %v5909_v56, %v5919_v11  ;;  %vm8234_vm8 = vmmov %vm8231_vm6 }
 0x472   : > { %v7558_v38 = vpop.permute.xlu1 %5931  ;;  %v7560_v37 = vpop.permute.xlu0 %5926  ;;  %v5033_v54 = vpack.c.bf16 %v3229_v22, %v3169_v3  ;;  %vm8235_vm10 = vmmov %vm8230_vm7  ;;  %vm8236_vm7 = vcmask 7168  }
 0x473   : > { %v8090_v25 = vunpack.i.h.bf16 %v7558_v38  ;;  %v5933_v7 = vunpack.i.l.bf16 %v7558_v38  ;;  %v8094_v6 = vunpack.i.h.bf16 %v7560_v37  ;;  %v5928_v24 = vunpack.i.l.bf16 %v7560_v37  ;;  %vm8237_vm6 = vmmov %vm8236_vm7 }
 0x474   : > { %6126 = vrot.lane.b32.xlu1 %v7433_v16, %s6275_s8  ;;  %6121 = vrot.lane.b32.xlu0 %v7433_v16, %s6276_s9 }
 0x475   : > { %v7575_v34 = vsel %vm8232_vm9, %v5933_v7, %v8090_v25  ;;  %v7580_v55 = vsel %vm8233_vm12, %v5928_v24, %v8094_v6  ;;  %5034 = vmatpush1.bf16.msra.mxu0 %v5033_v54  ;;  %v3172_v36 = vsel %vm8234_vm8, %v5919_v11, %v5928_v24  ;;  %v3232_v56 = vsel %vm8235_vm10, %v5924_v40, %v5933_v7  ;;  %vm8238_vm9 = vmmov %vm8237_vm6 }
 0x476   : > { %v5942_v12 = vpop.permute.xlu1 %5941  ;;  %v5937_v22 = vpop.permute.xlu0 %5936  ;;  %v5083_v3 = vpack.c.bf16 %v3232_v56, %v3172_v36  ;;  %v5085_v54 = vpack.c.bf16 %v3231_v5, %v3171_v44  ;;  %vm8239_vm12 = vmmov %vm8237_vm6  ;;  %vm8241_vm10 = vcmask 1039360  }
 0x477   : > { %v5943_v1 = vunpack.i.l.bf16 %v5942_v12  ;;  %v5939_v46 = vunpack.i.h.bf16 %v5937_v22  ;;  %v5938_v25 = vunpack.i.l.bf16 %v5937_v22  ;;  %v5944_v45 = vunpack.i.h.bf16 %v5942_v12  ;;  %vm8240_vm8 = vmmov %vm8237_vm6 }
 0x478   : > { %2987 = vrot.lane.b32.xlu1 %v7476_v18, %s6275_s8  ;;  %2927 = vrot.lane.b32.xlu0 %v7476_v18, %s6276_s9  ;;  %s4802_s8 = sshll.u32 %s8384_s19, 6 }
 0x479   : > { %v3289_v24 = vsel %vm8236_vm7, %v5943_v1, %v5938_v25  ;;  %5084 = vmatprep.subr.bf16.mxu1 %v5083_v3  ;;  %v3290_v40 = vsel %vm8237_vm6, %v5938_v25, %v5939_v46  ;;  %v3291_v52 = vsel %vm8238_vm9, %v5939_v46, %v5944_v45  ;;  %vm8242_vm7 = vcmask 973824   ;;  %vm8243_vm6 = vmmov %vm8241_vm10  ;;  %s244_s19 = scalar_lea.vmem %s8020_s5, %s4802_s8 }
 0x47a   : > { %v5037_v11 = vpack.c.bf16 %v7211_v62, %v3289_v24  ;;  %5086 = vmatpush1.bf16.msra.mxu1 %v5085_v54  ;;  %v5952_v7 = vpop.permute.xlu1 %5951  ;;  %v7593_v36 = vpop.permute.xlu0 %5946  ;;  %v5035_v56 = vpack.c.bf16 %v7214_v29, %v3290_v40  ;;  %v5089_v24 = vpack.c.bf16 %v7217_v8, %v3291_v52  ;;  %vm8244_vm9 = vmmov %vm8243_vm6 }
 0x47b   : > { %v8093_v12 = vunpack.i.h.bf16 %v7593_v36  ;;  %v5948_v22 = vunpack.i.l.bf16 %v7593_v36  ;;  %v5954_v1 = vunpack.i.h.bf16 %v5952_v7  ;;  %v5953_v62 = vunpack.i.l.bf16 %v5952_v7 }
 0x47c   : > { %6136 = vrot.lane.b32.xlu1 %v7433_v16, %s6277_s10  ;;  %6131 = vrot.lane.b32.xlu0 %v7433_v16, %s6278_s11 }
 0x47d   : > { %v7606_v5 = vsel %vm8239_vm12, %v5948_v22, %v8093_v12  ;;  %5036 = vmatprep.subr.bf16.mxu0 %v5035_v56  ;;  %v3292_v29 = vsel %vm8240_vm8, %v5944_v45, %v5948_v22  ;;  %v3366_v7 = vsel %vm8241_vm10, %v5953_v62, %v5954_v1  ;;  %vm8245_vm12 = vmmov %vm8242_vm7 }
 0x47e   : > { %5038 = vmatpush1.bf16.msra.mxu0 %v5037_v11  ;;  %v5962_v25 = vpop.permute.xlu1 %5961  ;;  %v5957_v44 = vpop.permute.xlu0 %5956  ;;  %v5087_v46 = vpack.c.bf16 %v7224_v15, %v3292_v29  ;;  %vm8246_vm8 = vmmov %vm8242_vm7 }
 0x47f   : > { %v5959_v3 = vunpack.i.h.bf16 %v5957_v44  ;;  %v5958_v54 = vunpack.i.l.bf16 %v5957_v44  ;;  %v5963_v40 = vunpack.i.l.bf16 %v5962_v25  ;;  %vm8247_vm10 = vmmov %vm8243_vm6 }
 0x480   : > { %3107 = vrot.lane.b32.xlu1 %v7476_v18, %s6277_s10  ;;  %3047 = vrot.lane.b32.xlu0 %v7476_v18, %s6278_s11 }
 0x481   : > { %5088 = vmatprep.subr.bf16.mxu1 %v5087_v46  ;;  %v3426_v45 = vsel %vm8242_vm7, %v5958_v54, %v5959_v3  ;;  %v3365_v44 = vsel %vm8243_vm6, %v5963_v40, %v5953_v62  ;;  %vm8248_vm6 = vmmov %vm8242_vm7 }
 0x482   : > { %5090 = vmatpush1.bf16.msra.mxu1 %v5089_v24  ;;  %v7617_v11 = vpop.permute.xlu1 %5971  ;;  %v5967_v15 = vpop.permute.xlu0 %5966  ;;  %v5039_v56 = vpack.c.bf16 %v3426_v45, %v3366_v7  ;;  %v5964_v7 = vunpack.i.h.bf16 %v5962_v25 }
 0x483   : > { %v8097_v22 = vunpack.i.h.bf16 %v7617_v11  ;;  %v5973_v8 = vunpack.i.l.bf16 %v7617_v11  ;;  %v5968_v52 = vunpack.i.l.bf16 %v5967_v15  ;;  %v5969_v29 = vunpack.i.h.bf16 %v5967_v15 }
 0x484   : > { %6146 = vrot.lane.b32.xlu1 %v7433_v16, %s6279_s12  ;;  %6141 = vrot.lane.b32.xlu0 %v7433_v16, %s6280_s13 }
 0x485   : > { %v7629_v46 = vsel %vm8244_vm9, %v5973_v8, %v8097_v22  ;;  %v3425_v24 = vsel %vm8245_vm12, %v5968_v52, %v5958_v54  ;;  %5040 = vmatprep.subr.bf16.mxu0 %v5039_v56  ;;  %v3427_v62 = vsel %vm8246_vm8, %v5959_v3, %v5969_v29  ;;  %v3368_v54 = vsel %vm8247_vm10, %v5964_v7, %v5973_v8 }
 0x486   : > { %v5041_v45 = vpack.c.bf16 %v3425_v24, %v3365_v44  ;;  %v7632_v12 = vpop.permute.xlu1 %5981  ;;  %v7634_v15 = vpop.permute.xlu0 %5976  ;;  %v3367_v8 = vsel %vm8244_vm9, %v5954_v1, %v5964_v7  ;;  %vm8249_vm12 = vcmask 965632   ;;  %vm8250_vm8 = vcmask 957440  }
 0x487   : > { %v8104_v6 = vunpack.i.h.bf16 %v7634_v15  ;;  %v5978_v41 = vunpack.i.l.bf16 %v7634_v15  ;;  %v5984_v25 = vunpack.i.h.bf16 %v7632_v12  ;;  %v5983_v40 = vunpack.i.l.bf16 %v7632_v12  ;;  %vm8253_vm10 = vmmov %vm8249_vm12 }
 0x488   : > { %3227 = vrot.lane.b32.xlu1 %v7476_v18, %s6279_s12  ;;  %3167 = vrot.lane.b32.xlu0 %v7476_v18, %s6280_s13  ;;  %v5093_v59 = vpack.c.bf16 %v3427_v62, %v3367_v8  ;;  %v6160_v1 = vpack.i.bf16 %v7476_v18, %v7412_v26 }
 0x489   : > { %v7649_v56 = vsel %vm8242_vm7, %v5978_v41, %v8104_v6  ;;  %5042 = vmatpush1.bf16.msra.mxu0 %v5041_v45  ;;  %v3428_v3 = vsel %vm8248_vm6, %v5969_v29, %v5978_v41  ;;  %v3486_v41 = vsel %vm8249_vm12, %v5983_v40, %v5984_v25  ;;  %vm8254_vm7 = vmmov %vm8253_vm10 }
 0x48a   : > { %v5992_v44 = vpop.permute.xlu1 %5991  ;;  %v5987_v24 = vpop.permute.xlu0 %5986  ;;  %v5091_v22 = vpack.c.bf16 %v3428_v3, %v3368_v54  ;;  %vm8256_vm6 = vmmov %vm8250_vm8 }
 0x48b   : > { %v5989_v53 = vunpack.i.h.bf16 %v5987_v24  ;;  %v5988_v31 = vunpack.i.l.bf16 %v5987_v24  ;;  %v5993_v12 = vunpack.i.l.bf16 %v5992_v44  ;;  %vm8257_vm9 = vmmov %vm8256_vm6 }
 0x48c   : > { %3287 = vrot.lane.b32.xlu1 %v7476_v18, %s8199_s26  ;;  %6151 = vrot.lane.b32.xlu0 %v7433_v16, %s8199_s26  ;;  %vm8260_vm12 = vmmov %vm8254_vm7 }
 0x48d   : > { %5092 = vmatprep.subr.bf16.mxu1 %v5091_v22  ;;  %v3546_v29 = vsel %vm8250_vm8, %v5988_v31, %v5989_v53  ;;  %v3485_v22 = vsel %vm8253_vm10, %v5993_v12, %v5983_v40  ;;  %vm8261_vm8 = vmmov %vm8256_vm6 }
 0x48e   : > { %5094 = vmatpush1.bf16.msra.mxu1 %v5093_v59  ;;  %v7661_v45 = vpop.permute.xlu1 %6001  ;;  %v5997_v54 = vpop.permute.xlu0 %5996  ;;  %v5043_v7 = vpack.c.bf16 %v3546_v29, %v3486_v41  ;;  %v5994_v41 = vunpack.i.h.bf16 %v5992_v44  ;;  %vm8263_vm10 = vmmov %vm8256_vm6 }
 0x48f   : > { %v8111_v62 = vunpack.i.h.bf16 %v7661_v45  ;;  %v6003_v3 = vunpack.i.l.bf16 %v7661_v45  ;;  %v5998_v24 = vunpack.i.l.bf16 %v5997_v54  ;;  %v5999_v8 = vunpack.i.h.bf16 %v5997_v54 }
 0x490   : > { %6161 = vrot.lane.b32.xlu1 %v6160_v1, %s8251_s27  ;;  %6156 = vrot.lane.b32.xlu0 %v6160_v1, %s8252_s28 }
 0x491   : > { %v7673_v59 = vsel %vm8254_vm7, %v6003_v3, %v8111_v62  ;;  %v3545_v52 = vsel %vm8256_vm6, %v5998_v24, %v5988_v31  ;;  %5044 = vmatprep.subr.bf16.mxu0 %v5043_v7  ;;  %v3547_v43 = vsel %vm8257_vm9, %v5989_v53, %v5999_v8  ;;  %v3488_v40 = vsel %vm8260_vm12, %v5994_v41, %v6003_v3 }
 0x492   : > { %8255 = vst [vmem:[#allocation14_spill] sm:$0xff] %v7673_v59  ;;  %v5045_v29 = vpack.c.bf16 %v3545_v52, %v3485_v22  ;;  %v6012_v6 = vpop.permute.xlu1 %6011  ;;  %v7676_v28 = vpop.permute.xlu0 %6006  ;;  %vm8264_vm6 = vcmask 318464   ;;  %vm8265_vm9 = vcmask 310272  }
 0x493   : > { %v8112_v54 = vunpack.i.h.bf16 %v7676_v28  ;;  %v6008_v58 = vunpack.i.l.bf16 %v7676_v28  ;;  %v6014_v12 = vunpack.i.h.bf16 %v6012_v6  ;;  %v6013_v31 = vunpack.i.l.bf16 %v6012_v6  ;;  %vm8267_vm12 = vmmov %vm8264_vm6 }
 0x494   : > { %6171 = vrot.lane.b32.xlu1 %v6160_v1, %s8258_s29  ;;  %6166 = vrot.lane.b32.xlu0 %v6160_v1, %s8259_s30  ;;  %v3487_v1 = vsel %vm8254_vm7, %v5984_v25, %v5994_v41  ;;  %v7703_v25 = vpack.i.bf16 %v8197_v33, %v7476_v18  ;;  %vm8270_vm7 = vmmov %vm8264_vm6 }
 0x495   : > { %v7687_v52 = vsel %vm8261_vm8, %v6008_v58, %v8112_v54  ;;  %5046 = vmatpush1.bf16.msra.mxu0 %v5045_v29  ;;  %v3548_v44 = vsel %vm8263_vm10, %v5999_v8, %v6008_v58  ;;  %v5097_v50 = vpack.c.bf16 %v3547_v43, %v3487_v1  ;;  %v3606_v58 = vsel %vm8264_vm6, %v6013_v31, %v6014_v12  ;;  %vm8268_vm8 = vmmov %vm8265_vm9 }
 0x496   : > { %8262 = vst [vmem:[#allocation15_spill] sm:$0xff] %v7687_v52  ;;  %v6022_v53 = vpop.permute.xlu1 %6021  ;;  %v6017_v24 = vpop.permute.xlu0 %6016  ;;  %v5095_v22 = vpack.c.bf16 %v3548_v44, %v3488_v40  ;;  %vm8269_vm10 = vmmov %vm8268_vm8 }
 0x497   : > { %v6019_v62 = vunpack.i.h.bf16 %v6017_v24  ;;  %v6018_v3 = vunpack.i.l.bf16 %v6017_v24  ;;  %v6023_v6 = vunpack.i.l.bf16 %v6022_v53  ;;  %v6024_v24 = vunpack.i.h.bf16 %v6022_v53  ;;  %vm8271_vm6 = vmmov %vm8268_vm8 }
 0x498   : > { %6181 = vrot.lane.b32.xlu1 %v7433_v16, %s8201_s15  ;;  %6176 = vrot.lane.b32.xlu0 %v7433_v16, %s8200_s23 }
 0x499   : > { %5096 = vmatprep.subr.bf16.mxu1 %v5095_v22  ;;  %v3666_v8 = vsel %vm8265_vm9, %v6018_v3, %v6019_v62  ;;  %v3605_v22 = vsel %vm8267_vm12, %v6023_v6, %v6013_v31  ;;  %vm8272_vm9 = vmmov %vm8270_vm7  ;;  %vm8273_vm12 = vcmask 302080  }
 0x49a   : > { %5098 = vmatpush1.bf16.msra.mxu1 %v5097_v50  ;;  %v7699_v29 = vpop.permute.xlu1 %3595  ;;  %v6027_v40 = vpop.permute.xlu0 %6026  ;;  %v5047_v43 = vpack.c.bf16 %v3666_v8, %v3606_v58  ;;  %v3607_v8 = vsel %vm8272_vm9, %v6014_v12, %v6024_v24 }
 0x49b   : > { %8266 = vst [vmem:[#allocation16_spill] sm:$0xff] %v7699_v29  ;;  %v6029_v41 = vunpack.i.h.bf16 %v6027_v40  ;;  %v6028_v44 = vunpack.i.l.bf16 %v6027_v40  ;;  %v3608_v53 = vsel %vm8270_vm7, %v6024_v24, %v7699_v29 }
 0x49c   : > { %6191 = vrot.lane.b32.xlu1 %v7703_v25, %s8201_s15  ;;  %6186 = vrot.lane.b32.xlu0 %v7703_v25, %s8200_s23 }
 0x49d   : > { %v3665_v50 = vsel %vm8268_vm8, %v6028_v44, %v6018_v3  ;;  %5048 = vmatprep.subr.bf16.mxu0 %v5047_v43  ;;  %v3667_v1 = vsel %vm8269_vm10, %v6019_v62, %v6029_v41  ;;  %vm8274_vm8 = vcmask 236544   ;;  %vm8276_vm10 = vmmov %vm8273_vm12 }
 0x49e   : > { %v5049_v7 = vpack.c.bf16 %v3665_v50, %v3605_v22  ;;  %v6032_v54 = vpop.permute.xlu1 %6031  ;;  %v7712_v59 = vpop.permute.xlu0 %3655  ;;  %v5101_v62 = vpack.c.bf16 %v3667_v1, %v3607_v8  ;;  %vm8277_vm7 = vmmov %vm8274_vm8 }
 0x49f   : > { %v3668_v58 = vsel %vm8271_vm6, %v6029_v41, %v7712_v59  ;;  %v6034_v31 = vunpack.i.h.bf16 %v6032_v54  ;;  %v6033_v3 = vunpack.i.l.bf16 %v6032_v54  ;;  %vm8278_vm6 = vmmov %vm8277_vm7 }
 0x4a0   : > { %v5099_v40 = vpack.c.bf16 %v3668_v58, %v3608_v53  ;;  %6201 = vrot.lane.b32.xlu1 %v7433_v16, %s8119_s24  ;;  %6196 = vrot.lane.b32.xlu0 %v7433_v16, %s8120_s14  ;;  %vm8279_vm9 = vmmov %vm8276_vm10 }
 0x4a1   : > { %5050 = vmatpush1.bf16.msra.mxu0 %v5049_v7  ;;  %v3726_v41 = vsel %vm8273_vm12, %v6033_v3, %v6034_v31  ;;  %vm8280_vm12 = vmmov %vm8278_vm6 }
 0x4a2   : > { %v6042_v6 = vpop.permute.xlu1 %6041  ;;  %v6037_v43 = vpop.permute.xlu0 %6036  ;;  %5100 = vmatprep.subr.bf16.mxu1 %v5099_v40 }
 0x4a3   : > { %v6039_v44 = vunpack.i.h.bf16 %v6037_v43  ;;  %v6038_v22 = vunpack.i.l.bf16 %v6037_v43  ;;  %5102 = vmatpush1.bf16.msra.mxu1 %v5101_v62  ;;  %v6043_v12 = vunpack.i.l.bf16 %v6042_v6  ;;  %v6044_v58 = vunpack.i.h.bf16 %v6042_v6 }
 0x4a4   : > { %6211 = vrot.lane.b32.xlu1 %v7703_v25, %s8119_s24  ;;  %6206 = vrot.lane.b32.xlu0 %v7703_v25, %s8120_s14 }
 0x4a5   : > { %v3786_v24 = vsel %vm8274_vm8, %v6038_v22, %v6039_v44  ;;  %v3725_v8 = vsel %vm8276_vm10, %v6043_v12, %v6033_v3  ;;  %vm8281_vm8 = vmmov %vm8279_vm9  ;;  %vm8282_vm10 = vcmask 228352  }
 0x4a6   : > { %v7729_v50 = vpop.permute.xlu1 %3715  ;;  %v6047_v54 = vpop.permute.xlu0 %6046  ;;  %v5051_v7 = vpack.c.bf16 %v3786_v24, %v3726_v41  ;;  %v3727_v24 = vsel %vm8281_vm8, %v6034_v31, %v6044_v58 }
 0x4a7   : > { %8275 = vst [vmem:[#allocation17_spill] sm:$0xff] %v7729_v50  ;;  %v6049_v1 = vunpack.i.h.bf16 %v6047_v54  ;;  %v6048_v53 = vunpack.i.l.bf16 %v6047_v54  ;;  %v3728_v6 = vsel %vm8279_vm9, %v6044_v58, %v7729_v50 }
 0x4a8   : > { %6221 = vrot.lane.b32.xlu1 %v7433_v16, %s8121_s22  ;;  %6216 = vrot.lane.b32.xlu0 %v7433_v16, %s8122_s21 }
 0x4a9   : > { %v3785_v40 = vsel %vm8277_vm7, %v6048_v53, %v6038_v22  ;;  %5052 = vmatprep.subr.bf16.mxu0 %v5051_v7  ;;  %v3787_v62 = vsel %vm8278_vm6, %v6039_v44, %v6049_v1  ;;  %vm8284_vm7 = vmmov %vm8282_vm10 }
 0x4aa   : > { %v5053_v43 = vpack.c.bf16 %v3785_v40, %v3725_v8  ;;  %v6052_v52 = vpop.permute.xlu1 %6051  ;;  %v7738_v29 = vpop.permute.xlu0 %3775  ;;  %v5105_v3 = vpack.c.bf16 %v3787_v62, %v3727_v24  ;;  %vm8285_vm6 = vmmov %vm8284_vm7 }
 0x4ab   : > { %v3788_v41 = vsel %vm8280_vm12, %v6049_v1, %v7738_v29  ;;  %v6054_v44 = vunpack.i.h.bf16 %v6052_v52  ;;  %v6053_v22 = vunpack.i.l.bf16 %v6052_v52  ;;  %vm8286_vm9 = vmmov %vm8285_vm6  ;;  %vm8291_vm12 = vcmask 719872  }
 0x4ac   : > { %v5103_v54 = vpack.c.bf16 %v3788_v41, %v3728_v6  ;;  %6231 = vrot.lane.b32.xlu1 %v7703_v25, %s8121_s22  ;;  %6226 = vrot.lane.b32.xlu0 %v7703_v25, %s8122_s21 }
 0x4ad   : > { %5054 = vmatpush1.bf16.msra.mxu0 %v5053_v43  ;;  %v3846_v1 = vsel %vm8282_vm10, %v6053_v22, %v6054_v44  ;;  %vm8309_vm10 = vcmask 728064  }
 0x4ae   : > { %v6062_v12 = vpop.permute.xlu1 %6061  ;;  %v6057_v7 = vpop.permute.xlu0 %6056  ;;  %5104 = vmatprep.subr.bf16.mxu1 %v5103_v54 }
 0x4af   : > { %v6059_v53 = vunpack.i.h.bf16 %v6057_v7  ;;  %v6058_v8 = vunpack.i.l.bf16 %v6057_v7  ;;  %5106 = vmatpush1.bf16.msra.mxu1 %v5105_v3  ;;  %v6063_v31 = vunpack.i.l.bf16 %v6062_v12  ;;  %v6064_v41 = vunpack.i.h.bf16 %v6062_v12 }
 0x4b0   : > { %6241 = vrot.lane.b32.xlu1 %v7433_v16, %s8202_s17  ;;  %6236 = vrot.lane.b32.xlu0 %v7433_v16, %s6292_s25 }
 0x4b1   : > { %v3906_v58 = vsel %vm1676_vm11, %v6058_v8, %v6059_v53  ;;  %v3845_v16 = vsel %vm8284_vm7, %v6063_v31, %v6053_v22  ;;  %vm8311_vm7 = vcmask 89088  }
 0x4b2   : > { %v7755_v40 = vpop.permute.xlu1 %3835  ;;  %v6067_v52 = vpop.permute.xlu0 %6066  ;;  %v5055_v62 = vpack.c.bf16 %v3906_v58, %v3846_v1  ;;  %v3847_v58 = vsel %vm8286_vm9, %v6054_v44, %v6064_v41  ;;  %vm8313_vm9 = vmmov %vm8309_vm10 }
 0x4b3   : > { %8283 = vst [vmem:[#allocation18_spill] sm:$0xff] %v7755_v40  ;;  %v6069_v43 = vunpack.i.h.bf16 %v6067_v52  ;;  %v6068_v6 = vunpack.i.l.bf16 %v6067_v52  ;;  %v3848_v12 = vsel %vm8285_vm6, %v6064_v41, %v7755_v40  ;;  %vm8312_vm6 = vmmov %vm8311_vm7 }
 0x4b4   : > { %6251 = vrot.lane.b32.xlu1 %v7703_v25, %s8202_s17  ;;  %6246 = vrot.lane.b32.xlu0 %v7703_v25, %s6292_s25 }
 0x4b5   : > { %v3905_v24 = vsel %vm1676_vm11, %v6068_v6, %v6058_v8  ;;  %5056 = vmatprep.subr.bf16.mxu0 %v5055_v62  ;;  %v3907_v54 = vsel %vm1676_vm11, %v6059_v53, %v6069_v43 }
 0x4b6   : > { %v5057_v3 = vpack.c.bf16 %v3905_v24, %v3845_v16  ;;  %v6072_v7 = vpop.permute.xlu1 %6071  ;;  %v7764_v50 = vpop.permute.xlu0 %3895  ;;  %v5109_v22 = vpack.c.bf16 %v3907_v54, %v3847_v58 }
 0x4b7   : > { %v3908_v1 = vsel %vm1676_vm11, %v6069_v43, %v7764_v50  ;;  %v6074_v53 = vunpack.i.h.bf16 %v6072_v7  ;;  %v6073_v8 = vunpack.i.l.bf16 %v6072_v7 }
 0x4b8   : > { %v5107_v25 = vpack.c.bf16 %v3908_v1, %v3848_v12  ;;  %4079 = vrot.lane.b32.xlu1 %v7412_v26, %s8205_s16  ;;  %4077 = vrot.lane.b32.xlu0 %v7279_v39, %s8205_s16 }
 0x4b9   : > { %5058 = vmatpush1.bf16.msra.mxu0 %v5057_v3  ;;  %v3966_v43 = vsel %vm1737_vm15, %v6073_v8, %v6074_v53 }
 0x4ba   : > { %v6082_v31 = vpop.permute.xlu1 %6081  ;;  %v6077_v52 = vpop.permute.xlu0 %6076  ;;  %5108 = vmatprep.subr.bf16.mxu1 %v5107_v25 }
 0x4bb   : > { %v6079_v62 = vunpack.i.h.bf16 %v6077_v52  ;;  %v6078_v6 = vunpack.i.l.bf16 %v6077_v52  ;;  %5110 = vmatpush1.bf16.msra.mxu1 %v5109_v22  ;;  %v6083_v44 = vunpack.i.l.bf16 %v6082_v31  ;;  %v6084_v12 = vunpack.i.h.bf16 %v6082_v31 }
 0x4bc   : > { %4083 = vrot.lane.b32.xlu1 %v8197_v33, %s8205_s16  ;;  %4081 = vrot.lane.b32.xlu0 %v7476_v18, %s8205_s16 }
 0x4bd   : > { %v4026_v41 = vsel %vm1798_vm13, %v6078_v6, %v6079_v62  ;;  %v3965_v1 = vsel %vm1737_vm15, %v6083_v44, %v6073_v8 }
 0x4be   : > { %v7781_v16 = vpop.permute.xlu1 %3955  ;;  %v6087_v24 = vpop.permute.xlu0 %6086  ;;  %v5059_v54 = vpack.c.bf16 %v4026_v41, %v3966_v43  ;;  %v3967_v41 = vsel %vm1737_vm15, %v6074_v53, %v6084_v12 }
 0x4bf   : > { %8287 = vst [vmem:[#allocation19_spill] sm:$0xff] %v7781_v16  ;;  %v6089_v3 = vunpack.i.h.bf16 %v6087_v24  ;;  %v6088_v7 = vunpack.i.l.bf16 %v6087_v24  ;;  %v3968_v40 = vsel %vm1737_vm15, %v6084_v12, %v7781_v16  ;;  %v7804_v12 = vld [vmem:[%s8018_s3] sm:$0xff] }
 0x4c0   : > { %5060 = vmatprep.subr.bf16.mxu0 %v5059_v54  ;;  %v8288_v54 = vunpack.i.h.bf16 %v7335_v23 }
 0x4c1   : > { %v4025_v33 = vsel %vm1798_vm13, %v6088_v7, %v6078_v6  ;;  %v4027_v58 = vsel %vm1798_vm13, %v6079_v62, %v6089_v3 }
 0x4c2   : > { %v5061_v25 = vpack.c.bf16 %v4025_v33, %v3965_v1  ;;  %v6092_v22 = vpop.permute.xlu1 %6091  ;;  %v7786_v52 = vpop.permute.xlu0 %4015  ;;  %v5113_v24 = vpack.c.bf16 %v4027_v58, %v3967_v41 }
 0x4c3   : > { %v4028_v43 = vsel %vm1798_vm13, %v6089_v3, %v7786_v52  ;;  %v6093_v6 = vunpack.i.l.bf16 %v6092_v22 }
 0x4c4   : > { %v5111_v31 = vpack.c.bf16 %v4028_v43, %v3968_v40  ;;  %5062 = vmatpush1.bf16.msra.mxu0 %v5061_v25  ;;  %v8289_v40 = vunpack.i.h.bf16 %v7337_v61  ;;  %v8290_v43 = vpack.c.bf16 %v7352_v14, %v7357_v20  ;;  %v8293_v14 = vunpack.i.h.bf16 %v7377_v60 }
 0x4c6   : > { %v4070_v8 = vpop.permute.xlu1 %4069  ;;  %v6097_v44 = vpop.permute.xlu0 %6096  ;;  %5112 = vmatprep.subr.bf16.mxu1 %v5111_v31  ;;  %v2574_v53 = vsel %vm318_vm1, %v8289_v40, %v6093_v6 }
 0x4c7   : > { %v6098_v62 = vunpack.i.l.bf16 %v6097_v44  ;;  %5114 = vmatpush1.bf16.msra.mxu1 %v5113_v24  ;;  %v6099_v61 = vunpack.i.h.bf16 %v6097_v44  ;;  %v6094_v24 = vunpack.i.h.bf16 %v6092_v22 }
 0x4c9   : > { %v2634_v7 = vsel %vm379_vm0, %v8288_v54, %v6098_v62  ;;  %v2635_v40 = vsel %vm379_vm0, %v6098_v62, %v6099_v61  ;;  %v8294_v62 = vpack.c.bf16 %v7394_v57, %v7399_v49 }
 0x4ca   : > { %v4068_v1 = vpop.permute.xlu1 %4067  ;;  %v4072_v33 = vpop.permute.xlu0 %4071  ;;  %v5115_v58 = vpack.c.bf16 %v2634_v7, %v2574_v53 }
 0x4cb   : > { %v4085_v16 = vsel %vm1859_vm14, %v4068_v1, %v4070_v8  ;;  %v4086_v3 = vsel %vm1859_vm14, %v4070_v8, %v4072_v33  ;;  %v8292_v1 = vunpack.i.h.bf16 %v7379_v9  ;;  %v2575_v9 = vsel %vm318_vm1, %v6093_v6, %v6094_v24 }
 0x4cc   : > { %4382 = vmatprep.subr.mxu0 %v4086_v3  ;;  %v5169_v60 = vpack.c.bf16 %v2635_v40, %v2575_v9 }
 0x4cd   : > { %4383 = vmatpush1.msra.mxu0 %v4085_v16 }
 0x4ce   : > { %v2628_v23 = vpop.permute.xlu1 %2627  ;;  %v2568_v25 = vpop.permute.xlu0 %2567  ;;  %5116 = vmatprep.subr.bf16.mxu0 %v5115_v58  ;;  %4395 = vmatmul.mubr.f32.vlgmr.msra.gmra.mrb[4].mxu0 %v7804_v12 }
 0x4cf   : > { %5118 = vmatpush1.bf16.msra.mxu0 %v8290_v43  ;;  %4798 = vmatprep.mubr.msk.f32.mxu0 %vm8291_vm12, %v7423_v42  ;;  %v2636_v16 = vsel %vm379_vm0, %v6099_v61, %v2628_v23  ;;  %v2576_v7 = vsel %vm318_vm1, %v6094_v24, %v2568_v25  ;;  %vm8295_vm0 = vmmov %vm8291_vm12  ;;  %vm8300_vm1 = vcmask 744448  }
 0x4d0   : > { %vm8306_vm8 = vmmov %vm8300_vm1 }
 0x4d1   : > { %vm8314_vm12 = vmmov %vm8312_vm6 }
 0x4d2   : > { %v6107_v41 = vpop.permute.xlu1 %6106  ;;  %v6102_v31 = vpop.permute.xlu0 %6101 }
 0x4d3   : > { %v6108_v8 = vunpack.i.l.bf16 %v6107_v41  ;;  %v6103_v54 = vunpack.i.l.bf16 %v6102_v31  ;;  %v6109_v44 = vunpack.i.h.bf16 %v6107_v41  ;;  %v6104_v53 = vunpack.i.h.bf16 %v6102_v31 }
 0x4d5   : > { %v2694_v3 = vsel %vm440_vm2, %v8292_v1, %v6103_v54  ;;  %v2754_v20 = vsel %vm501_vm3, %v8293_v14, %v6108_v8  ;;  %v5167_v1 = vpack.c.bf16 %v2636_v16, %v2576_v7  ;;  %v2755_v61 = vsel %vm501_vm3, %v6108_v8, %v6109_v44 }
 0x4d6   : > { %v7821_v58 = vpop.permute.xlu1 %4075  ;;  %v4074_v22 = vpop.permute.xlu0 %4073  ;;  %v5119_v43 = vpack.c.bf16 %v2754_v20, %v2694_v3  ;;  %v2695_v41 = vsel %vm440_vm2, %v6103_v54, %v6104_v53  ;;  %v8296_v20 = vunpack.i.h.bf16 %v7429_v48 }
 0x4d7   : > { %v4087_v23 = vsel %vm1859_vm14, %v4072_v33, %v4074_v22  ;;  %v4088_v25 = vsel %vm1859_vm14, %v4074_v22, %v7821_v58  ;;  %v5173_v57 = vpack.c.bf16 %v2755_v61, %v2695_v41 }
 0x4d8   : > { %4453 = vmatprep.subr.mxu1 %v4088_v25  ;;  %5120 = vmatprep.subr.bf16.mxu0 %v5119_v43 }
 0x4d9   : > { %4454 = vmatpush1.msra.mxu1 %v4087_v23  ;;  %5122 = vmatpush1.bf16.msra.mxu0 %v8294_v62  ;;  %v8298_v62 = vpack.c.bf16 %v7452_v63, %v7457_v27 }
 0x4da   : > { %v2748_v31 = vpop.permute.xlu1 %2747  ;;  %v2688_v33 = vpop.permute.xlu0 %2687  ;;  %5168 = vmatprep.subr.bf16.mxu1 %v5167_v1  ;;  %4466 = vmatmul.mubr.f32.vlgmr.msra.gmra.mrb[4].mxu1 %v7804_v12 }
 0x4db   : > { %v2756_v6 = vsel %vm501_vm3, %v6109_v44, %v2748_v31  ;;  %v2696_v24 = vsel %vm440_vm2, %v6104_v53, %v2688_v33  ;;  %5170 = vmatpush1.bf16.msra.mxu1 %v5169_v60  ;;  %4799 = vmatprep.mubr.msk.f32.mxu1 %vm8295_vm0, %v7423_v42  ;;  %v8297_v44 = vunpack.i.h.bf16 %v7427_v51  ;;  %vm8302_vm2 = vcmask 736256   ;;  %vm8315_vm0 = vmmov %vm8313_vm9 }
 0x4dc   : > { %v5171_v16 = vpack.c.bf16 %v2756_v6, %v2696_v24  ;;  %v8299_v24 = vunpack.i.h.bf16 %v7480_v30  ;;  %vm8303_vm3 = vmmov %vm8302_vm2 }
 0x4de   : > { %v6117_v49 = vpop.permute.xlu1 %6116  ;;  %v6112_v7 = vpop.permute.xlu0 %6111  ;;  %5172 = vmatprep.subr.bf16.mxu1 %v5171_v16 }
 0x4df   : > { %v6119_v8 = vunpack.i.h.bf16 %v6117_v49  ;;  %v6118_v54 = vunpack.i.l.bf16 %v6117_v49  ;;  %v6114_v3 = vunpack.i.h.bf16 %v6112_v7  ;;  %v6113_v14 = vunpack.i.l.bf16 %v6112_v7  ;;  %5174 = vmatpush1.bf16.msra.mxu1 %v5173_v57 }
 0x4e0   : > { %v8301_v57 = vunpack.i.h.bf16 %v7478_v2 }
 0x4e1   : > { %v2814_v40 = vsel %vm562_vm4, %v8296_v20, %v6113_v14  ;;  %v2874_v53 = vsel %vm623_vm5, %v8297_v44, %v6118_v54  ;;  %v2875_v42 = vsel %vm623_vm5, %v6118_v54, %v6119_v8  ;;  %v2815_v22 = vsel %vm562_vm4, %v6113_v14, %v6114_v3 }
 0x4e2   : > { %v2868_v43 = vpop.permute.xlu1 %2867  ;;  %v2808_v23 = vpop.permute.xlu0 %2807  ;;  %v5123_v25 = vpack.c.bf16 %v2874_v53, %v2814_v40  ;;  %v5177_v48 = vpack.c.bf16 %v2875_v42, %v2815_v22  ;;  %v8307_v40 = vpack.c.bf16 %v7495_v32, %v7500_v4 }
 0x4e3   : > { %v2876_v9 = vsel %vm623_vm5, %v6119_v8, %v2868_v43  ;;  %v2816_v1 = vsel %vm562_vm4, %v6114_v3, %v2808_v23  ;;  %vm8304_vm4 = vmmov %vm8300_vm1  ;;  %v8308_v23 = vunpack.i.h.bf16 %v7520_v0 }
 0x4e4   : > { %v5175_v60 = vpack.c.bf16 %v2876_v9, %v2816_v1  ;;  %5124 = vmatprep.subr.bf16.mxu0 %v5123_v25  ;;  %vm8305_vm5 = vmmov %vm8302_vm2  ;;  %v8310_v9 = vunpack.i.h.bf16 %v7518_v17 }
 0x4e5   : > { %5126 = vmatpush1.bf16.msra.mxu0 %v8298_v62 }
 0x4e6   : > { %v6127_v51 = vpop.permute.xlu1 %6126  ;;  %v6122_v61 = vpop.permute.xlu0 %6121  ;;  %5176 = vmatprep.subr.bf16.mxu1 %v5175_v60 }
 0x4e7   : > { %v6129_v41 = vunpack.i.h.bf16 %v6127_v51  ;;  %v6128_v31 = vunpack.i.l.bf16 %v6127_v51  ;;  %v6124_v33 = vunpack.i.h.bf16 %v6122_v61  ;;  %v6123_v6 = vunpack.i.l.bf16 %v6122_v61  ;;  %5178 = vmatpush1.bf16.msra.mxu1 %v5177_v48 }
 0x4e9   : > { %v2934_v16 = vsel %vm8300_vm1, %v8299_v24, %v6123_v6  ;;  %v2994_v49 = vsel %vm8302_vm2, %v8301_v57, %v6128_v31  ;;  %v2995_v7 = vsel %vm8303_vm3, %v6128_v31, %v6129_v41  ;;  %v2935_v63 = vsel %vm8304_vm4, %v6123_v6, %v6124_v33 }
 0x4ea   : > { %v2988_v27 = vpop.permute.xlu1 %2987  ;;  %v2928_v8 = vpop.permute.xlu0 %2927  ;;  %v5127_v54 = vpack.c.bf16 %v2994_v49, %v2934_v16  ;;  %v5181_v30 = vpack.c.bf16 %v2995_v7, %v2935_v63  ;;  %v8316_v31 = vpack.c.bf16 %v7535_v10, %v7540_v35  ;;  %v8317_v49 = vunpack.i.h.bf16 %v7560_v37 }
 0x4eb   : > { %v2996_v3 = vsel %vm8305_vm5, %v6129_v41, %v2988_v27  ;;  %v2936_v14 = vsel %vm8306_vm8, %v6124_v33, %v2928_v8  ;;  %vm8318_vm1 = vcmask 80896   ;;  %v8319_v63 = vunpack.i.h.bf16 %v7558_v38 }
 0x4ec   : > { %v5179_v20 = vpack.c.bf16 %v2996_v3, %v2936_v14  ;;  %5128 = vmatprep.subr.bf16.mxu0 %v5127_v54  ;;  %vm8320_vm2 = vcmask 72704   ;;  %vm8322_vm4 = vmmov %vm8318_vm1 }
 0x4ed   : > { %5130 = vmatpush1.bf16.msra.mxu0 %v8307_v40  ;;  %vm8321_vm3 = vmmov %vm8320_vm2  ;;  %v8325_v40 = vpack.c.bf16 %v7575_v34, %v7580_v55 }
 0x4ee   : > { %v6137_v2 = vpop.permute.xlu1 %6136  ;;  %v6132_v44 = vpop.permute.xlu0 %6131  ;;  %5180 = vmatprep.subr.bf16.mxu1 %v5179_v20  ;;  %vm8323_vm5 = vmmov %vm8320_vm2 }
 0x4ef   : > { %v6139_v53 = vunpack.i.h.bf16 %v6137_v2  ;;  %v6138_v42 = vunpack.i.l.bf16 %v6137_v2  ;;  %v6134_v22 = vunpack.i.h.bf16 %v6132_v44  ;;  %v6133_v43 = vunpack.i.l.bf16 %v6132_v44  ;;  %5182 = vmatpush1.bf16.msra.mxu1 %v5181_v30  ;;  %vm8324_vm8 = vmmov %vm8318_vm1 }
 0x4f1   : > { %v3054_v25 = vsel %vm8309_vm10, %v8308_v23, %v6133_v43  ;;  %v3114_v1 = vsel %vm8311_vm7, %v8310_v9, %v6138_v42  ;;  %v3115_v60 = vsel %vm8312_vm6, %v6138_v42, %v6139_v53  ;;  %v3055_v32 = vsel %vm8313_vm9, %v6133_v43, %v6134_v22 }
 0x4f2   : > { %v3108_v4 = vpop.permute.xlu1 %3107  ;;  %v3048_v48 = vpop.permute.xlu0 %3047  ;;  %v5131_v62 = vpack.c.bf16 %v3114_v1, %v3054_v25  ;;  %v5185_v0 = vpack.c.bf16 %v3115_v60, %v3055_v32  ;;  %vm8326_vm10 = vcmask 7168   ;;  %v5141_v25 = vpack.c.bf16 %v7227_v21, %v7606_v5 }
 0x4f3   : > { %v3116_v51 = vsel %vm8314_vm12, %v6139_v53, %v3108_v4  ;;  %v3056_v61 = vsel %vm8315_vm0, %v6134_v22, %v3048_v48  ;;  %v8327_v22 = vunpack.i.h.bf16 %v7593_v36  ;;  %vm8328_vm7 = vmmov %vm8326_vm10  ;;  %vm8330_vm9 = vcmask 973824  }
 0x4f4   : > { %v5183_v41 = vpack.c.bf16 %v3116_v51, %v3056_v61  ;;  %5132 = vmatprep.subr.bf16.mxu0 %v5131_v62  ;;  %vm8329_vm6 = vmmov %vm8328_vm7  ;;  %vm8331_vm12 = vcmask 1039360   ;;  %v8332_v21 = vunpack.i.h.bf16 %v7617_v11 }
 0x4f5   : > { %5134 = vmatpush1.bf16.msra.mxu0 %v8316_v31  ;;  %vm8333_vm0 = vmmov %vm8331_vm12 }
 0x4f6   : > { %v6147_v17 = vpop.permute.xlu1 %6146  ;;  %v6142_v33 = vpop.permute.xlu0 %6141  ;;  %5184 = vmatprep.subr.bf16.mxu1 %v5183_v41 }
 0x4f7   : > { %v6149_v6 = vunpack.i.h.bf16 %v6147_v17  ;;  %v6148_v24 = vunpack.i.l.bf16 %v6147_v17  ;;  %v6144_v16 = vunpack.i.h.bf16 %v6142_v33  ;;  %v6143_v57 = vunpack.i.l.bf16 %v6142_v33  ;;  %5186 = vmatpush1.bf16.msra.mxu1 %v5185_v0 }
 0x4f9   : > { %v3174_v7 = vsel %vm8318_vm1, %v8317_v49, %v6143_v57  ;;  %v3234_v27 = vsel %vm8320_vm2, %v8319_v63, %v6148_v24  ;;  %v3235_v8 = vsel %vm8321_vm3, %v6148_v24, %v6149_v6  ;;  %v3175_v10 = vsel %vm8322_vm4, %v6143_v57, %v6144_v16  ;;  %vm8335_vm1 = vmmov %vm8330_vm9 }
 0x4fa   : > { %v3228_v35 = vpop.permute.xlu1 %3227  ;;  %v3168_v54 = vpop.permute.xlu0 %3167  ;;  %v5135_v3 = vpack.c.bf16 %v3234_v27, %v3174_v7  ;;  %v5189_v37 = vpack.c.bf16 %v3235_v8, %v3175_v10  ;;  %vm8336_vm2 = vmmov %vm8333_vm0  ;;  %vm8338_vm4 = vcmask 957440   ;;  %v8342_v63 = vunpack.i.h.bf16 %v7676_v28 }
 0x4fb   : > { %v3236_v14 = vsel %vm8323_vm5, %v6149_v6, %v3228_v35  ;;  %v3176_v20 = vsel %vm8324_vm8, %v6144_v16, %v3168_v54  ;;  %vm8337_vm3 = vmmov %vm8335_vm1  ;;  %vm8339_vm5 = vcmask 965632   ;;  %v8345_v35 = vpack.c.bf16 %v7649_v56, %v7629_v46 }
 0x4fc   : > { %v5187_v30 = vpack.c.bf16 %v3236_v14, %v3176_v20  ;;  %5136 = vmatprep.subr.bf16.mxu0 %v5135_v3  ;;  %vm8341_vm8 = vmmov %vm8339_vm5  ;;  %v8346_v20 = vld [vmem:[#allocation13_spill] sm:$0xff] }
 0x4fd   : > { %5138 = vmatpush1.bf16.msra.mxu0 %v8325_v40  ;;  %v8349_v40 = vld [vmem:[#allocation16_spill] sm:$0xff] }
 0x4fe   : > { %v3288_v38 = vpop.permute.xlu1 %3287  ;;  %v6152_v2 = vpop.permute.xlu0 %6151  ;;  %5188 = vmatprep.subr.bf16.mxu1 %v5187_v30 }
 0x4ff   : > { %v6154_v44 = vunpack.i.h.bf16 %v6152_v2  ;;  %v6153_v53 = vunpack.i.l.bf16 %v6152_v2  ;;  %5190 = vmatpush1.bf16.msra.mxu1 %v5189_v37 }
 0x501   : > { %v3295_v42 = vsel %vm8326_vm10, %v6153_v53, %v6154_v44  ;;  %v3294_v43 = vsel %vm8328_vm7, %v8327_v22, %v6153_v53  ;;  %v3296_v23 = vsel %vm8329_vm6, %v6154_v44, %v3288_v38  ;;  %vm8343_vm10 = vmmov %vm8338_vm4  ;;  %v8354_v22 = vld [vmem:[#allocation14_spill] sm:$0xff] }
 0x502   : > { %v5193_v34 = vpack.c.bf16 %v7412_v26, %v3295_v42  ;;  %v6162_v55 = vpop.permute.xlu1 %6161  ;;  %v6157_v9 = vpop.permute.xlu0 %6156  ;;  %v5139_v1 = vpack.c.bf16 %v7279_v39, %v3294_v43  ;;  %v5191_v60 = vpack.c.bf16 %v7476_v18, %v3296_v23  ;;  %v8334_v18 = vunpack.i.h.bf16 %v7634_v15  ;;  %vm8344_vm7 = vmmov %vm8339_vm5  ;;  %v8353_v42 = vld [vmem:[#allocation15_spill] sm:$0xff] }
 0x503   : > { %v6164_v32 = vunpack.i.h.bf16 %v6162_v55  ;;  %v6163_v4 = vunpack.i.l.bf16 %v6162_v55  ;;  %v6159_v48 = vunpack.i.h.bf16 %v6157_v9  ;;  %v6158_v62 = vunpack.i.l.bf16 %v6157_v9  ;;  %vm8347_vm6 = vmmov %vm8338_vm4 }
 0x504   : > { %5140 = vmatprep.subr.bf16.mxu0 %v5139_v1  ;;  %5192 = vmatprep.subr.bf16.mxu1 %v5191_v60  ;;  %v8340_v15 = vunpack.i.h.bf16 %v7661_v45  ;;  %v8355_v43 = vpack.c.bf16 %v8353_v42, %v8354_v22 }
 0x505   : > { %v3431_v36 = vsel %vm8330_vm9, %v6163_v4, %v6164_v32  ;;  %v3371_v51 = vsel %vm8331_vm12, %v6158_v62, %v6159_v48  ;;  %5142 = vmatpush1.bf16.msra.mxu0 %v5141_v25  ;;  %5194 = vmatpush1.bf16.msra.mxu1 %v5193_v34  ;;  %v3370_v26 = vsel %vm8333_vm0, %v8332_v21, %v6158_v62  ;;  %vm8348_vm9 = vcmask 310272  }
 0x506   : > { %v5197_v5 = vpack.c.bf16 %v3431_v36, %v3371_v51  ;;  %v6172_v39 = vpop.permute.xlu1 %6171  ;;  %v6167_v61 = vpop.permute.xlu0 %6166  ;;  %v3430_v41 = vsel %vm8335_vm1, %v8334_v18, %v6163_v4  ;;  %v3372_v0 = vsel %vm8336_vm2, %v6159_v48, %v7307_v19  ;;  %v3432_v31 = vsel %vm8337_vm3, %v6164_v32, %v7199_v13  ;;  %vm8352_vm1 = vmmov %vm8348_vm9 }
 0x507   : > { %v6174_v17 = vunpack.i.h.bf16 %v6172_v39  ;;  %v6173_v33 = vunpack.i.l.bf16 %v6172_v39  ;;  %v6169_v6 = vunpack.i.h.bf16 %v6167_v61  ;;  %v6168_v24 = vunpack.i.l.bf16 %v6167_v61  ;;  %vm8356_vm2 = vmmov %vm8352_vm1  ;;  %v8361_v61 = vld [vmem:[#allocation17_spill] sm:$0xff] }
 0x508   : > { %v5143_v11 = vpack.c.bf16 %v3430_v41, %v3370_v26  ;;  %v5195_v16 = vpack.c.bf16 %v3432_v31, %v3372_v0  ;;  %vm8350_vm12 = vcmask 318464  }
 0x509   : > { %v3551_v57 = vsel %vm8338_vm4, %v6173_v33, %v6174_v17  ;;  %v3491_v49 = vsel %vm8339_vm5, %v6168_v24, %v6169_v6  ;;  %v3490_v7 = vsel %vm8341_vm8, %v8340_v15, %v6168_v24  ;;  %v3550_v19 = vsel %vm8343_vm10, %v8342_v63, %v6173_v33  ;;  %vm8351_vm0 = vmmov %vm8350_vm12 }
 0x50a   : > { %5144 = vmatprep.subr.bf16.mxu0 %v5143_v11  ;;  %5196 = vmatprep.subr.bf16.mxu1 %v5195_v16  ;;  %v6182_v13 = vpop.permute.xlu1 %6181  ;;  %v6177_v27 = vpop.permute.xlu0 %6176  ;;  %v5147_v8 = vpack.c.bf16 %v3550_v19, %v3490_v7  ;;  %v3492_v10 = vsel %vm8344_vm7, %v6169_v6, %v7317_v47  ;;  %v5201_v28 = vpack.c.bf16 %v3551_v57, %v3491_v49  ;;  %vm8357_vm3 = vmmov %vm8351_vm0  ;;  %vm8360_vm8 = vcmask 236544  }
 0x50b   : > { %5146 = vmatpush1.bf16.msra.mxu0 %v8345_v35  ;;  %5198 = vmatpush1.bf16.msra.mxu1 %v5197_v5  ;;  %v6184_v45 = vunpack.i.h.bf16 %v6182_v13  ;;  %v6183_v54 = vunpack.i.l.bf16 %v6182_v13  ;;  %v6179_v3 = vunpack.i.h.bf16 %v6177_v27  ;;  %v6178_v14 = vunpack.i.l.bf16 %v6177_v27  ;;  %vm8358_vm4 = vmmov %vm8351_vm0 }
 0x50c   : > { %5148 = vmatprep.subr.bf16.mxu0 %v5147_v8  ;;  %v3552_v30 = vsel %vm8347_vm6, %v6174_v17, %v8346_v20  ;;  %vm8359_vm5 = vmmov %vm8352_vm1  ;;  %vm8362_vm10 = vcmask 302080  }
 0x50d   : > { %v3669_v37 = vsel %vm8348_vm9, %v7712_v59, %v6183_v54  ;;  %v3609_v47 = vsel %vm8350_vm12, %v8349_v40, %v6178_v14  ;;  %v5199_v38 = vpack.c.bf16 %v3552_v30, %v3492_v10  ;;  %v3610_v46 = vsel %vm8351_vm0, %v6178_v14, %v6179_v3  ;;  %vm8363_vm7 = vmmov %vm8362_vm10 }
 0x50e   : > { %v5153_v56 = vpack.c.bf16 %v3669_v37, %v3609_v47  ;;  %v6192_v2 = vpop.permute.xlu1 %6191  ;;  %v6187_v44 = vpop.permute.xlu0 %6186  ;;  %v3670_v53 = vsel %vm8352_vm1, %v6183_v54, %v6184_v45  ;;  %vm8364_vm6 = vmmov %vm8360_vm8 }
 0x50f   : > { %5200 = vmatprep.subr.bf16.mxu1 %v5199_v38  ;;  %5150 = vmatpush1.bf16.msra.mxu0 %v8355_v43  ;;  %v6194_v23 = vunpack.i.h.bf16 %v6192_v2  ;;  %v6193_v25 = vunpack.i.l.bf16 %v6192_v2  ;;  %v6189_v34 = vunpack.i.h.bf16 %v6187_v44  ;;  %v6188_v59 = vunpack.i.l.bf16 %v6187_v44  ;;  %vm8365_vm9 = vmmov %vm8364_vm6 }
 0x510   : > { %5202 = vmatpush1.bf16.msra.mxu1 %v5201_v28  ;;  %v5151_v55 = vpack.c.bf16 %v3670_v53, %v3610_v46  ;;  %vm8366_vm12 = vmmov %vm8363_vm7 }
 0x511   : > { %v3671_v9 = vsel %vm8356_vm2, %v6184_v45, %v6193_v25  ;;  %v3611_v1 = vsel %vm8357_vm3, %v6179_v3, %v6188_v59  ;;  %v3612_v60 = vsel %vm8358_vm4, %v6188_v59, %v6189_v34  ;;  %v3672_v32 = vsel %vm8359_vm5, %v6193_v25, %v6194_v23  ;;  %vm8367_vm0 = vmmov %vm8363_vm7  ;;  %v8369_v3 = vld [vmem:[#allocation18_spill] sm:$0xff] }
 0x512   : > { %v5205_v4 = vpack.c.bf16 %v3671_v9, %v3611_v1  ;;  %5152 = vmatprep.subr.bf16.mxu0 %v5151_v55  ;;  %v6202_v48 = vpop.permute.xlu1 %6201  ;;  %v6197_v62 = vpop.permute.xlu0 %6196  ;;  %v5203_v36 = vpack.c.bf16 %v3672_v32, %v3612_v60  ;;  %vm8368_vm1 = vmmov %vm8364_vm6  ;;  %vm8370_vm2 = vcmask 228352   ;;  %v8374_v60 = vld [vmem:[#allocation19_spill] sm:$0xff] }
 0x513   : > { %5154 = vmatpush1.bf16.msra.mxu0 %v5153_v56  ;;  %v6204_v51 = vunpack.i.h.bf16 %v6202_v48  ;;  %v6203_v21 = vunpack.i.l.bf16 %v6202_v48  ;;  %v6199_v26 = vunpack.i.h.bf16 %v6197_v62  ;;  %v6198_v5 = vunpack.i.l.bf16 %v6197_v62  ;;  %vm8371_vm3 = vmmov %vm8370_vm2 }
 0x514   : > { %5204 = vmatprep.subr.bf16.mxu1 %v5203_v36  ;;  %vm8372_vm4 = vmmov %vm8370_vm2 }
 0x515   : > { %v3789_v39 = vsel %vm8360_vm8, %v7738_v29, %v6203_v21  ;;  %v3729_v18 = vsel %vm8362_vm10, %v8361_v61, %v6198_v5  ;;  %5206 = vmatpush1.bf16.msra.mxu1 %v5205_v4  ;;  %v3730_v41 = vsel %vm8363_vm7, %v6198_v5, %v6199_v26  ;;  %v3790_v0 = vsel %vm8364_vm6, %v6203_v21, %v6204_v51  ;;  %vm8373_vm5 = vmmov %vm8370_vm2 }
 0x516   : > { %v5157_v31 = vpack.c.bf16 %v3789_v39, %v3729_v18  ;;  %v6212_v17 = vpop.permute.xlu1 %6211  ;;  %v6207_v33 = vpop.permute.xlu0 %6206  ;;  %v5155_v6 = vpack.c.bf16 %v3790_v0, %v3730_v41 }
 0x517   : > { %v6214_v24 = vunpack.i.h.bf16 %v6212_v17  ;;  %v6213_v11 = vunpack.i.l.bf16 %v6212_v17  ;;  %v6209_v16 = vunpack.i.h.bf16 %v6207_v33  ;;  %v6208_v57 = vunpack.i.l.bf16 %v6207_v33 }
 0x518   : > { %5156 = vmatprep.subr.bf16.mxu0 %v5155_v6 }
 0x519   : > { %v3791_v49 = vsel %vm8365_vm9, %v6204_v51, %v6213_v11  ;;  %v3731_v29 = vsel %vm8366_vm12, %v6199_v26, %v6208_v57  ;;  %5158 = vmatpush1.bf16.msra.mxu0 %v5157_v31  ;;  %v3732_v15 = vsel %vm8367_vm0, %v6208_v57, %v6209_v16  ;;  %v3792_v7 = vsel %vm8368_vm1, %v6213_v11, %v6214_v24 }
 0x51a   : > { %v5209_v63 = vpack.c.bf16 %v3791_v49, %v3731_v29  ;;  %v6222_v19 = vpop.permute.xlu1 %6221  ;;  %v6217_v13 = vpop.permute.xlu0 %6216  ;;  %v5207_v27 = vpack.c.bf16 %v3792_v7, %v3732_v15 }
 0x51b   : > { %v6224_v8 = vunpack.i.h.bf16 %v6222_v19  ;;  %v6223_v10 = vunpack.i.l.bf16 %v6222_v19  ;;  %v6219_v35 = vunpack.i.h.bf16 %v6217_v13  ;;  %v6218_v45 = vunpack.i.l.bf16 %v6217_v13  ;;  %v8376_v19 = vld [vmem:[#allocation6_spill] sm:$0xff] }
 0x51c   : > { %5208 = vmatprep.subr.bf16.mxu1 %v5207_v27 }
 0x51d   : > { %v3909_v54 = vsel %vm1676_vm11, %v7764_v50, %v6223_v10  ;;  %v3849_v14 = vsel %vm8370_vm2, %v8369_v3, %v6218_v45  ;;  %5210 = vmatpush1.bf16.msra.mxu1 %v5209_v63  ;;  %v3850_v28 = vsel %vm8371_vm3, %v6218_v45, %v6219_v35  ;;  %v3910_v20 = vsel %vm1676_vm11, %v6223_v10, %v6224_v8  ;;  %v8377_v10 = vld [vmem:[#allocation7_spill] sm:$0xff] }
 0x51e   : > { %v5161_v30 = vpack.c.bf16 %v3909_v54, %v3849_v14  ;;  %v6232_v37 = vpop.permute.xlu1 %6231  ;;  %v6227_v40 = vpop.permute.xlu0 %6226  ;;  %v5159_v47 = vpack.c.bf16 %v3910_v20, %v3850_v28  ;;  %v8378_v54 = vld [vmem:[#allocation8_spill] sm:$0xff] }
 0x51f   : > { %v6234_v38 = vunpack.i.h.bf16 %v6232_v37  ;;  %v6233_v46 = vunpack.i.l.bf16 %v6232_v37  ;;  %v6229_v56 = vunpack.i.h.bf16 %v6227_v40  ;;  %v6228_v2 = vunpack.i.l.bf16 %v6227_v40 }
 0x520   : > { %5160 = vmatprep.subr.bf16.mxu0 %v5159_v47 }
 0x521   : > { %v3911_v44 = vsel %vm1676_vm11, %v6224_v8, %v6233_v46  ;;  %v3851_v50 = vsel %vm8372_vm4, %v6219_v35, %v6228_v2  ;;  %5162 = vmatpush1.bf16.msra.mxu0 %v5161_v30  ;;  %v3852_v53 = vsel %vm8373_vm5, %v6228_v2, %v6229_v56  ;;  %v3912_v42 = vsel %vm1676_vm11, %v6233_v46, %v6234_v38  ;;  %v8379_v30 = vld [vmem:[#allocation9_spill] sm:$0xff]  ;;  %v8381_v2 = vld [vmem:[#allocation11_spill] sm:$0xff] }
 0x522   : > { %v5213_v22 = vpack.c.bf16 %v3911_v44, %v3851_v50  ;;  %v6242_v43 = vpop.permute.xlu1 %6241  ;;  %v6237_v23 = vpop.permute.xlu0 %6236  ;;  %v5211_v25 = vpack.c.bf16 %v3912_v42, %v3852_v53  ;;  %v8382_v53 = vld [vmem:[#allocation12_spill] sm:$0xff] }
 0x523   : > { %v6244_v34 = vunpack.i.h.bf16 %v6242_v43  ;;  %v6243_v59 = vunpack.i.l.bf16 %v6242_v43  ;;  %v6239_v55 = vunpack.i.h.bf16 %v6237_v23  ;;  %v6238_v9 = vunpack.i.l.bf16 %v6237_v23 }
 0x524   : > { %5212 = vmatprep.subr.bf16.mxu1 %v5211_v25 }
 0x525   : > { %v4029_v1 = vsel %vm1798_vm13, %v7786_v52, %v6243_v59  ;;  %v3969_v32 = vsel %vm1737_vm15, %v8374_v60, %v6238_v9  ;;  %5214 = vmatpush1.bf16.msra.mxu1 %v5213_v22  ;;  %v3970_v4 = vsel %vm1737_vm15, %v6238_v9, %v6239_v55  ;;  %v4030_v48 = vsel %vm1798_vm13, %v6243_v59, %v6244_v34 }
 0x526   : > { %v5165_v62 = vpack.c.bf16 %v4029_v1, %v3969_v32  ;;  %v6252_v36 = vpop.permute.xlu1 %6251  ;;  %v6247_v51 = vpop.permute.xlu0 %6246  ;;  %v5163_v21 = vpack.c.bf16 %v4030_v48, %v3970_v4 }
 0x527   : > { %v6254_v26 = vunpack.i.h.bf16 %v6252_v36  ;;  %v6253_v5 = vunpack.i.l.bf16 %v6252_v36  ;;  %v6249_v39 = vunpack.i.h.bf16 %v6247_v51  ;;  %v6248_v61 = vunpack.i.l.bf16 %v6247_v51 }
 0x528   : > { %5164 = vmatprep.subr.bf16.mxu0 %v5163_v21 }
 0x529   : > { %v4031_v18 = vsel %vm1798_vm13, %v6244_v34, %v6253_v5  ;;  %v3971_v52 = vsel %vm1737_vm15, %v6239_v55, %v6248_v61  ;;  %5166 = vmatpush1.bf16.msra.mxu0 %v5165_v62  ;;  %v3972_v41 = vsel %vm1737_vm15, %v6248_v61, %v6249_v39  ;;  %v4032_v0 = vsel %vm1798_vm13, %v6253_v5, %v6254_v26 }
 0x52a   : > { %v5217_v31 = vpack.c.bf16 %v4031_v18, %v3971_v52  ;;  %v4080_v17 = vpop.permute.xlu1 %4079  ;;  %v4078_v33 = vpop.permute.xlu0 %4077  ;;  %v5215_v6 = vpack.c.bf16 %v4032_v0, %v3972_v41 }
 0x52b   : > { %v4089_v24 = vsel %vm1859_vm14, %v7821_v58, %v4078_v33  ;;  %v4090_v11 = vsel %vm1859_vm14, %v4078_v33, %v4080_v17  ;;  %v8375_v58 = vld [vmem:[#allocation5_spill] sm:$0xff] }
 0x52c   : > { %4524 = vmatprep.subr.mxu0 %v4090_v11  ;;  %5216 = vmatprep.subr.bf16.mxu1 %v5215_v6 }
 0x52d   : > { %4525 = vmatpush1.msra.mxu0 %v4089_v24  ;;  %5218 = vmatpush1.bf16.msra.mxu1 %v5217_v31 }
 0x52e   : > { %v4084_v16 = vpop.permute.xlu1 %4083  ;;  %v4082_v57 = vpop.permute.xlu0 %4081  ;;  %4537 = vmatmul.mubr.f32.vlgmr.msra.gmra.mrb[6].mxu0 %v7804_v12 }
 0x52f   : > { %v4091_v49 = vsel %vm1859_vm14, %v4080_v17, %v4082_v57  ;;  %v4092_v29 = vsel %vm1859_vm14, %v4082_v57, %v4084_v16 }
 0x530   : > { %4595 = vmatprep.subr.mxu1 %v4092_v29 }
 0x531   : > { %4596 = vmatpush1.msra.mxu1 %v4091_v49 }
 0x532   : > { %4608 = vmatmul.mubr.f32.vlgmr.msra.gmra.mrb[6].mxu1 %v7804_v12  ;;  %v8380_v12 = vld [vmem:[#allocation10_spill] sm:$0xff] }
 0x5a1   : > { %v4396_v15 = vpop.f32.mrb[4].mxu0 }
 0x5a2   : > { %v4614_v7 = vmul.f32 %v4396_v15, %v8375_v58  ;;  %v4398_v63 = vpop.f32.mrb[5].mxu0 }
 0x5a3   : > { %v4615_v13 = vmul.f32 %v4398_v63, %v8376_v19 }
 0x5a5   : > { %v4622_v27 = vadd.f32 %v4615_v13, %v4614_v7 }
 0x5ad   : > { %v4467_v8 = vpop.f32.mrb[4].mxu1 }
 0x5ae   : > { %v4616_v35 = vmul.f32 %v4467_v8, %v8377_v10  ;;  %v4469_v45 = vpop.f32.mrb[5].mxu1 }
 0x5af   : > { %v4617_v3 = vmul.f32 %v4469_v45, %v8378_v54 }
 0x5b0   : > { %v4623_v14 = vadd.f32 %v4622_v27, %v4616_v35 }
 0x5b2   : > { %v4624_v28 = vadd.f32 %v4623_v14, %v4617_v3 }
 0x601   : > { %v4538_v20 = vpop.f32.mrb[6].mxu0 }
 0x602   : > { %v4618_v37 = vmul.f32 %v4538_v20, %v8379_v30  ;;  %v4540_v40 = vpop.f32.mrb[7].mxu0 }
 0x603   : > { %v4619_v47 = vmul.f32 %v4540_v40, %v8380_v12 }
 0x604   : > { %v4625_v38 = vadd.f32 %v4624_v28, %v4618_v37 }
 0x605   : > { %v4609_v46 = vpop.f32.mrb[6].mxu1 }
 0x606   : > { %v4626_v56 = vadd.f32 %v4625_v38, %v4619_v47  ;;  %v4620_v44 = vmul.f32 %v4609_v46, %v8381_v2  ;;  %v4611_v50 = vpop.f32.mrb[7].mxu1 }
 0x607   : > { %v4621_v42 = vmul.f32 %v4611_v50, %v8382_v53 }
 0x608   : > { %v4627_v22 = vadd.f32 %v4626_v56, %v4620_v44 }
 0x60a   : > { %v4628_v43 = vadd.f32 %v4627_v22, %v4621_v42 }
 0x60c   : > { %4629 = vadd.xlane.f32.xlu0 %v4628_v43 }
 0x699   : > { %v4630_v23 = vpop.xlane.xlu0 %4629 }
 0x69a   : > { %v4631_v25 = vmul.f32 0.001953125, %v4630_v23 }
 0x69c   : > { %v4632_v34 = vsub.f32 %v4396_v15, %v4631_v25  ;;  %v4633_v59 = vsub.f32 %v4398_v63, %v4631_v25  ;;  %v4634_v55 = vsub.f32 %v4467_v8, %v4631_v25  ;;  %v4635_v9 = vsub.f32 %v4469_v45, %v4631_v25 }
 0x69d   : > { %v4636_v1 = vsub.f32 %v4538_v20, %v4631_v25  ;;  %v4637_v48 = vsub.f32 %v4540_v40, %v4631_v25  ;;  %v4638_v21 = vsub.f32 %v4609_v46, %v4631_v25  ;;  %v4639_v61 = vsub.f32 %v4611_v50, %v4631_v25 }
 0x69e   : > { %v4640_v60 = vmul.f32 %v4632_v34, %v8375_v58  ;;  %v4641_v32 = vmul.f32 %v4633_v59, %v8376_v19  ;;  %v4642_v4 = vmul.f32 %v4634_v55, %v8377_v10  ;;  %v4643_v62 = vmul.f32 %v4635_v9, %v8378_v54 }
 0x69f   : > { %v4644_v26 = vmul.f32 %v4636_v1, %v8379_v30  ;;  %v4645_v18 = vmul.f32 %v4637_v48, %v8380_v12  ;;  %v4646_v0 = vmul.f32 %v4638_v21, %v8381_v2  ;;  %v4647_v33 = vmul.f32 %v4639_v61, %v8382_v53 }
 0x6a0   : > { %v4648_v36 = vmul.f32 %v4640_v60, %v4640_v60  ;;  %v4649_v51 = vmul.f32 %v4641_v32, %v4641_v32  ;;  %v4650_v5 = vmul.f32 %v4642_v4, %v4642_v4  ;;  %v4651_v52 = vmul.f32 %v4643_v62, %v4643_v62 }
 0x6a1   : > { %v4652_v31 = vmul.f32 %v4644_v26, %v4644_v26  ;;  %v4653_v6 = vmul.f32 %v4645_v18, %v4645_v18  ;;  %v4654_v11 = vmul.f32 %v4646_v0, %v4646_v0  ;;  %v4655_v57 = vmul.f32 %v4647_v33, %v4647_v33 }
 0x6a2   : > { %v4656_v39 = vadd.f32 %v4649_v51, %v4648_v36 }
 0x6a4   : > { %v4657_v41 = vadd.f32 %v4656_v39, %v4650_v5 }
 0x6a6   : > { %v4658_v17 = vadd.f32 %v4657_v41, %v4651_v52 }
 0x6a8   : > { %v4659_v24 = vadd.f32 %v4658_v17, %v4652_v31 }
 0x6aa   : > { %v4660_v16 = vadd.f32 %v4659_v24, %v4653_v6 }
 0x6ac   : > { %v4661_v49 = vadd.f32 %v4660_v16, %v4654_v11 }
 0x6ae   : > { %v4662_v29 = vadd.f32 %v4661_v49, %v4655_v57 }
 0x6b0   : > { %4663 = vadd.xlane.f32.xlu1 %v4662_v29 }
 0x73d   : > { %v4664_v15 = vpop.xlane.xlu1 %4663 }
 0x73e   : > { %v4665_v7 = vmul.f32 0.001953125, %v4664_v15 }
 0x740   : > { %v4666_v63 = vadd.f32 1e-05, %v4665_v7 }
 0x742   : > { %6257 = vrsqrt.f32 %v4666_v63 }
 0x74c   : > { %v6258_v13 = vpop.eup %6257 }
 0x74d   : > { %v4668_v27 = vmul.f32 %v6258_v13, %v4632_v34  ;;  %v4669_v8 = vmul.f32 %v6258_v13, %v4633_v59  ;;  %v4670_v35 = vmul.f32 %v6258_v13, %v4634_v55  ;;  %v4671_v45 = vmul.f32 %v6258_v13, %v4635_v9 }
 0x74e   : > { %v4672_v3 = vmul.f32 %v6258_v13, %v4636_v1  ;;  %v4673_v14 = vmul.f32 %v6258_v13, %v4637_v48  ;;  %v4674_v28 = vmul.f32 %v6258_v13, %v4638_v21  ;;  %v4675_v20 = vmul.f32 %v6258_v13, %v4639_v61 }
 0x74f   : > { %vm4676_vm11 = vcmp.ge.f32.partialorder %v4668_v27, 0.0  ;;  %vm4677_vm13 = vcmp.ge.f32.partialorder %v4669_v8, 0.0  ;;  %vm4678_vm14 = vcmp.ge.f32.partialorder %v4670_v35, 0.0  ;;  %vm4679_vm15 = vcmp.ge.f32.partialorder %v4671_v45, 0.0 }
 0x750   : > { %vm4680_vm8 = vcmp.ge.f32.partialorder %v4672_v3, 0.0  ;;  %vm4681_vm10 = vcmp.ge.f32.partialorder %v4673_v14, 0.0  ;;  %vm4682_vm7 = vcmp.ge.f32.partialorder %v4674_v28, 0.0  ;;  %vm4683_vm6 = vcmp.ge.f32.partialorder %v4675_v20, 0.0 }
 0x751   : > { %v4684_v37 = vmul.f32 0.01, %v4668_v27  ;;  %v4685_v40 = vmul.f32 0.01, %v4669_v8  ;;  %v4686_v47 = vmul.f32 0.01, %v4670_v35 }
 0x752   : > { %v4687_v38 = vmul.f32 0.01, %v4671_v45  ;;  %v4688_v46 = vmul.f32 0.01, %v4672_v3  ;;  %v4689_v56 = vmul.f32 0.01, %v4673_v14 }
 0x753   : > { %v4690_v44 = vmul.f32 0.01, %v4674_v28  ;;  %v4691_v50 = vmul.f32 0.01, %v4675_v20  ;;  %v4692_v42 = vsel %vm4676_vm11, %v4668_v27, %v4684_v37  ;;  %v4693_v22 = vsel %vm4677_vm13, %v4669_v8, %v4685_v40 }
 0x754   : > { %v4694_v43 = vsel %vm4678_vm14, %v4670_v35, %v4686_v47  ;;  %v4695_v23 = vsel %vm4679_vm15, %v4671_v45, %v4687_v38  ;;  %v4696_v25 = vsel %vm4680_vm8, %v4672_v3, %v4688_v46  ;;  %v4697_v34 = vsel %vm4681_vm10, %v4673_v14, %v4689_v56 }
 0x755   : > { %v4698_v59 = vsel %vm4682_vm7, %v4674_v28, %v4690_v44  ;;  %v4699_v55 = vsel %vm4683_vm6, %v4675_v20, %v4691_v50  ;;  %v4700_v9 = vmul.f32 %v4692_v42, %v8375_v58  ;;  %v4701_v1 = vmul.f32 %v4693_v22, %v8376_v19 }
 0x756   : > { %v4702_v60 = vmul.f32 %v4694_v43, %v8377_v10  ;;  %v4703_v32 = vmul.f32 %v4695_v23, %v8378_v54  ;;  %v4704_v4 = vmul.f32 %v4696_v25, %v8379_v30  ;;  %v4705_v48 = vmul.f32 %v4697_v34, %v8380_v12 }
 0x757   : > { %v4706_v62 = vmul.f32 %v4698_v59, %v8381_v2  ;;  %v4707_v36 = vmul.f32 %v4699_v55, %v8382_v53  ;;  %4708 = vst [vmem:[%s244_s19] sm:$0xff] %v4700_v9  ;;  %4709 = vst [vmem:[%s244_s19 + $0x8] sm:$0xff] %v4701_v1 }
 0x758   : > { %4710 = vst [vmem:[%s244_s19 + $0x10] sm:$0xff] %v4702_v60  ;;  %4711 = vst [vmem:[%s244_s19 + $0x18] sm:$0xff] %v4703_v32 }
 0x759   : > { %4712 = vst [vmem:[%s244_s19 + $0x20] sm:$0xff] %v4704_v4  ;;  %4713 = vst [vmem:[%s244_s19 + $0x28] sm:$0xff] %v4705_v48 }
 0x75a   : > { %4714 = vst [vmem:[%s244_s19 + $0x30] sm:$0xff] %v4706_v62  ;;  %4715 = vst [vmem:[%s244_s19 + $0x38] sm:$0xff] %v4707_v36 }
 0x75b PF: > { %s15_s18 = sadd.s32 1, %s6266_s18  }
 0x75c   : > { %p12_p4 = scmp.ge.s32.totalorder %s15_s18, 4  }
 0x75e   :  { %14 = sbr.rel (!%p12_p4) target bundleno = 1 (0x1), region = 73 }

</bundles_post_ra>
